<compile_context>
chip_gen: v7x
topology: tpu7x:2x2x1
jax: 0.10.0
libtpu: 0.0.40
codegen_flags: <defaults>
</compile_context>

<pallas_src>
import jax
import jax.numpy as jnp
from jax import lax
from jax.experimental import pallas as pl
from jax.experimental.pallas import tpu as pltpu

SEM_SEG_CLASSES = 8
CONTOUR_CLASSES = 4     # cfg.MODEL.CONTOUR_HEAD.NUM_CLASSES
OFFSET_CHANNELS = 2     # center regression (dy, dx)
NUM_OUT = SEM_SEG_CLASSES + CONTOUR_CLASSES + OFFSET_CHANNELS   # 14
HEAD_PAD = 128          # lane-dense output width (kernel writes 128, wrapper slices 14)
BACKBONE_CH = 32
FPN_CH = 32


# ----------------------------------------------------------------------------
# Fused kernel: normalize + backbone conv + fpn conv + 1x1 heads
# ----------------------------------------------------------------------------
def _contour_fused_kernel(x_ref, mean_ref, inv_std_ref,
                          w_bb_ref, b_bb_ref,
                          w_fpn_ref, b_fpn_ref,
                          w_hd_ref, b_hd_ref,
                          o_ref,
                          pad0_ref, pad1_ref):
    # x_ref      : (1, H, W, 3)   raw image tile (un-normalized)
    # mean/inv_std: (1, 3)
    # w_bb_ref   : (3, 3, 3, 32),  b_bb_ref : (1, 32)
    # w_fpn_ref  : (3, 3, 32, 32), b_fpn_ref: (1, 32)
    # w_hd_ref   : (32, 128) zero-padded heads weight, b_hd_ref: (1, 128)
    # o_ref      : (1, H, W, 128) lane-dense fused heads output
    # pad0_ref   : VMEM (H+2, W+2, 3)   zero-padded normalized image
    # pad1_ref   : VMEM (H+2, W+2, 32)  zero-padded backbone features
    H = o_ref.shape[1]
    W = o_ref.shape[2]
    C0 = x_ref.shape[3]
    C1 = w_bb_ref.shape[3]
    C2 = w_fpn_ref.shape[3]
    CH = o_ref.shape[3]

    # --- normalization fused with SAME zero-padding into VMEM scratch ---
    pad0_ref[...] = jnp.zeros_like(pad0_ref)
    pad0_ref[1:H + 1, 1:W + 1, :] = (x_ref[0] - mean_ref[0]) * inv_std_ref[0]

    # --- backbone: 3x3 conv + ReLU (f32 accumulate on MXU) ---
    acc = jnp.zeros((H * W, C1), jnp.float32)
    for ky in range(3):
        for kx in range(3):
            patch = pad0_ref[ky:ky + H, kx:kx + W, :].reshape(H * W, C0)
            acc = acc + jnp.dot(patch, w_bb_ref[ky, kx],
                                preferred_element_type=jnp.float32)
    feats = jnp.maximum(acc + b_bb_ref[0], 0.0)                 # (H*W, C1)

    # --- fpn_block: 3x3 conv + ReLU; padded input stays in VMEM ---
    pad1_ref[...] = jnp.zeros_like(pad1_ref)
    pad1_ref[1:H + 1, 1:W + 1, :] = feats.reshape(H, W, C1)

    acc2 = jnp.zeros((H * W, C2), jnp.float32)
    for ky in range(3):
        for kx in range(3):
            patch = pad1_ref[ky:ky + H, kx:kx + W, :].reshape(H * W, C1)
            acc2 = acc2 + jnp.dot(patch, w_fpn_ref[ky, kx],
                                  preferred_element_type=jnp.float32)
    fpn = jnp.maximum(acc2 + b_fpn_ref[0], 0.0)                 # (H*W, C2)

    # --- fused 1x1 heads epilogue (sem_seg | contours | offsets, padded to 128) ---
    y = jnp.dot(fpn, w_hd_ref[...], preferred_element_type=jnp.float32) + b_hd_ref[0]
    o_ref[...] = y.reshape(1, H, W, CH)


# ----------------------------------------------------------------------------
# Wrapper (pallas_call plumbing)
# ----------------------------------------------------------------------------
def contour_net_fused(x_nhwc, params):
    B, H, W, C0 = x_nhwc.shape
    mean = params["pixel_mean"].reshape(1, C0).astype(jnp.float32)
    inv_std = (1.0 / params["pixel_std"]).reshape(1, C0).astype(jnp.float32)
    b_bb = params["backbone_b"].reshape(1, BACKBONE_CH)
    b_fpn = params["fpn_b"].reshape(1, FPN_CH)
    # Lane-dense heads: zero-pad 14 -> 128 output channels (sliced in wrapper).
    w_hd = jnp.zeros((FPN_CH, HEAD_PAD), jnp.float32).at[:, :NUM_OUT].set(
        params["heads_w"])
    b_hd = jnp.zeros((1, HEAD_PAD), jnp.float32).at[0, :NUM_OUT].set(
        params["heads_b"])

    return pl.pallas_call(
        _contour_fused_kernel,
        out_shape=jax.ShapeDtypeStruct((B, H, W, HEAD_PAD), jnp.float32),
        grid=(B,),
        in_specs=[
            pl.BlockSpec((1, H, W, C0), lambda b: (b, 0, 0, 0)),
            pl.BlockSpec((1, C0), lambda b: (0, 0)),
            pl.BlockSpec((1, C0), lambda b: (0, 0)),
            pl.BlockSpec((3, 3, C0, BACKBONE_CH), lambda b: (0, 0, 0, 0)),
            pl.BlockSpec((1, BACKBONE_CH), lambda b: (0, 0)),
            pl.BlockSpec((3, 3, BACKBONE_CH, FPN_CH), lambda b: (0, 0, 0, 0)),
            pl.BlockSpec((1, FPN_CH), lambda b: (0, 0)),
            pl.BlockSpec((FPN_CH, HEAD_PAD), lambda b: (0, 0)),
            pl.BlockSpec((1, HEAD_PAD), lambda b: (0, 0)),
        ],
        out_specs=pl.BlockSpec((1, H, W, HEAD_PAD), lambda b: (b, 0, 0, 0)),
        scratch_shapes=[
            pltpu.VMEM((H + 2, W + 2, C0), jnp.float32),
            pltpu.VMEM((H + 2, W + 2, BACKBONE_CH), jnp.float32),
        ],
        compiler_params=pltpu.CompilerParams(
            dimension_semantics=("parallel",)),
    )(x_nhwc, mean, inv_std,
      params["backbone_w"], b_bb,
      params["fpn_w"], b_fpn,
      w_hd, b_hd)


# ----------------------------------------------------------------------------
# ContourNet forward (inference)
# ----------------------------------------------------------------------------
def init_params(key):
    ks = jax.random.split(key, 6)
    scale = 0.1
    return {
        "pixel_mean": jnp.array([103.53, 116.28, 123.675], jnp.float32),
        "pixel_std": jnp.array([57.375, 57.12, 58.395], jnp.float32),
        "backbone_w": scale * jax.random.normal(ks[0], (3, 3, 3, BACKBONE_CH), jnp.float32),
        "backbone_b": scale * jax.random.normal(ks[1], (BACKBONE_CH,), jnp.float32),
        "fpn_w": scale * jax.random.normal(ks[2], (3, 3, BACKBONE_CH, FPN_CH), jnp.float32),
        "fpn_b": scale * jax.random.normal(ks[3], (FPN_CH,), jnp.float32),
        "heads_w": scale * jax.random.normal(ks[4], (FPN_CH, NUM_OUT), jnp.float32),
        "heads_b": scale * jax.random.normal(ks[5], (NUM_OUT,), jnp.float32),
        # n_losses = 4 (HUBER_ACTIVE) -> uncertainty sigma; unused at inference.
        "sigma": jnp.ones((4,), jnp.float32),
    }


@jax.jit
def contour_net_forward(params, images_nchw):
    # images: (B, 3, H, W) float32, NCHW as in PyTorch.
    x = jnp.transpose(images_nchw, (0, 2, 3, 1))                 # -> NHWC
    heads = contour_net_fused(x, params)[..., :NUM_OUT]          # (B, H, W, 14)
    heads = jnp.transpose(heads, (0, 3, 1, 2))                   # single NCHW transpose
    return {
        "sem_seg": heads[:, :SEM_SEG_CLASSES],
        "contours": heads[:, SEM_SEG_CLASSES:SEM_SEG_CLASSES + CONTOUR_CLASSES],
        "offsets": heads[:, SEM_SEG_CLASSES + CONTOUR_CLASSES:],
    }


# ----------------------------------------------------------------------------
# Pure-JAX reference for correctness
# ----------------------------------------------------------------------------
def reference_forward(params, images_nchw):
    x = jnp.transpose(images_nchw, (0, 2, 3, 1))
    x = (x - params["pixel_mean"]) / params["pixel_std"]

    def conv(x, w, b):
        y = lax.conv_general_dilated(
            x, w, window_strides=(1, 1), padding="SAME",
            dimension_numbers=("NHWC", "HWIO", "NHWC"))
        return jnp.maximum(y + b, 0.0)

    feats = conv(x, params["backbone_w"], params["backbone_b"])
    fpn_feats = conv(feats, params["fpn_w"], params["fpn_b"])
    heads = jnp.einsum("bhwc,cd->bhwd", fpn_feats, params["heads_w"]) + params["heads_b"]
    sem_seg = heads[..., :SEM_SEG_CLASSES]
    contours = heads[..., SEM_SEG_CLASSES:SEM_SEG_CLASSES + CONTOUR_CLASSES]
    offsets = heads[..., SEM_SEG_CLASSES + CONTOUR_CLASSES:]
    return {
        "sem_seg": jnp.transpose(sem_seg, (0, 3, 1, 2)),
        "contours": jnp.transpose(contours, (0, 3, 1, 2)),
        "offsets": jnp.transpose(offsets, (0, 3, 1, 2)),
    }


if __name__ == "__main__":
    key = jax.random.PRNGKey(0)
    pkey, xkey = jax.random.split(key)
    params = init_params(pkey)

    B, C, H, W = 2, 3, 16, 16
    images = jax.random.uniform(xkey, (B, C, H, W), jnp.float32) * 255.0

    out = contour_net_forward(params, images)
    out = jax.block_until_ready(out)

    ref = reference_forward(params, images)

    ok = True
    for k in ("sem_seg", "contours", "offsets"):
        assert out[k].shape == ref[k].shape, (k, out[k].shape, ref[k].shape)
        ok = ok and bool(jnp.allclose(out[k], ref[k], atol=1e-3, rtol=1e-3))

    if ok:
        print("KERNEL_OK")
    else:
        print("KERNEL_MISMATCH")
</pallas_src>

<mosaic_0001>
module attributes {stable_mosaic.version = 11 : i64} {
  func.func @_contour_fused_kernel(%arg0: i32, %arg1: memref<1x16x16x3xf32, #tpu.memory_space<vmem>>, %arg2: memref<1x3xf32, #tpu.memory_space<vmem>>, %arg3: memref<1x3xf32, #tpu.memory_space<vmem>>, %arg4: memref<3x3x3x32xf32, #tpu.memory_space<vmem>>, %arg5: memref<1x32xf32, #tpu.memory_space<vmem>>, %arg6: memref<3x3x32x32xf32, #tpu.memory_space<vmem>>, %arg7: memref<1x32xf32, #tpu.memory_space<vmem>>, %arg8: memref<32x128xf32, #tpu.memory_space<vmem>>, %arg9: memref<1x128xf32, #tpu.memory_space<vmem>>, %arg10: memref<1x16x16x128xf32, #tpu.memory_space<vmem>>, %arg11: memref<18x18x3xf32, #tpu.memory_space<vmem>>, %arg12: memref<18x18x32xf32, #tpu.memory_space<vmem>>) attributes {dimension_semantics = [#tpu.dimension_semantics<parallel>], iteration_bounds = array<i64: 2>, scalar_prefetch = 0 : i64, scratch_operands = 2 : i64, tpu.core_type = #tpu.core_type<tc>, window_params = [{transform_indices = @transform_0, window_bounds = array<i64: 1, 16, 16, 3>}, {pipeline_mode = #tpu.pipeline_mode<synchronous>, transform_indices = @transform_1, window_bounds = array<i64: 1, 3>}, {pipeline_mode = #tpu.pipeline_mode<synchronous>, transform_indices = @transform_2, window_bounds = array<i64: 1, 3>}, {pipeline_mode = #tpu.pipeline_mode<synchronous>, transform_indices = @transform_3, window_bounds = array<i64: 3, 3, 3, 32>}, {pipeline_mode = #tpu.pipeline_mode<synchronous>, transform_indices = @transform_4, window_bounds = array<i64: 1, 32>}, {pipeline_mode = #tpu.pipeline_mode<synchronous>, transform_indices = @transform_5, window_bounds = array<i64: 3, 3, 32, 32>}, {pipeline_mode = #tpu.pipeline_mode<synchronous>, transform_indices = @transform_6, window_bounds = array<i64: 1, 32>}, {pipeline_mode = #tpu.pipeline_mode<synchronous>, transform_indices = @transform_7, window_bounds = array<i64: 32, 128>}, {pipeline_mode = #tpu.pipeline_mode<synchronous>, transform_indices = @transform_8, window_bounds = array<i64: 1, 128>}, {transform_indices = @transform_9, window_bounds = array<i64: 1, 16, 16, 128>}]} {
    %cst = arith.constant 0.000000e+00 : f32
    %0 = vector.broadcast %cst : f32 to vector<18x18x3xf32>
    %c0 = arith.constant 0 : index
    %c0_0 = arith.constant 0 : index
    %c0_1 = arith.constant 0 : index
    %1 = vector.load %arg11[%c0, %c0_0, %c0_1] : memref<18x18x3xf32, #tpu.memory_space<vmem>>, vector<18x18x3xf32>
    tpu.vector_store %arg11[%c0, %c0_0, %c0_1], %0 {strides = array<i32>} : memref<18x18x3xf32, #tpu.memory_space<vmem>>, vector<18x18x3xf32>,
    %c0_2 = arith.constant 0 : index
    %c0_3 = arith.constant 0 : index
    %c0_4 = arith.constant 0 : index
    %c0_5 = arith.constant 0 : index
    %2 = vector.load %arg1[%c0_2, %c0_3, %c0_4, %c0_5] : memref<1x16x16x3xf32, #tpu.memory_space<vmem>>, vector<1x16x16x3xf32>
    %3 = vector.shape_cast %2 : vector<1x16x16x3xf32> to vector<16x16x3xf32>
    %c0_6 = arith.constant 0 : index
    %c0_7 = arith.constant 0 : index
    %4 = vector.load %arg2[%c0_6, %c0_7] : memref<1x3xf32, #tpu.memory_space<vmem>>, vector<1x3xf32>
    %5 = vector.shape_cast %4 : vector<1x3xf32> to vector<3xf32>
    %6 = vector.shape_cast %5 : vector<3xf32> to vector<1x1x3xf32>
    %7 = vector.broadcast %6 : vector<1x1x3xf32> to vector<16x16x3xf32>
    %8 = arith.subf %3, %7 : vector<16x16x3xf32>
    %c0_8 = arith.constant 0 : index
    %c0_9 = arith.constant 0 : index
    %9 = vector.load %arg3[%c0_8, %c0_9] : memref<1x3xf32, #tpu.memory_space<vmem>>, vector<1x3xf32>
    %10 = vector.shape_cast %9 : vector<1x3xf32> to vector<3xf32>
    %11 = vector.shape_cast %10 : vector<3xf32> to vector<1x1x3xf32>
    %12 = vector.broadcast %11 : vector<1x1x3xf32> to vector<16x16x3xf32>
    %13 = arith.mulf %8, %12 : vector<16x16x3xf32>
    %c1 = arith.constant 1 : index
    %c1_10 = arith.constant 1 : index
    %c0_11 = arith.constant 0 : index
    %14 = vector.load %arg11[%c1, %c1_10, %c0_11] : memref<18x18x3xf32, #tpu.memory_space<vmem>>, vector<16x16x3xf32>
    tpu.vector_store %arg11[%c1, %c1_10, %c0_11], %13 {strides = array<i32>} : memref<18x18x3xf32, #tpu.memory_space<vmem>>, vector<16x16x3xf32>,
    %cst_12 = arith.constant 0.000000e+00 : f32
    %15 = vector.broadcast %cst_12 : f32 to vector<256x32xf32>
    %c0_13 = arith.constant 0 : index
    %c0_14 = arith.constant 0 : index
    %c0_15 = arith.constant 0 : index
    %16 = vector.load %arg11[%c0_13, %c0_14, %c0_15] : memref<18x18x3xf32, #tpu.memory_space<vmem>>, vector<16x16x3xf32>
    %17 = vector.shape_cast %16 : vector<16x16x3xf32> to vector<256x3xf32>
    %c0_16 = arith.constant 0 : index
    %c0_17 = arith.constant 0 : index
    %c0_18 = arith.constant 0 : index
    %c0_19 = arith.constant 0 : index
    %18 = vector.load %arg4[%c0_16, %c0_17, %c0_18, %c0_19] : memref<3x3x3x32xf32, #tpu.memory_space<vmem>>, vector<1x1x3x32xf32>
    %19 = vector.shape_cast %18 : vector<1x1x3x32xf32> to vector<3x32xf32>
    %cst_20 = arith.constant dense<0.000000e+00> : vector<256x32xf32>
    %20 = tpu.matmul %17, %19, %cst_20 {dimension_numbers = #tpu.dot_dimension_numbers<[1], [0], [0], [1], [0, 0, 1, 1], [], []>} : vector<256x3xf32>, vector<3x32xf32>, vector<256x32xf32> -> vector<256x32xf32>
    %21 = arith.addf %15, %20 : vector<256x32xf32>
    %c0_21 = arith.constant 0 : index
    %c1_22 = arith.constant 1 : index
    %c0_23 = arith.constant 0 : index
    %22 = vector.load %arg11[%c0_21, %c1_22, %c0_23] : memref<18x18x3xf32, #tpu.memory_space<vmem>>, vector<16x16x3xf32>
    %23 = vector.shape_cast %22 : vector<16x16x3xf32> to vector<256x3xf32>
    %c0_24 = arith.constant 0 : index
    %c1_25 = arith.constant 1 : index
    %c0_26 = arith.constant 0 : index
    %c0_27 = arith.constant 0 : index
    %24 = vector.load %arg4[%c0_24, %c1_25, %c0_26, %c0_27] : memref<3x3x3x32xf32, #tpu.memory_space<vmem>>, vector<1x1x3x32xf32>
    %25 = vector.shape_cast %24 : vector<1x1x3x32xf32> to vector<3x32xf32>
    %cst_28 = arith.constant dense<0.000000e+00> : vector<256x32xf32>
    %26 = tpu.matmul %23, %25, %cst_28 {dimension_numbers = #tpu.dot_dimension_numbers<[1], [0], [0], [1], [0, 0, 1, 1], [], []>} : vector<256x3xf32>, vector<3x32xf32>, vector<256x32xf32> -> vector<256x32xf32>
    %27 = arith.addf %21, %26 : vector<256x32xf32>
    %c0_29 = arith.constant 0 : index
    %c2 = arith.constant 2 : index
    %c0_30 = arith.constant 0 : index
    %28 = vector.load %arg11[%c0_29, %c2, %c0_30] : memref<18x18x3xf32, #tpu.memory_space<vmem>>, vector<16x16x3xf32>
    %29 = vector.shape_cast %28 : vector<16x16x3xf32> to vector<256x3xf32>
    %c0_31 = arith.constant 0 : index
    %c2_32 = arith.constant 2 : index
    %c0_33 = arith.constant 0 : index
    %c0_34 = arith.constant 0 : index
    %30 = vector.load %arg4[%c0_31, %c2_32, %c0_33, %c0_34] : memref<3x3x3x32xf32, #tpu.memory_space<vmem>>, vector<1x1x3x32xf32>
    %31 = vector.shape_cast %30 : vector<1x1x3x32xf32> to vector<3x32xf32>
    %cst_35 = arith.constant dense<0.000000e+00> : vector<256x32xf32>
    %32 = tpu.matmul %29, %31, %cst_35 {dimension_numbers = #tpu.dot_dimension_numbers<[1], [0], [0], [1], [0, 0, 1, 1], [], []>} : vector<256x3xf32>, vector<3x32xf32>, vector<256x32xf32> -> vector<256x32xf32>
    %33 = arith.addf %27, %32 : vector<256x32xf32>
    %c1_36 = arith.constant 1 : index
    %c0_37 = arith.constant 0 : index
    %c0_38 = arith.constant 0 : index
    %34 = vector.load %arg11[%c1_36, %c0_37, %c0_38] : memref<18x18x3xf32, #tpu.memory_space<vmem>>, vector<16x16x3xf32>
    %35 = vector.shape_cast %34 : vector<16x16x3xf32> to vector<256x3xf32>
    %c1_39 = arith.constant 1 : index
    %c0_40 = arith.constant 0 : index
    %c0_41 = arith.constant 0 : index
    %c0_42 = arith.constant 0 : index
    %36 = vector.load %arg4[%c1_39, %c0_40, %c0_41, %c0_42] : memref<3x3x3x32xf32, #tpu.memory_space<vmem>>, vector<1x1x3x32xf32>
    %37 = vector.shape_cast %36 : vector<1x1x3x32xf32> to vector<3x32xf32>
    %cst_43 = arith.constant dense<0.000000e+00> : vector<256x32xf32>
    %38 = tpu.matmul %35, %37, %cst_43 {dimension_numbers = #tpu.dot_dimension_numbers<[1], [0], [0], [1], [0, 0, 1, 1], [], []>} : vector<256x3xf32>, vector<3x32xf32>, vector<256x32xf32> -> vector<256x32xf32>
    %39 = arith.addf %33, %38 : vector<256x32xf32>
    %c1_44 = arith.constant 1 : index
    %c1_45 = arith.constant 1 : index
    %c0_46 = arith.constant 0 : index
    %40 = vector.load %arg11[%c1_44, %c1_45, %c0_46] : memref<18x18x3xf32, #tpu.memory_space<vmem>>, vector<16x16x3xf32>
    %41 = vector.shape_cast %40 : vector<16x16x3xf32> to vector<256x3xf32>
    %c1_47 = arith.constant 1 : index
    %c1_48 = arith.constant 1 : index
    %c0_49 = arith.constant 0 : index
    %c0_50 = arith.constant 0 : index
    %42 = vector.load %arg4[%c1_47, %c1_48, %c0_49, %c0_50] : memref<3x3x3x32xf32, #tpu.memory_space<vmem>>, vector<1x1x3x32xf32>
    %43 = vector.shape_cast %42 : vector<1x1x3x32xf32> to vector<3x32xf32>
    %cst_51 = arith.constant dense<0.000000e+00> : vector<256x32xf32>
    %44 = tpu.matmul %41, %43, %cst_51 {dimension_numbers = #tpu.dot_dimension_numbers<[1], [0], [0], [1], [0, 0, 1, 1], [], []>} : vector<256x3xf32>, vector<3x32xf32>, vector<256x32xf32> -> vector<256x32xf32>
    %45 = arith.addf %39, %44 : vector<256x32xf32>
    %c1_52 = arith.constant 1 : index
    %c2_53 = arith.constant 2 : index
    %c0_54 = arith.constant 0 : index
    %46 = vector.load %arg11[%c1_52, %c2_53, %c0_54] : memref<18x18x3xf32, #tpu.memory_space<vmem>>, vector<16x16x3xf32>
    %47 = vector.shape_cast %46 : vector<16x16x3xf32> to vector<256x3xf32>
    %c1_55 = arith.constant 1 : index
    %c2_56 = arith.constant 2 : index
    %c0_57 = arith.constant 0 : index
    %c0_58 = arith.constant 0 : index
    %48 = vector.load %arg4[%c1_55, %c2_56, %c0_57, %c0_58] : memref<3x3x3x32xf32, #tpu.memory_space<vmem>>, vector<1x1x3x32xf32>
    %49 = vector.shape_cast %48 : vector<1x1x3x32xf32> to vector<3x32xf32>
    %cst_59 = arith.constant dense<0.000000e+00> : vector<256x32xf32>
    %50 = tpu.matmul %47, %49, %cst_59 {dimension_numbers = #tpu.dot_dimension_numbers<[1], [0], [0], [1], [0, 0, 1, 1], [], []>} : vector<256x3xf32>, vector<3x32xf32>, vector<256x32xf32> -> vector<256x32xf32>
    %51 = arith.addf %45, %50 : vector<256x32xf32>
    %c2_60 = arith.constant 2 : index
    %c0_61 = arith.constant 0 : index
    %c0_62 = arith.constant 0 : index
    %52 = vector.load %arg11[%c2_60, %c0_61, %c0_62] : memref<18x18x3xf32, #tpu.memory_space<vmem>>, vector<16x16x3xf32>
    %53 = vector.shape_cast %52 : vector<16x16x3xf32> to vector<256x3xf32>
    %c2_63 = arith.constant 2 : index
    %c0_64 = arith.constant 0 : index
    %c0_65 = arith.constant 0 : index
    %c0_66 = arith.constant 0 : index
    %54 = vector.load %arg4[%c2_63, %c0_64, %c0_65, %c0_66] : memref<3x3x3x32xf32, #tpu.memory_space<vmem>>, vector<1x1x3x32xf32>
    %55 = vector.shape_cast %54 : vector<1x1x3x32xf32> to vector<3x32xf32>
    %cst_67 = arith.constant dense<0.000000e+00> : vector<256x32xf32>
    %56 = tpu.matmul %53, %55, %cst_67 {dimension_numbers = #tpu.dot_dimension_numbers<[1], [0], [0], [1], [0, 0, 1, 1], [], []>} : vector<256x3xf32>, vector<3x32xf32>, vector<256x32xf32> -> vector<256x32xf32>
    %57 = arith.addf %51, %56 : vector<256x32xf32>
    %c2_68 = arith.constant 2 : index
    %c1_69 = arith.constant 1 : index
    %c0_70 = arith.constant 0 : index
    %58 = vector.load %arg11[%c2_68, %c1_69, %c0_70] : memref<18x18x3xf32, #tpu.memory_space<vmem>>, vector<16x16x3xf32>
    %59 = vector.shape_cast %58 : vector<16x16x3xf32> to vector<256x3xf32>
    %c2_71 = arith.constant 2 : index
    %c1_72 = arith.constant 1 : index
    %c0_73 = arith.constant 0 : index
    %c0_74 = arith.constant 0 : index
    %60 = vector.load %arg4[%c2_71, %c1_72, %c0_73, %c0_74] : memref<3x3x3x32xf32, #tpu.memory_space<vmem>>, vector<1x1x3x32xf32>
    %61 = vector.shape_cast %60 : vector<1x1x3x32xf32> to vector<3x32xf32>
    %cst_75 = arith.constant dense<0.000000e+00> : vector<256x32xf32>
    %62 = tpu.matmul %59, %61, %cst_75 {dimension_numbers = #tpu.dot_dimension_numbers<[1], [0], [0], [1], [0, 0, 1, 1], [], []>} : vector<256x3xf32>, vector<3x32xf32>, vector<256x32xf32> -> vector<256x32xf32>
    %63 = arith.addf %57, %62 : vector<256x32xf32>
    %c2_76 = arith.constant 2 : index
    %c2_77 = arith.constant 2 : index
    %c0_78 = arith.constant 0 : index
    %64 = vector.load %arg11[%c2_76, %c2_77, %c0_78] : memref<18x18x3xf32, #tpu.memory_space<vmem>>, vector<16x16x3xf32>
    %65 = vector.shape_cast %64 : vector<16x16x3xf32> to vector<256x3xf32>
    %c2_79 = arith.constant 2 : index
    %c2_80 = arith.constant 2 : index
    %c0_81 = arith.constant 0 : index
    %c0_82 = arith.constant 0 : index
    %66 = vector.load %arg4[%c2_79, %c2_80, %c0_81, %c0_82] : memref<3x3x3x32xf32, #tpu.memory_space<vmem>>, vector<1x1x3x32xf32>
    %67 = vector.shape_cast %66 : vector<1x1x3x32xf32> to vector<3x32xf32>
    %cst_83 = arith.constant dense<0.000000e+00> : vector<256x32xf32>
    %68 = tpu.matmul %65, %67, %cst_83 {dimension_numbers = #tpu.dot_dimension_numbers<[1], [0], [0], [1], [0, 0, 1, 1], [], []>} : vector<256x3xf32>, vector<3x32xf32>, vector<256x32xf32> -> vector<256x32xf32>
    %69 = arith.addf %63, %68 : vector<256x32xf32>
    %c0_84 = arith.constant 0 : index
    %c0_85 = arith.constant 0 : index
    %70 = vector.load %arg5[%c0_84, %c0_85] : memref<1x32xf32, #tpu.memory_space<vmem>>, vector<1x32xf32>
    %71 = vector.shape_cast %70 : vector<1x32xf32> to vector<32xf32>
    %72 = vector.shape_cast %71 : vector<32xf32> to vector<1x32xf32>
    %73 = vector.broadcast %72 : vector<1x32xf32> to vector<256x32xf32>
    %74 = arith.addf %69, %73 : vector<256x32xf32>
    %cst_86 = arith.constant 0.000000e+00 : f32
    %75 = vector.broadcast %cst_86 : f32 to vector<256x32xf32>
    %76 = arith.maximumf %74, %75 : vector<256x32xf32>
    %cst_87 = arith.constant 0.000000e+00 : f32
    %77 = vector.broadcast %cst_87 : f32 to vector<18x18x32xf32>
    %c0_88 = arith.constant 0 : index
    %c0_89 = arith.constant 0 : index
    %c0_90 = arith.constant 0 : index
    %78 = vector.load %arg12[%c0_88, %c0_89, %c0_90] : memref<18x18x32xf32, #tpu.memory_space<vmem>>, vector<18x18x32xf32>
    tpu.vector_store %arg12[%c0_88, %c0_89, %c0_90], %77 {strides = array<i32>} : memref<18x18x32xf32, #tpu.memory_space<vmem>>, vector<18x18x32xf32>,
    %79 = vector.shape_cast %76 : vector<256x32xf32> to vector<16x16x32xf32>
    %c1_91 = arith.constant 1 : index
    %c1_92 = arith.constant 1 : index
    %c0_93 = arith.constant 0 : index
    %80 = vector.load %arg12[%c1_91, %c1_92, %c0_93] : memref<18x18x32xf32, #tpu.memory_space<vmem>>, vector<16x16x32xf32>
    tpu.vector_store %arg12[%c1_91, %c1_92, %c0_93], %79 {strides = array<i32>} : memref<18x18x32xf32, #tpu.memory_space<vmem>>, vector<16x16x32xf32>,
    %cst_94 = arith.constant 0.000000e+00 : f32
    %81 = vector.broadcast %cst_94 : f32 to vector<256x32xf32>
    %c0_95 = arith.constant 0 : index
    %c0_96 = arith.constant 0 : index
    %c0_97 = arith.constant 0 : index
    %82 = vector.load %arg12[%c0_95, %c0_96, %c0_97] : memref<18x18x32xf32, #tpu.memory_space<vmem>>, vector<16x16x32xf32>
    %83 = vector.shape_cast %82 : vector<16x16x32xf32> to vector<256x32xf32>
    %c0_98 = arith.constant 0 : index
    %c0_99 = arith.constant 0 : index
    %c0_100 = arith.constant 0 : index
    %c0_101 = arith.constant 0 : index
    %84 = vector.load %arg6[%c0_98, %c0_99, %c0_100, %c0_101] : memref<3x3x32x32xf32, #tpu.memory_space<vmem>>, vector<1x1x32x32xf32>
    %85 = vector.shape_cast %84 : vector<1x1x32x32xf32> to vector<32x32xf32>
    %cst_102 = arith.constant dense<0.000000e+00> : vector<256x32xf32>
    %86 = tpu.matmul %83, %85, %cst_102 {dimension_numbers = #tpu.dot_dimension_numbers<[1], [0], [0], [1], [0, 0, 1, 1], [], []>} : vector<256x32xf32>, vector<32x32xf32>, vector<256x32xf32> -> vector<256x32xf32>
    %87 = arith.addf %81, %86 : vector<256x32xf32>
    %c0_103 = arith.constant 0 : index
    %c1_104 = arith.constant 1 : index
    %c0_105 = arith.constant 0 : index
    %88 = vector.load %arg12[%c0_103, %c1_104, %c0_105] : memref<18x18x32xf32, #tpu.memory_space<vmem>>, vector<16x16x32xf32>
    %89 = vector.shape_cast %88 : vector<16x16x32xf32> to vector<256x32xf32>
    %c0_106 = arith.constant 0 : index
    %c1_107 = arith.constant 1 : index
    %c0_108 = arith.constant 0 : index
    %c0_109 = arith.constant 0 : index
    %90 = vector.load %arg6[%c0_106, %c1_107, %c0_108, %c0_109] : memref<3x3x32x32xf32, #tpu.memory_space<vmem>>, vector<1x1x32x32xf32>
    %91 = vector.shape_cast %90 : vector<1x1x32x32xf32> to vector<32x32xf32>
    %cst_110 = arith.constant dense<0.000000e+00> : vector<256x32xf32>
    %92 = tpu.matmul %89, %91, %cst_110 {dimension_numbers = #tpu.dot_dimension_numbers<[1], [0], [0], [1], [0, 0, 1, 1], [], []>} : vector<256x32xf32>, vector<32x32xf32>, vector<256x32xf32> -> vector<256x32xf32>
    %93 = arith.addf %87, %92 : vector<256x32xf32>
    %c0_111 = arith.constant 0 : index
    %c2_112 = arith.constant 2 : index
    %c0_113 = arith.constant 0 : index
    %94 = vector.load %arg12[%c0_111, %c2_112, %c0_113] : memref<18x18x32xf32, #tpu.memory_space<vmem>>, vector<16x16x32xf32>
    %95 = vector.shape_cast %94 : vector<16x16x32xf32> to vector<256x32xf32>
    %c0_114 = arith.constant 0 : index
    %c2_115 = arith.constant 2 : index
    %c0_116 = arith.constant 0 : index
    %c0_117 = arith.constant 0 : index
    %96 = vector.load %arg6[%c0_114, %c2_115, %c0_116, %c0_117] : memref<3x3x32x32xf32, #tpu.memory_space<vmem>>, vector<1x1x32x32xf32>
    %97 = vector.shape_cast %96 : vector<1x1x32x32xf32> to vector<32x32xf32>
    %cst_118 = arith.constant dense<0.000000e+00> : vector<256x32xf32>
    %98 = tpu.matmul %95, %97, %cst_118 {dimension_numbers = #tpu.dot_dimension_numbers<[1], [0], [0], [1], [0, 0, 1, 1], [], []>} : vector<256x32xf32>, vector<32x32xf32>, vector<256x32xf32> -> vector<256x32xf32>
    %99 = arith.addf %93, %98 : vector<256x32xf32>
    %c1_119 = arith.constant 1 : index
    %c0_120 = arith.constant 0 : index
    %c0_121 = arith.constant 0 : index
    %100 = vector.load %arg12[%c1_119, %c0_120, %c0_121] : memref<18x18x32xf32, #tpu.memory_space<vmem>>, vector<16x16x32xf32>
    %101 = vector.shape_cast %100 : vector<16x16x32xf32> to vector<256x32xf32>
    %c1_122 = arith.constant 1 : index
    %c0_123 = arith.constant 0 : index
    %c0_124 = arith.constant 0 : index
    %c0_125 = arith.constant 0 : index
    %102 = vector.load %arg6[%c1_122, %c0_123, %c0_124, %c0_125] : memref<3x3x32x32xf32, #tpu.memory_space<vmem>>, vector<1x1x32x32xf32>
    %103 = vector.shape_cast %102 : vector<1x1x32x32xf32> to vector<32x32xf32>
    %cst_126 = arith.constant dense<0.000000e+00> : vector<256x32xf32>
    %104 = tpu.matmul %101, %103, %cst_126 {dimension_numbers = #tpu.dot_dimension_numbers<[1], [0], [0], [1], [0, 0, 1, 1], [], []>} : vector<256x32xf32>, vector<32x32xf32>, vector<256x32xf32> -> vector<256x32xf32>
    %105 = arith.addf %99, %104 : vector<256x32xf32>
    %c1_127 = arith.constant 1 : index
    %c1_128 = arith.constant 1 : index
    %c0_129 = arith.constant 0 : index
    %106 = vector.load %arg12[%c1_127, %c1_128, %c0_129] : memref<18x18x32xf32, #tpu.memory_space<vmem>>, vector<16x16x32xf32>
    %107 = vector.shape_cast %106 : vector<16x16x32xf32> to vector<256x32xf32>
    %c1_130 = arith.constant 1 : index
    %c1_131 = arith.constant 1 : index
    %c0_132 = arith.constant 0 : index
    %c0_133 = arith.constant 0 : index
    %108 = vector.load %arg6[%c1_130, %c1_131, %c0_132, %c0_133] : memref<3x3x32x32xf32, #tpu.memory_space<vmem>>, vector<1x1x32x32xf32>
    %109 = vector.shape_cast %108 : vector<1x1x32x32xf32> to vector<32x32xf32>
    %cst_134 = arith.constant dense<0.000000e+00> : vector<256x32xf32>
    %110 = tpu.matmul %107, %109, %cst_134 {dimension_numbers = #tpu.dot_dimension_numbers<[1], [0], [0], [1], [0, 0, 1, 1], [], []>} : vector<256x32xf32>, vector<32x32xf32>, vector<256x32xf32> -> vector<256x32xf32>
    %111 = arith.addf %105, %110 : vector<256x32xf32>
    %c1_135 = arith.constant 1 : index
    %c2_136 = arith.constant 2 : index
    %c0_137 = arith.constant 0 : index
    %112 = vector.load %arg12[%c1_135, %c2_136, %c0_137] : memref<18x18x32xf32, #tpu.memory_space<vmem>>, vector<16x16x32xf32>
    %113 = vector.shape_cast %112 : vector<16x16x32xf32> to vector<256x32xf32>
    %c1_138 = arith.constant 1 : index
    %c2_139 = arith.constant 2 : index
    %c0_140 = arith.constant 0 : index
    %c0_141 = arith.constant 0 : index
    %114 = vector.load %arg6[%c1_138, %c2_139, %c0_140, %c0_141] : memref<3x3x32x32xf32, #tpu.memory_space<vmem>>, vector<1x1x32x32xf32>
    %115 = vector.shape_cast %114 : vector<1x1x32x32xf32> to vector<32x32xf32>
    %cst_142 = arith.constant dense<0.000000e+00> : vector<256x32xf32>
    %116 = tpu.matmul %113, %115, %cst_142 {dimension_numbers = #tpu.dot_dimension_numbers<[1], [0], [0], [1], [0, 0, 1, 1], [], []>} : vector<256x32xf32>, vector<32x32xf32>, vector<256x32xf32> -> vector<256x32xf32>
    %117 = arith.addf %111, %116 : vector<256x32xf32>
    %c2_143 = arith.constant 2 : index
    %c0_144 = arith.constant 0 : index
    %c0_145 = arith.constant 0 : index
    %118 = vector.load %arg12[%c2_143, %c0_144, %c0_145] : memref<18x18x32xf32, #tpu.memory_space<vmem>>, vector<16x16x32xf32>
    %119 = vector.shape_cast %118 : vector<16x16x32xf32> to vector<256x32xf32>
    %c2_146 = arith.constant 2 : index
    %c0_147 = arith.constant 0 : index
    %c0_148 = arith.constant 0 : index
    %c0_149 = arith.constant 0 : index
    %120 = vector.load %arg6[%c2_146, %c0_147, %c0_148, %c0_149] : memref<3x3x32x32xf32, #tpu.memory_space<vmem>>, vector<1x1x32x32xf32>
    %121 = vector.shape_cast %120 : vector<1x1x32x32xf32> to vector<32x32xf32>
    %cst_150 = arith.constant dense<0.000000e+00> : vector<256x32xf32>
    %122 = tpu.matmul %119, %121, %cst_150 {dimension_numbers = #tpu.dot_dimension_numbers<[1], [0], [0], [1], [0, 0, 1, 1], [], []>} : vector<256x32xf32>, vector<32x32xf32>, vector<256x32xf32> -> vector<256x32xf32>
    %123 = arith.addf %117, %122 : vector<256x32xf32>
    %c2_151 = arith.constant 2 : index
    %c1_152 = arith.constant 1 : index
    %c0_153 = arith.constant 0 : index
    %124 = vector.load %arg12[%c2_151, %c1_152, %c0_153] : memref<18x18x32xf32, #tpu.memory_space<vmem>>, vector<16x16x32xf32>
    %125 = vector.shape_cast %124 : vector<16x16x32xf32> to vector<256x32xf32>
    %c2_154 = arith.constant 2 : index
    %c1_155 = arith.constant 1 : index
    %c0_156 = arith.constant 0 : index
    %c0_157 = arith.constant 0 : index
    %126 = vector.load %arg6[%c2_154, %c1_155, %c0_156, %c0_157] : memref<3x3x32x32xf32, #tpu.memory_space<vmem>>, vector<1x1x32x32xf32>
    %127 = vector.shape_cast %126 : vector<1x1x32x32xf32> to vector<32x32xf32>
    %cst_158 = arith.constant dense<0.000000e+00> : vector<256x32xf32>
    %128 = tpu.matmul %125, %127, %cst_158 {dimension_numbers = #tpu.dot_dimension_numbers<[1], [0], [0], [1], [0, 0, 1, 1], [], []>} : vector<256x32xf32>, vector<32x32xf32>, vector<256x32xf32> -> vector<256x32xf32>
    %129 = arith.addf %123, %128 : vector<256x32xf32>
    %c2_159 = arith.constant 2 : index
    %c2_160 = arith.constant 2 : index
    %c0_161 = arith.constant 0 : index
    %130 = vector.load %arg12[%c2_159, %c2_160, %c0_161] : memref<18x18x32xf32, #tpu.memory_space<vmem>>, vector<16x16x32xf32>
    %131 = vector.shape_cast %130 : vector<16x16x32xf32> to vector<256x32xf32>
    %c2_162 = arith.constant 2 : index
    %c2_163 = arith.constant 2 : index
    %c0_164 = arith.constant 0 : index
    %c0_165 = arith.constant 0 : index
    %132 = vector.load %arg6[%c2_162, %c2_163, %c0_164, %c0_165] : memref<3x3x32x32xf32, #tpu.memory_space<vmem>>, vector<1x1x32x32xf32>
    %133 = vector.shape_cast %132 : vector<1x1x32x32xf32> to vector<32x32xf32>
    %cst_166 = arith.constant dense<0.000000e+00> : vector<256x32xf32>
    %134 = tpu.matmul %131, %133, %cst_166 {dimension_numbers = #tpu.dot_dimension_numbers<[1], [0], [0], [1], [0, 0, 1, 1], [], []>} : vector<256x32xf32>, vector<32x32xf32>, vector<256x32xf32> -> vector<256x32xf32>
    %135 = arith.addf %129, %134 : vector<256x32xf32>
    %c0_167 = arith.constant 0 : index
    %c0_168 = arith.constant 0 : index
    %136 = vector.load %arg7[%c0_167, %c0_168] : memref<1x32xf32, #tpu.memory_space<vmem>>, vector<1x32xf32>
    %137 = vector.shape_cast %136 : vector<1x32xf32> to vector<32xf32>
    %138 = vector.shape_cast %137 : vector<32xf32> to vector<1x32xf32>
    %139 = vector.broadcast %138 : vector<1x32xf32> to vector<256x32xf32>
    %140 = arith.addf %135, %139 : vector<256x32xf32>
    %cst_169 = arith.constant 0.000000e+00 : f32
    %141 = vector.broadcast %cst_169 : f32 to vector<256x32xf32>
    %142 = arith.maximumf %140, %141 : vector<256x32xf32>
    %c0_170 = arith.constant 0 : index
    %c0_171 = arith.constant 0 : index
    %143 = vector.load %arg8[%c0_170, %c0_171] : memref<32x128xf32, #tpu.memory_space<vmem>>, vector<32x128xf32>
    %cst_172 = arith.constant dense<0.000000e+00> : vector<256x128xf32>
    %144 = tpu.matmul %142, %143, %cst_172 {dimension_numbers = #tpu.dot_dimension_numbers<[1], [0], [0], [1], [0, 0, 1, 1], [], []>} : vector<256x32xf32>, vector<32x128xf32>, vector<256x128xf32> -> vector<256x128xf32>
    %c0_173 = arith.constant 0 : index
    %c0_174 = arith.constant 0 : index
    %145 = vector.load %arg9[%c0_173, %c0_174] : memref<1x128xf32, #tpu.memory_space<vmem>>, vector<1x128xf32>
    %146 = vector.shape_cast %145 : vector<1x128xf32> to vector<128xf32>
    %147 = vector.shape_cast %146 : vector<128xf32> to vector<1x128xf32>
    %148 = vector.broadcast %147 : vector<1x128xf32> to vector<256x128xf32>
    %149 = arith.addf %144, %148 : vector<256x128xf32>
    %150 = vector.shape_cast %149 : vector<256x128xf32> to vector<1x16x16x128xf32>
    %c0_175 = arith.constant 0 : index
    %c0_176 = arith.constant 0 : index
    %c0_177 = arith.constant 0 : index
    %c0_178 = arith.constant 0 : index
    %151 = vector.load %arg10[%c0_175, %c0_176, %c0_177, %c0_178] : memref<1x16x16x128xf32, #tpu.memory_space<vmem>>, vector<1x16x16x128xf32>
    tpu.vector_store %arg10[%c0_175, %c0_176, %c0_177, %c0_178], %150 {strides = array<i32>} : memref<1x16x16x128xf32, #tpu.memory_space<vmem>>, vector<1x16x16x128xf32>,
    return
  }
  func.func @transform_0(%arg0: i32) -> (i32, i32, i32, i32) {
    %c0_i32 = arith.constant 0 : i32
    %c0_i32_0 = arith.constant 0 : i32
    %c0_i32_1 = arith.constant 0 : i32
    %c0_i32_2 = arith.constant 0 : i32
    return %arg0, %c0_i32, %c0_i32_0, %c0_i32_1 : i32, i32, i32, i32
  }
  func.func @transform_1(%arg0: i32) -> (i32, i32) {
    %c0_i32 = arith.constant 0 : i32
    %c0_i32_0 = arith.constant 0 : i32
    %c0_i32_1 = arith.constant 0 : i32
    return %c0_i32, %c0_i32_0 : i32, i32
  }
  func.func @transform_2(%arg0: i32) -> (i32, i32) {
    %c0_i32 = arith.constant 0 : i32
    %c0_i32_0 = arith.constant 0 : i32
    %c0_i32_1 = arith.constant 0 : i32
    return %c0_i32, %c0_i32_0 : i32, i32
  }
  func.func @transform_3(%arg0: i32) -> (i32, i32, i32, i32) {
    %c0_i32 = arith.constant 0 : i32
    %c0_i32_0 = arith.constant 0 : i32
    %c0_i32_1 = arith.constant 0 : i32
    %c0_i32_2 = arith.constant 0 : i32
    %c0_i32_3 = arith.constant 0 : i32
    return %c0_i32, %c0_i32_0, %c0_i32_1, %c0_i32_2 : i32, i32, i32, i32
  }
  func.func @transform_4(%arg0: i32) -> (i32, i32) {
    %c0_i32 = arith.constant 0 : i32
    %c0_i32_0 = arith.constant 0 : i32
    %c0_i32_1 = arith.constant 0 : i32
    return %c0_i32, %c0_i32_0 : i32, i32
  }
  func.func @transform_5(%arg0: i32) -> (i32, i32, i32, i32) {
    %c0_i32 = arith.constant 0 : i32
    %c0_i32_0 = arith.constant 0 : i32
    %c0_i32_1 = arith.constant 0 : i32
    %c0_i32_2 = arith.constant 0 : i32
    %c0_i32_3 = arith.constant 0 : i32
    return %c0_i32, %c0_i32_0, %c0_i32_1, %c0_i32_2 : i32, i32, i32, i32
  }
  func.func @transform_6(%arg0: i32) -> (i32, i32) {
    %c0_i32 = arith.constant 0 : i32
    %c0_i32_0 = arith.constant 0 : i32
    %c0_i32_1 = arith.constant 0 : i32
    return %c0_i32, %c0_i32_0 : i32, i32
  }
  func.func @transform_7(%arg0: i32) -> (i32, i32) {
    %c0_i32 = arith.constant 0 : i32
    %c0_i32_0 = arith.constant 0 : i32
    %c0_i32_1 = arith.constant 0 : i32
    return %c0_i32, %c0_i32_0 : i32, i32
  }
  func.func @transform_8(%arg0: i32) -> (i32, i32) {
    %c0_i32 = arith.constant 0 : i32
    %c0_i32_0 = arith.constant 0 : i32
    %c0_i32_1 = arith.constant 0 : i32
    return %c0_i32, %c0_i32_0 : i32, i32
  }
  func.func @transform_9(%arg0: i32) -> (i32, i32, i32, i32) {
    %c0_i32 = arith.constant 0 : i32
    %c0_i32_0 = arith.constant 0 : i32
    %c0_i32_1 = arith.constant 0 : i32
    %c0_i32_2 = arith.constant 0 : i32
    return %arg0, %c0_i32, %c0_i32_0, %c0_i32_1 : i32, i32, i32, i32
  }
}

</mosaic_0001>

<bundles_post_ra>
// kernel: contour_net_forward.1
= control target key start
LH: loop header
LB: loop body
LE: loop exit
PB: predicated region body
PF: predicated region fallthrough
CT: control target
= control target key end

     0   :  { %s11079_s30 = smov 0   ;;  %s13399_s0 = inlined_call_operand.vmem [shape: f32[2,16,16,3], index: 0, kind: input, shape index: {}]   ;;  %s13400_s1 = inlined_call_operand.vmem [shape: f32[1,3], index: 1, kind: input, shape index: {}]   ;;  %s13401_s2 = inlined_call_operand.vmem [shape: f32[1,3], index: 2, kind: input, shape index: {}]   ;;  %s13402_s3 = inlined_call_operand.vmem [shape: f32[3,3,3,32], index: 3, kind: input, shape index: {}]   ;;  %s13403_s4 = inlined_call_operand.vmem [shape: f32[1,32], index: 4, kind: input, shape index: {}]   ;;  %s13404_s5 = inlined_call_operand.vmem [shape: f32[3,3,32,32], index: 5, kind: input, shape index: {}]   ;;  %s13405_s6 = inlined_call_operand.vmem [shape: f32[1,32], index: 6, kind: input, shape index: {}]   ;;  %s13406_s7 = inlined_call_operand.vmem [shape: f32[32,128], index: 7, kind: input, shape index: {}]   ;;  %s13407_s8 = inlined_call_operand.vmem [shape: f32[1,128], index: 8, kind: input, shape index: {}]   ;;  %s13408_s9 = inlined_call_operand.vmem [shape: f32[2,16,16,128], index: 9, kind: output, shape index: {}]  }
   0x1 LB: > { %s8075_s10 = sadd.s32 4294967295, %s11026_s30   ;;  %p8079_p0 = scmp.ge.s32.totalorder %s11026_s30, 1  ;;  %s11026_s30 = sphi %s11079_s30, %s19_s30  }
   0x2   : > { %p287_p1 = scmp.lt.s32.totalorder %s11026_s30, 3 }
   0x4   : > { %p288_p2 = pnand %p8079_p0, %p287_p1 }
   0x6   : > { %291 = sbr.rel (%p288_p2) target bundleno = 1756 (0x6dc), region = 56 }
   0xd   : > { %v11090_v0 = vld [vmem:[%s13402_s3 + $0x4] sm:$0x7]  ;;  %vm695_vm0 = vcmask 1042432   ;;  %vm333_vm1 = vcmask 23552   ;;  %vm336_vm2 = vcmask 17408   ;;  %v13409_v1 = vmov 0.0  }
   0xe   : > { %9407 = vmatprep.subr.msk.mxu0 %vm695_vm0, %v11090_v0  ;;  %334 = vst.msk [vmem:[#allocation2] sm:$0xff] %vm333_vm1, %v13409_v1  ;;  %335 = vst.msk [vmem:[#allocation2 + $0x8] sm:$0xff] %vm333_vm1, %v13409_v1  ;;  %v564_v2 = vld [vmem:[%s13402_s3] sm:$0x7]  ;;  %p323_p3 = scmp.lt.s32.totalorder %s8075_s10, 1  ;;  %10497 = vmatprep.subr.msk.mxu1 %vm695_vm0, %v11090_v0  ;;  %vm4050_vm3 = vcmask 261120  }
   0xf   : > { %338 = vst.msk [vmem:[#allocation2 + $0x18] sm:$0xff] %vm333_vm1, %v13409_v1  ;;  %339 = vst.msk [vmem:[#allocation2 + $0x20] sm:$0xff] %vm333_vm1, %v13409_v1  ;;  %9408 = vmatpush3.msk.msra.mxu0 %vm695_vm0, %v11090_v0  ;;  %10498 = vmatpush3.msk.msra.mxu1 %vm695_vm0, %v11090_v0  ;;  %v11222_v3 = vld [vmem:[%s13400_s1] ss:$0 sm:$0xff]  ;;  %v11242_v8 = vld [vmem:[%s13402_s3 + $0x8] sm:$0x7] }
  0x10   : > { %341 = vst.msk [vmem:[#allocation2 + $0x30] sm:$0xff] %vm333_vm1, %v13409_v1  ;;  %342 = vst.msk [vmem:[#allocation2 + $0x38] sm:$0xff] %vm333_vm1, %v13409_v1  ;;  %9457 = vmatprep.subr.msk.mxu0 %vm695_vm0, %v564_v2  ;;  %s13692_s10 = smov (!%p323_p3, %s8075_s10), 1  ;;  %v11234_v4 = vld [vmem:[%s13401_s2] ss:$0 sm:$0xff]  ;;  %vm4053_vm4 = vcmask 254976  }
  0x11   : > { %344 = vst.msk [vmem:[#allocation2 + $0x48] sm:$0xff] %vm333_vm1, %v13409_v1  ;;  %345 = vst.msk [vmem:[#allocation2 + $0x50] sm:$0xff] %vm333_vm1, %v13409_v1  ;;  %s8748_s15 = sshll.u32 %s13692_s10, 8 }
  0x12   : > { %347 = vst.msk [vmem:[#allocation2 + $0x60] sm:$0xff] %vm333_vm1, %v13409_v1  ;;  %348 = vst.msk [vmem:[#allocation2 + $0x68] sm:$0xff] %vm333_vm1, %v13409_v1  ;;  %s11229_s20 = scalar_lea.vmem %s13399_s0, %s8748_s15  ;;  %s13330_s17 = scalar_lea.vmem %s13408_s9, %s8748_s15 }
  0x13   : > { %350 = vst.msk [vmem:[#allocation2 + $0x78] sm:$0xff] %vm333_vm1, %v13409_v1  ;;  %351 = vst.msk [vmem:[#allocation2 + $0x80] sm:$0xff] %vm333_vm1, %v13409_v1  ;;  %v389_v5 = vld [vmem:[%s11229_s20] sm:$0xff]  ;;  %v390_v6 = vld [vmem:[%s11229_s20 + $0x8] sm:$0xff] }
  0x14   : > { %353 = vst.msk [vmem:[#allocation2 + $0x90] sm:$0xff] %vm333_vm1, %v13409_v1  ;;  %354 = vst.msk [vmem:[#allocation2 + $0x98] sm:$0xff] %vm333_vm1, %v13409_v1  ;;  %v391_v7 = vld [vmem:[%s11229_s20 + $0x10] sm:$0xff]  ;;  %v428_v11 = vsub.f32 %v389_v5, %v11222_v3  ;;  %v429_v12 = vsub.f32 %v390_v6, %v11222_v3  ;;  %v392_v14 = vld [vmem:[%s11229_s20 + $0x18] sm:$0xff] }
  0x15   : > { %356 = vst.msk [vmem:[#allocation2 + $0xa8] sm:$0xff] %vm333_vm1, %v13409_v1  ;;  %357 = vst.msk [vmem:[#allocation2 + $0xb0] sm:$0xff] %vm333_vm1, %v13409_v1  ;;  %v565_v9 = vld [vmem:[#allocation2 + $0x1] sm:$0xff]  ;;  %v430_v13 = vsub.f32 %v391_v7, %v11222_v3  ;;  %v431_v15 = vsub.f32 %v392_v14, %v11222_v3  ;;  %v395_v18 = vld [vmem:[%s11229_s20 + $0x30] sm:$0xff] }
  0x16   : > { %359 = vst.msk [vmem:[#allocation2 + $0xc0] sm:$0xff] %vm333_vm1, %v13409_v1  ;;  %360 = vst.msk [vmem:[#allocation2 + $0xc8] sm:$0xff] %vm333_vm1, %v13409_v1  ;;  %9409 = vmatprep.mubr.msk.f32.mxu0 %vm333_vm1, %v565_v9  ;;  %v393_v16 = vld [vmem:[%s11229_s20 + $0x20] sm:$0xff]  ;;  %v394_v17 = vld [vmem:[%s11229_s20 + $0x28] sm:$0xff]  ;;  %v467_v19 = vmul.f32 %v11234_v4, %v428_v11  ;;  %v468_v20 = vmul.f32 %v11234_v4, %v429_v12  ;;  %v434_v28 = vsub.f32 %v395_v18, %v11222_v3 }
  0x17   : > { %362 = vst.msk [vmem:[#allocation2 + $0xd8] sm:$0xff] %vm333_vm1, %v13409_v1  ;;  %363 = vst.msk [vmem:[#allocation2 + $0xe0] sm:$0xff] %vm333_vm1, %v13409_v1  ;;  %v469_v21 = vmul.f32 %v11234_v4, %v430_v13  ;;  %v432_v22 = vsub.f32 %v393_v16, %v11222_v3  ;;  %v396_v23 = vld [vmem:[%s11229_s20 + $0x38] sm:$0xff]  ;;  %v397_v24 = vld [vmem:[%s11229_s20 + $0x40] sm:$0xff]  ;;  %v470_v26 = vmul.f32 %v11234_v4, %v431_v15 }
  0x18   : > { %365 = vst.msk [vmem:[#allocation2 + $0xf0] sm:$0xff] %vm333_vm1, %v13409_v1  ;;  %366 = vst.msk [vmem:[#allocation2 + $0xf8] sm:$0xff] %vm333_vm1, %v13409_v1  ;;  %v398_v25 = vld [vmem:[%s11229_s20 + $0x48] sm:$0xff]  ;;  %v433_v27 = vsub.f32 %v394_v17, %v11222_v3  ;;  %v435_v29 = vsub.f32 %v396_v23, %v11222_v3  ;;  %v399_v30 = vld [vmem:[%s11229_s20 + $0x50] sm:$0xff]  ;;  %v436_v34 = vsub.f32 %v397_v24, %v11222_v3 }
  0x19   : > { %368 = vst.msk [vmem:[#allocation2 + $0x108] sm:$0xff] %vm333_vm1, %v13409_v1  ;;  %369 = vst.msk [vmem:[#allocation2 + $0x110] sm:$0xff] %vm333_vm1, %v13409_v1  ;;  %v400_v31 = vld [vmem:[%s11229_s20 + $0x58] sm:$0xff]  ;;  %v401_v32 = vld [vmem:[%s11229_s20 + $0x60] sm:$0xff]  ;;  %v471_v33 = vmul.f32 %v11234_v4, %v432_v22  ;;  %v437_v35 = vsub.f32 %v398_v25, %v11222_v3  ;;  %v438_v36 = vsub.f32 %v399_v30, %v11222_v3 }
  0x1a   : > { %371 = vst.msk [vmem:[#allocation2 + $0x120] sm:$0xff] %vm333_vm1, %v13409_v1  ;;  %372 = vst.msk [vmem:[#allocation2 + $0x128] sm:$0xff] %vm333_vm1, %v13409_v1  ;;  %v402_v37 = vld [vmem:[%s11229_s20 + $0x68] sm:$0xff]  ;;  %v472_v38 = vmul.f32 %v11234_v4, %v433_v27  ;;  %v473_v39 = vmul.f32 %v11234_v4, %v434_v28  ;;  %v474_v40 = vmul.f32 %v11234_v4, %v435_v29  ;;  %v403_v42 = vld [vmem:[%s11229_s20 + $0x70] sm:$0xff] }
  0x1b   : > { %374 = vst.msk [vmem:[#allocation2 + $0x138] sm:$0xff] %vm333_vm1, %v13409_v1  ;;  %375 = vst.msk [vmem:[#allocation2 + $0x140] sm:$0xff] %vm333_vm1, %v13409_v1  ;;  %v439_v41 = vsub.f32 %v400_v31, %v11222_v3  ;;  %v404_v43 = vld [vmem:[%s11229_s20 + $0x78] sm:$0xff]  ;;  %v405_v44 = vld [vmem:[%s11229_s20 + $0x80] sm:$0xff]  ;;  %v475_v45 = vmul.f32 %v11234_v4, %v436_v34  ;;  %v476_v46 = vmul.f32 %v11234_v4, %v437_v35 }
  0x1c   : > { %377 = vst.msk [vmem:[#allocation2 + $0x150] sm:$0xff] %vm333_vm1, %v13409_v1  ;;  %378 = vst.msk [vmem:[#allocation2 + $0x158] sm:$0xff] %vm333_vm1, %v13409_v1  ;;  %v477_v47 = vmul.f32 %v11234_v4, %v438_v36  ;;  %v440_v48 = vsub.f32 %v401_v32, %v11222_v3  ;;  %v406_v49 = vld [vmem:[%s11229_s20 + $0x88] sm:$0xff]  ;;  %v407_v50 = vld [vmem:[%s11229_s20 + $0x90] sm:$0xff]  ;;  %v441_v53 = vsub.f32 %v402_v37, %v11222_v3 }
  0x1d   : > { %380 = vst.msk [vmem:[#allocation2 + $0x168] sm:$0xff] %vm333_vm1, %v13409_v1  ;;  %381 = vst.msk [vmem:[#allocation2 + $0x170] sm:$0xff] %vm333_vm1, %v13409_v1  ;;  %v408_v51 = vld [vmem:[%s11229_s20 + $0x98] sm:$0xff]  ;;  %v478_v52 = vmul.f32 %v11234_v4, %v439_v41  ;;  %v442_v54 = vsub.f32 %v403_v42, %v11222_v3  ;;  %v443_v55 = vsub.f32 %v404_v43, %v11222_v3  ;;  %v409_v56 = vld [vmem:[%s11229_s20 + $0xa0] sm:$0xff] }
  0x1e   : > { %383 = vst.msk [vmem:[#allocation2 + $0x180] sm:$0xff] %vm333_vm1, %v13409_v1  ;;  %384 = vst.msk [vmem:[#allocation2 + $0x188] sm:$0xff] %vm333_vm1, %v13409_v1  ;;  %v479_v57 = vmul.f32 %v11234_v4, %v440_v48  ;;  %v444_v58 = vsub.f32 %v405_v44, %v11222_v3  ;;  %v445_v59 = vsub.f32 %v406_v49, %v11222_v3  ;;  %v410_v61 = vld [vmem:[%s11229_s20 + $0xa8] sm:$0xff]  ;;  %v411_v62 = vld [vmem:[%s11229_s20 + $0xb0] sm:$0xff] }
  0x1f   : > { %386 = vst.msk [vmem:[#allocation2 + $0x198] sm:$0xff] %vm333_vm1, %v13409_v1  ;;  %387 = vst.msk [vmem:[#allocation2 + $0x1a0] sm:$0xff] %vm333_vm1, %v13409_v1  ;;  %v446_v60 = vsub.f32 %v407_v50, %v11222_v3  ;;  %v412_v63 = vld [vmem:[%s11229_s20 + $0xb8] sm:$0xff]  ;;  %v480_v0 = vmul.f32 %v11234_v4, %v441_v53  ;;  %v482_v5 = vmul.f32 %v11234_v4, %v443_v55  ;;  %v413_v7 = vld [vmem:[%s11229_s20 + $0xc0] sm:$0xff] }
  0x20   : > { %337 = vst.msk [vmem:[#allocation2 + $0x10] sm:$0x3] %vm336_vm2, %v13409_v1  ;;  %340 = vst.msk [vmem:[#allocation2 + $0x28] sm:$0x3] %vm336_vm2, %v13409_v1  ;;  %v447_v6 = vsub.f32 %v408_v51, %v11222_v3  ;;  %v414_v9 = vld [vmem:[%s11229_s20 + $0xc8] sm:$0xff]  ;;  %v483_v11 = vmul.f32 %v11234_v4, %v444_v58  ;;  %v484_v12 = vmul.f32 %v11234_v4, %v445_v59  ;;  %v416_v15 = vld [vmem:[%s11229_s20 + $0xd8] sm:$0xff] }
  0x21   : > { %343 = vst.msk [vmem:[#allocation2 + $0x40] sm:$0x3] %vm336_vm2, %v13409_v1  ;;  %346 = vst.msk [vmem:[#allocation2 + $0x58] sm:$0x3] %vm336_vm2, %v13409_v1  ;;  %v485_v13 = vmul.f32 %v11234_v4, %v446_v60  ;;  %v448_v14 = vsub.f32 %v409_v56, %v11222_v3  ;;  %v417_v16 = vld [vmem:[%s11229_s20 + $0xe0] sm:$0xff]  ;;  %v450_v22 = vsub.f32 %v411_v62, %v11222_v3  ;;  %v418_v28 = vld [vmem:[%s11229_s20 + $0xe8] sm:$0xff] }
  0x22   : > { %349 = vst.msk [vmem:[#allocation2 + $0x70] sm:$0x3] %vm336_vm2, %v13409_v1  ;;  %352 = vst.msk [vmem:[#allocation2 + $0x88] sm:$0x3] %vm336_vm2, %v13409_v1  ;;  %v451_v23 = vsub.f32 %v412_v63, %v11222_v3  ;;  %v452_v25 = vsub.f32 %v413_v7, %v11222_v3  ;;  %v455_v32 = vsub.f32 %v416_v15, %v11222_v3  ;;  %v533_v53 = vld [vmem:[#allocation2 + $0x8] sm:$0xff] }
  0x23   : > { %355 = vst.msk [vmem:[#allocation2 + $0xa0] sm:$0x3] %vm336_vm2, %v13409_v1  ;;  %358 = vst.msk [vmem:[#allocation2 + $0xb8] sm:$0x3] %vm336_vm2, %v13409_v1  ;;  %v487_v24 = vmul.f32 %v11234_v4, %v448_v14  ;;  %v489_v30 = vmul.f32 %v11234_v4, %v450_v22  ;;  %v456_v37 = vsub.f32 %v417_v16, %v11222_v3  ;;  %v11428_v55 = vld [vmem:[%s13402_s3 + $0xc] sm:$0x7] }
  0x24   : > { %361 = vst.msk [vmem:[#allocation2 + $0xd0] sm:$0x3] %vm336_vm2, %v13409_v1  ;;  %364 = vst.msk [vmem:[#allocation2 + $0xe8] sm:$0x3] %vm336_vm2, %v13409_v1  ;;  %v490_v31 = vmul.f32 %v11234_v4, %v451_v23  ;;  %v491_v34 = vmul.f32 %v11234_v4, %v452_v25  ;;  %v419_v22 = vld [vmem:[%s11229_s20 + $0xf0] sm:$0xff] }
  0x25   : > { %367 = vst.msk [vmem:[#allocation2 + $0x100] sm:$0x3] %vm336_vm2, %v13409_v1  ;;  %370 = vst.msk [vmem:[#allocation2 + $0x118] sm:$0x3] %vm336_vm2, %v13409_v1  ;;  %v495_v41 = vmul.f32 %v11234_v4, %v456_v37  ;;  %v458_v23 = vsub.f32 %v419_v22, %v11222_v3 }
  0x26   : > { %373 = vst.msk [vmem:[#allocation2 + $0x130] sm:$0x3] %vm336_vm2, %v13409_v1  ;;  %376 = vst.msk [vmem:[#allocation2 + $0x148] sm:$0x3] %vm336_vm2, %v13409_v1 }
  0x27   : > { %379 = vst.msk [vmem:[#allocation2 + $0x160] sm:$0x3] %vm336_vm2, %v13409_v1  ;;  %382 = vst.msk [vmem:[#allocation2 + $0x178] sm:$0x3] %vm336_vm2, %v13409_v1  ;;  %v566_v10 = vld [vmem:[#allocation2 + $0x9] sm:$0xff] }
  0x28   : > { %385 = vst.msk [vmem:[#allocation2 + $0x190] sm:$0x3] %vm336_vm2, %v13409_v1  ;;  %388 = vst.msk [vmem:[#allocation2 + $0x1a8] sm:$0x3] %vm336_vm2, %v13409_v1  ;;  %9410 = vmatmul.mubr.msk.f32.vlgmr.msra.gmra.mrb[0].mxu0 %vm333_vm1, %v566_v10  ;;  %v415_v10 = vld [vmem:[%s11229_s20 + $0xd0] sm:$0xff] }
  0x29   : > { %9458 = vmatpush3.msk.msra.mxu0 %vm695_vm0, %v564_v2  ;;  %500 = vst.msk [vmem:[#allocation2 + $0x19] sm:$0xff] %vm333_vm1, %v467_v19  ;;  %501 = vst.msk [vmem:[#allocation2 + $0x21] sm:$0xff] %vm333_vm1, %v468_v20  ;;  %v481_v2 = vmul.f32 %v11234_v4, %v442_v54  ;;  %v486_v20 = vmul.f32 %v11234_v4, %v447_v6  ;;  %v454_v27 = vsub.f32 %v415_v10, %v11222_v3 }
  0x2a   : > { %502 = vst.msk [vmem:[#allocation2 + $0x31] sm:$0xff] %vm333_vm1, %v469_v21  ;;  %9507 = vmatprep.subr.msk.mxu0 %vm695_vm0, %v11242_v8  ;;  %503 = vst.msk [vmem:[#allocation2 + $0x39] sm:$0xff] %vm333_vm1, %v470_v26  ;;  %v449_v21 = vsub.f32 %v410_v61, %v11222_v3  ;;  %v453_v26 = vsub.f32 %v414_v9, %v11222_v3 }
  0x2b   : > { %504 = vst.msk [vmem:[#allocation2 + $0x49] sm:$0xff] %vm333_vm1, %v471_v33  ;;  %505 = vst.msk [vmem:[#allocation2 + $0x51] sm:$0xff] %vm333_vm1, %v472_v38  ;;  %v493_v36 = vmul.f32 %v11234_v4, %v454_v27  ;;  %v497_v27 = vmul.f32 %v11234_v4, %v458_v23 }
  0x2c   : > { %506 = vst.msk [vmem:[#allocation2 + $0x61] sm:$0xff] %vm333_vm1, %v473_v39  ;;  %507 = vst.msk [vmem:[#allocation2 + $0x69] sm:$0xff] %vm333_vm1, %v474_v40  ;;  %v488_v29 = vmul.f32 %v11234_v4, %v449_v21  ;;  %v492_v35 = vmul.f32 %v11234_v4, %v453_v26  ;;  %v494_v39 = vmul.f32 %v11234_v4, %v455_v32  ;;  %v1249_v32 = vld [vmem:[#allocation2 + $0xa] sm:$0xff] }
  0x2d   : > { %508 = vst.msk [vmem:[#allocation2 + $0x79] sm:$0xff] %vm333_vm1, %v475_v45  ;;  %509 = vst.msk [vmem:[#allocation2 + $0x81] sm:$0xff] %vm333_vm1, %v476_v46  ;;  %v457_v40 = vsub.f32 %v418_v28, %v11222_v3 }
  0x2e   : > { %510 = vst.msk [vmem:[#allocation2 + $0x91] sm:$0xff] %vm333_vm1, %v477_v47  ;;  %511 = vst.msk [vmem:[#allocation2 + $0x99] sm:$0xff] %vm333_vm1, %v478_v52  ;;  %v532_v52 = vld [vmem:[#allocation2] sm:$0xff] }
  0x2f   : > { %512 = vst.msk [vmem:[#allocation2 + $0xa9] sm:$0xff] %vm333_vm1, %v479_v57  ;;  %513 = vst.msk [vmem:[#allocation2 + $0xb1] sm:$0xff] %vm333_vm1, %v480_v0  ;;  %v496_v42 = vmul.f32 %v11234_v4, %v457_v40 }
  0x30   : > { %v11328_v17 = vld [vmem:[#allocation2 + $0x19] sm:$0xff]  ;;  %v11330_v18 = vld [vmem:[#allocation2 + $0x21] sm:$0xff]  ;;  %514 = vst.msk [vmem:[#allocation2 + $0xc1] sm:$0xff] %vm333_vm1, %v481_v2  ;;  %515 = vst.msk [vmem:[#allocation2 + $0xc9] sm:$0xff] %vm333_vm1, %v482_v5 }
  0x31   : > { %v11332_v19 = vld [vmem:[#allocation2 + $0x31] sm:$0xff]  ;;  %9412 = vmatprep.mubr.msk.f32.mxu0 %vm333_vm1, %v11328_v17  ;;  %516 = vst.msk [vmem:[#allocation2 + $0xd9] sm:$0xff] %vm333_vm1, %v483_v11  ;;  %517 = vst.msk [vmem:[#allocation2 + $0xe1] sm:$0xff] %vm333_vm1, %v484_v12  ;;  %v11360_v33 = vld [vmem:[#allocation2 + $0x39] sm:$0xff] }
  0x32   : > { %518 = vst.msk [vmem:[#allocation2 + $0xf1] sm:$0xff] %vm333_vm1, %v485_v13  ;;  %9413 = vmatmul.mubr.msk.f32.gmra.mrb[2].mxu0 %vm333_vm1, %v11330_v18  ;;  %519 = vst.msk [vmem:[#allocation2 + $0xf9] sm:$0xff] %vm333_vm1, %v486_v20  ;;  %v11367_v38 = vld [vmem:[#allocation2 + $0x49] sm:$0xff]  ;;  %v11384_v43 = vld [vmem:[#allocation2 + $0x51] sm:$0xff] }
  0x33   : > { %9415 = vmatprep.mubr.msk.f32.mxu0 %vm333_vm1, %v11332_v19  ;;  %520 = vst.msk [vmem:[#allocation2 + $0x109] sm:$0xff] %vm333_vm1, %v487_v24  ;;  %521 = vst.msk [vmem:[#allocation2 + $0x111] sm:$0xff] %vm333_vm1, %v488_v29  ;;  %v11387_v44 = vld [vmem:[#allocation2 + $0x61] sm:$0xff]  ;;  %v11394_v45 = vld [vmem:[#allocation2 + $0x69] sm:$0xff] }
  0x34   : > { %522 = vst.msk [vmem:[#allocation2 + $0x121] sm:$0xff] %vm333_vm1, %v489_v30  ;;  %523 = vst.msk [vmem:[#allocation2 + $0x129] sm:$0xff] %vm333_vm1, %v490_v31  ;;  %v11396_v46 = vld [vmem:[#allocation2 + $0x79] sm:$0xff]  ;;  %v11402_v47 = vld [vmem:[#allocation2 + $0x81] sm:$0xff] }
  0x35   : > { %524 = vst.msk [vmem:[#allocation2 + $0x139] sm:$0xff] %vm333_vm1, %v491_v34  ;;  %525 = vst.msk [vmem:[#allocation2 + $0x141] sm:$0xff] %vm333_vm1, %v492_v35  ;;  %v11404_v48 = vld [vmem:[#allocation2 + $0x91] sm:$0xff]  ;;  %v11410_v49 = vld [vmem:[#allocation2 + $0x99] sm:$0xff] }
  0x36   : > { %526 = vst.msk [vmem:[#allocation2 + $0x151] sm:$0xff] %vm333_vm1, %v493_v36  ;;  %9416 = vmatmul.mubr.msk.f32.gmra.mrb[4].mxu0 %vm333_vm1, %v11360_v33  ;;  %527 = vst.msk [vmem:[#allocation2 + $0x159] sm:$0xff] %vm333_vm1, %v494_v39  ;;  %v11412_v50 = vld [vmem:[#allocation2 + $0xa9] sm:$0xff]  ;;  %v11418_v51 = vld [vmem:[#allocation2 + $0xb1] sm:$0xff] }
  0x37   : > { %9418 = vmatprep.mubr.msk.f32.mxu0 %vm333_vm1, %v11367_v38  ;;  %528 = vst.msk [vmem:[#allocation2 + $0x169] sm:$0xff] %vm333_vm1, %v495_v41  ;;  %529 = vst.msk [vmem:[#allocation2 + $0x171] sm:$0xff] %vm333_vm1, %v496_v42  ;;  %v11423_v54 = vld [vmem:[#allocation2 + $0x18] sm:$0xff]  ;;  %v11435_v56 = vld [vmem:[#allocation2 + $0x20] sm:$0xff] }
  0x38   : > { %v11437_v57 = vld [vmem:[#allocation2 + $0x30] sm:$0xff]  ;;  %v11445_v58 = vld [vmem:[#allocation2 + $0x38] sm:$0xff]  ;;  %v11447_v59 = vld [vmem:[#allocation2 + $0x48] sm:$0xff]  ;;  %530 = vst.msk [vmem:[#allocation2 + $0x181] sm:$0xff] %vm333_vm1, %v497_v27 }
  0x39   : > { %v11455_v60 = vld [vmem:[#allocation2 + $0x60] sm:$0xff]  ;;  %v11461_v61 = vld [vmem:[#allocation2 + $0x68] sm:$0xff]  ;;  %v11463_v62 = vld [vmem:[#allocation2 + $0x78] sm:$0xff] }
  0x3a   : > { %9419 = vmatmul.mubr.msk.f32.gmra.mrb[6].mxu0 %vm333_vm1, %v11384_v43  ;;  %v11469_v63 = vld [vmem:[#allocation2 + $0x80] sm:$0xff]  ;;  %v11471_v0 = vld [vmem:[#allocation2 + $0x90] sm:$0xff]  ;;  %v11477_v2 = vld [vmem:[#allocation2 + $0x98] sm:$0xff] }
  0x3b   : > { %9421 = vmatprep.mubr.msk.f32.mxu0 %vm333_vm1, %v11387_v44  ;;  %v11479_v5 = vld [vmem:[#allocation2 + $0xa8] sm:$0xff]  ;;  %v11485_v6 = vld [vmem:[#allocation2 + $0xb0] sm:$0xff]  ;;  %v11487_v7 = vld [vmem:[#allocation2 + $0xc0] sm:$0xff] }
  0x3c   : > { %v11493_v9 = vld [vmem:[#allocation2 + $0xc8] sm:$0xff]  ;;  %v11495_v10 = vld [vmem:[#allocation2 + $0xd8] sm:$0xff]  ;;  %v11501_v11 = vld [vmem:[#allocation2 + $0xe0] sm:$0xff] }
  0x3d   : > { %v11503_v12 = vld [vmem:[#allocation2 + $0xf0] sm:$0xff]  ;;  %v11509_v13 = vld [vmem:[#allocation2 + $0xf8] sm:$0xff]  ;;  %v11511_v14 = vld [vmem:[#allocation2 + $0x108] sm:$0xff] }
  0x3e   : > { %9422 = vmatmul.mubr.msk.f32.gmra.mrb[8].mxu0 %vm333_vm1, %v11394_v45  ;;  %v11517_v15 = vld [vmem:[#allocation2 + $0x110] sm:$0xff]  ;;  %v11519_v16 = vld [vmem:[#allocation2 + $0x120] sm:$0xff]  ;;  %v11525_v20 = vld [vmem:[#allocation2 + $0x128] sm:$0xff] }
  0x3f   : > { %9424 = vmatprep.mubr.msk.f32.mxu0 %vm333_vm1, %v11396_v46  ;;  %v11527_v21 = vld [vmem:[#allocation2 + $0x138] sm:$0xff]  ;;  %v11537_v26 = vld [vmem:[#allocation2 + $0x140] sm:$0xff]  ;;  %v11540_v28 = vld [vmem:[#allocation2 + $0x150] sm:$0xff] }
  0x40   : > { %v420_v24 = vld [vmem:[%s11229_s20 + $0xf8] sm:$0xff]  ;;  %v11551_v30 = vld [vmem:[#allocation2 + $0x168] sm:$0xff]  ;;  %v11567_v35 = vld [vmem:[%s13402_s3 + $0x10] sm:$0x7] }
  0x41   : > { %v459_v25 = vsub.f32 %v420_v24, %v11222_v3  ;;  %v11549_v3 = vld [vmem:[#allocation2 + $0x158] sm:$0xff]  ;;  %v1248_v31 = vld [vmem:[#allocation2 + $0x2] sm:$0xff]  ;;  %v11586_v40 = vld [vmem:[#allocation2 + $0x4a] sm:$0xff] }
  0x42   : > { %9425 = vmatmul.mubr.msk.f32.gmra.mrb[10].mxu0 %vm333_vm1, %v11402_v47  ;;  %v11562_v34 = vld [vmem:[#allocation2 + $0x1a] sm:$0xff]  ;;  %v11574_v36 = vld [vmem:[#allocation2 + $0x22] sm:$0xff]  ;;  %v11576_v37 = vld [vmem:[#allocation2 + $0x32] sm:$0xff]  ;;  %13538 = vst [vmem:[#allocation8_spill] sm:$0xff] %v11586_v40 }
  0x43   : > { %9427 = vmatprep.mubr.msk.f32.mxu0 %vm333_vm1, %v11404_v48  ;;  %v498_v29 = vmul.f32 %v11234_v4, %v459_v25  ;;  %v11557_v4 = vld [vmem:[#allocation2 + $0x170] sm:$0xff]  ;;  %13534 = vst [vmem:[#allocation4_spill] sm:$0xff] %v11562_v34  ;;  %13535 = vst [vmem:[#allocation5_spill] sm:$0xff] %v11574_v36  ;;  %v11584_v39 = vld [vmem:[#allocation2 + $0x3a] sm:$0xff] }
  0x44   : > { %13536 = vst [vmem:[#allocation6_spill] sm:$0xff] %v11576_v37  ;;  %13537 = vst [vmem:[#allocation7_spill] sm:$0xff] %v11584_v39  ;;  %v11592_v41 = vld [vmem:[#allocation2 + $0x52] sm:$0xff]  ;;  %v11594_v42 = vld [vmem:[#allocation2 + $0x62] sm:$0xff] }
  0x45   : > { %531 = vst.msk [vmem:[#allocation2 + $0x189] sm:$0xff] %vm333_vm1, %v498_v29  ;;  %13539 = vst [vmem:[#allocation9_spill] sm:$0xff] %v11592_v41  ;;  %v11610_v22 = vld [vmem:[#allocation2 + $0x92] sm:$0xff]  ;;  %v11616_v23 = vld [vmem:[#allocation2 + $0x9a] sm:$0xff] }
  0x46   : > { %9428 = vmatmul.mubr.msk.f32.gmra.mrb[12].mxu0 %vm333_vm1, %v11410_v49  ;;  %13540 = vst [vmem:[#allocation10_spill] sm:$0xff] %v11594_v42  ;;  %13544 = vst [vmem:[#allocation14_spill] sm:$0xff] %v11610_v22  ;;  %v11618_v24 = vld [vmem:[#allocation2 + $0xaa] sm:$0xff]  ;;  %v11622_v25 = vld [vmem:[#allocation2 + $0xc1] sm:$0xff] }
  0x47   : > { %9430 = vmatprep.mubr.msk.f32.mxu0 %vm333_vm1, %v11412_v50  ;;  %13545 = vst [vmem:[#allocation15_spill] sm:$0xff] %v11616_v23  ;;  %13546 = vst [vmem:[#allocation16_spill] sm:$0xff] %v11618_v24  ;;  %v11626_v27 = vld [vmem:[#allocation2 + $0xb2] sm:$0xff]  ;;  %v11628_v29 = vld [vmem:[#allocation2 + $0xc9] sm:$0xff]  ;;  %9433 = vmatprep.mubr.msk.f32.mxu1 %vm333_vm1, %v11622_v25 }
  0x48   : > { %13547 = vst [vmem:[#allocation17_spill] sm:$0xff] %v11626_v27  ;;  %9434 = vmatmul.mubr.msk.f32.vlgmr.msra.gmra.mrb[0].mxu1 %vm333_vm1, %v11628_v29  ;;  %v11642_v1 = vld [vmem:[#allocation2 + $0xca] sm:$0xff] }
  0x49   : > { %13549 = vst [vmem:[#allocation19_spill] sm:$0xff] %v11642_v1 }
  0x4a   : > { %9431 = vmatmul.mubr.msk.f32.gmra.mrb[14].mxu0 %vm333_vm1, %v11418_v51 }
  0x4b   : > { %9459 = vmatprep.mubr.msk.f32.mxu0 %vm333_vm1, %v532_v52  ;;  %v11600_v52 = vld [vmem:[#allocation2 + $0x6a] sm:$0xff] }
  0x4c   : > { %13541 = vst [vmem:[#allocation11_spill] sm:$0xff] %v11600_v52 }
  0x4e   : > { %9460 = vmatmul.mubr.msk.f32.vlgmr.msra.gmra.mrb[0].mxu0 %vm333_vm1, %v533_v53  ;;  %v11602_v53 = vld [vmem:[#allocation2 + $0x7a] sm:$0xff] }
  0x4f   : > { %9508 = vmatpush3.msk.msra.mxu0 %vm695_vm0, %v11242_v8  ;;  %9462 = vmatprep.mubr.msk.f32.mxu0 %vm333_vm1, %v11423_v54  ;;  %v11453_v8 = vld [vmem:[#allocation2 + $0x50] sm:$0xff]  ;;  %13542 = vst [vmem:[#allocation12_spill] sm:$0xff] %v11602_v53 }
  0x50   : > { %9557 = vmatprep.subr.msk.mxu0 %vm695_vm0, %v11428_v55 }
  0x52   : > { %9463 = vmatmul.mubr.msk.f32.gmra.mrb[2].mxu0 %vm333_vm1, %v11435_v56 }
  0x53   : > { %9465 = vmatprep.mubr.msk.f32.mxu0 %vm333_vm1, %v11437_v57 }
  0x56   : > { %9466 = vmatmul.mubr.msk.f32.gmra.mrb[4].mxu0 %vm333_vm1, %v11445_v58 }
  0x57   : > { %9468 = vmatprep.mubr.msk.f32.mxu0 %vm333_vm1, %v11447_v59 }
  0x5a   : > { %9469 = vmatmul.mubr.msk.f32.gmra.mrb[6].mxu0 %vm333_vm1, %v11453_v8 }
  0x5b   : > { %9471 = vmatprep.mubr.msk.f32.mxu0 %vm333_vm1, %v11455_v60 }
  0x5e   : > { %9472 = vmatmul.mubr.msk.f32.gmra.mrb[8].mxu0 %vm333_vm1, %v11461_v61 }
  0x5f   : > { %9474 = vmatprep.mubr.msk.f32.mxu0 %vm333_vm1, %v11463_v62 }
  0x62   : > { %9475 = vmatmul.mubr.msk.f32.gmra.mrb[10].mxu0 %vm333_vm1, %v11469_v63 }
  0x63   : > { %9477 = vmatprep.mubr.msk.f32.mxu0 %vm333_vm1, %v11471_v0 }
  0x66   : > { %9478 = vmatmul.mubr.msk.f32.gmra.mrb[12].mxu0 %vm333_vm1, %v11477_v2 }
  0x67   : > { %9480 = vmatprep.mubr.msk.f32.mxu0 %vm333_vm1, %v11479_v5 }
  0x6a   : > { %9481 = vmatmul.mubr.msk.f32.gmra.mrb[14].mxu0 %vm333_vm1, %v11485_v6 }
  0x6b   : > { %9483 = vmatprep.mubr.msk.f32.mxu0 %vm333_vm1, %v11487_v7 }
  0x6e   : > { %9484 = vmatmul.mubr.msk.f32.gmra.mrb[16].mxu0 %vm333_vm1, %v11493_v9 }
  0x6f   : > { %9486 = vmatprep.mubr.msk.f32.mxu0 %vm333_vm1, %v11495_v10 }
  0x72   : > { %9487 = vmatmul.mubr.msk.f32.gmra.mrb[18].mxu0 %vm333_vm1, %v11501_v11 }
  0x73   : > { %9489 = vmatprep.mubr.msk.f32.mxu0 %vm333_vm1, %v11503_v12 }
  0x76   : > { %9490 = vmatmul.mubr.msk.f32.gmra.mrb[20].mxu0 %vm333_vm1, %v11509_v13 }
  0x77   : > { %9492 = vmatprep.mubr.msk.f32.mxu0 %vm333_vm1, %v11511_v14 }
  0x7a   : > { %9493 = vmatmul.mubr.msk.f32.gmra.mrb[22].mxu0 %vm333_vm1, %v11517_v15 }
  0x7b   : > { %9495 = vmatprep.mubr.msk.f32.mxu0 %vm333_vm1, %v11519_v16 }
  0x7e   : > { %9496 = vmatmul.mubr.msk.f32.gmra.mrb[24].mxu0 %vm333_vm1, %v11525_v20 }
  0x7f   : > { %9498 = vmatprep.mubr.msk.f32.mxu0 %vm333_vm1, %v11527_v21 }
  0x82   : > { %9499 = vmatmul.mubr.msk.f32.gmra.mrb[26].mxu0 %vm333_vm1, %v11537_v26 }
  0x83   : > { %9501 = vmatprep.mubr.msk.f32.mxu0 %vm333_vm1, %v11540_v28 }
  0x86   : > { %9502 = vmatmul.mubr.msk.f32.gmra.mrb[28].mxu0 %vm333_vm1, %v11549_v3 }
  0x87   : > { %9504 = vmatprep.mubr.msk.f32.mxu0 %vm333_vm1, %v11551_v30 }
  0x8a   : > { %9505 = vmatmul.mubr.msk.f32.gmra.mrb[30].mxu0 %vm333_vm1, %v11557_v4 }
  0x8b   : > { %9509 = vmatprep.mubr.msk.f32.mxu0 %vm333_vm1, %v1248_v31  ;;  %v11632_v31 = vld [vmem:[#allocation2 + $0xc2] sm:$0xff] }
  0x8c   : > { %13548 = vst [vmem:[#allocation18_spill] sm:$0xff] %v11632_v31 }
  0x8e   : > { %9510 = vmatmul.mubr.msk.f32.vlgmr.msra.gmra.mrb[0].mxu0 %vm333_vm1, %v1249_v32  ;;  %v11638_v32 = vld [vmem:[#allocation2 + $0xd9] sm:$0xff] }
  0x8f   : > { %9558 = vmatpush3.msk.msra.mxu0 %vm695_vm0, %v11428_v55  ;;  %9512 = vmatprep.mubr.msk.f32.mxu0 %vm333_vm1, %v11562_v34  ;;  %v11608_v55 = vld [vmem:[#allocation2 + $0x82] sm:$0xff]  ;;  %v11740_v34 = vld [vmem:[#allocation2 + $0x171] sm:$0xff] }
  0x90   : > { %9607 = vmatprep.subr.msk.mxu0 %vm695_vm0, %v11567_v35  ;;  %13543 = vst [vmem:[#allocation13_spill] sm:$0xff] %v11608_v55  ;;  %9436 = vmatprep.mubr.msk.f32.mxu1 %vm333_vm1, %v11638_v32 }
  0x92   : > { %9513 = vmatmul.mubr.msk.f32.gmra.mrb[2].mxu0 %vm333_vm1, %v11574_v36  ;;  %v11728_v36 = vld [vmem:[#allocation2 + $0x152] sm:$0xff] }
  0x93   : > { %9515 = vmatprep.mubr.msk.f32.mxu0 %vm333_vm1, %v11576_v37  ;;  %v11724_v37 = vld [vmem:[#allocation2 + $0x159] sm:$0xff]  ;;  %13561 = vst [vmem:[#allocation31_spill] sm:$0xff] %v11728_v36 }
  0x96   : > { %9516 = vmatmul.mubr.msk.f32.gmra.mrb[4].mxu0 %vm333_vm1, %v11584_v39  ;;  %v11712_v39 = vld [vmem:[#allocation2 + $0x13a] sm:$0xff] }
  0x97   : > { %9518 = vmatprep.mubr.msk.f32.mxu0 %vm333_vm1, %v11586_v40  ;;  %v11708_v40 = vld [vmem:[#allocation2 + $0x141] sm:$0xff]  ;;  %13558 = vst [vmem:[#allocation28_spill] sm:$0xff] %v11712_v39 }
  0x9a   : > { %9519 = vmatmul.mubr.msk.f32.gmra.mrb[6].mxu0 %vm333_vm1, %v11592_v41  ;;  %v11696_v41 = vld [vmem:[#allocation2 + $0x122] sm:$0xff] }
  0x9b   : > { %9521 = vmatprep.mubr.msk.f32.mxu0 %vm333_vm1, %v11594_v42  ;;  %v11692_v42 = vld [vmem:[#allocation2 + $0x129] sm:$0xff]  ;;  %13556 = vst [vmem:[#allocation26_spill] sm:$0xff] %v11696_v41 }
  0x9e   : > { %9522 = vmatmul.mubr.msk.f32.gmra.mrb[8].mxu0 %vm333_vm1, %v11600_v52  ;;  %v11680_v52 = vld [vmem:[#allocation2 + $0x10a] sm:$0xff] }
  0x9f   : > { %9524 = vmatprep.mubr.msk.f32.mxu0 %vm333_vm1, %v11602_v53  ;;  %v11676_v53 = vld [vmem:[#allocation2 + $0x111] sm:$0xff]  ;;  %13554 = vst [vmem:[#allocation24_spill] sm:$0xff] %v11680_v52 }
  0xa2   : > { %9525 = vmatmul.mubr.msk.f32.gmra.mrb[10].mxu0 %vm333_vm1, %v11608_v55  ;;  %v11664_v55 = vld [vmem:[#allocation2 + $0xf2] sm:$0xff] }
  0xa3   : > { %9527 = vmatprep.mubr.msk.f32.mxu0 %vm333_vm1, %v11610_v22  ;;  %v11660_v22 = vld [vmem:[#allocation2 + $0xf9] sm:$0xff]  ;;  %13552 = vst [vmem:[#allocation22_spill] sm:$0xff] %v11664_v55 }
  0xa6   : > { %9528 = vmatmul.mubr.msk.f32.gmra.mrb[12].mxu0 %vm333_vm1, %v11616_v23  ;;  %v11648_v23 = vld [vmem:[#allocation2 + $0xda] sm:$0xff] }
  0xa7   : > { %9530 = vmatprep.mubr.msk.f32.mxu0 %vm333_vm1, %v11618_v24  ;;  %v11644_v24 = vld [vmem:[#allocation2 + $0xe1] sm:$0xff]  ;;  %13550 = vst [vmem:[#allocation20_spill] sm:$0xff] %v11648_v23 }
  0xa8   : > { %9437 = vmatmul.mubr.msk.f32.gmra.mrb[2].mxu1 %vm333_vm1, %v11644_v24 }
  0xaa   : > { %9531 = vmatmul.mubr.msk.f32.gmra.mrb[14].mxu0 %vm333_vm1, %v11626_v27  ;;  %v11654_v27 = vld [vmem:[#allocation2 + $0xf1] sm:$0xff] }
  0xab   : > { %9533 = vmatprep.mubr.msk.f32.mxu0 %vm333_vm1, %v11632_v31  ;;  %v11658_v31 = vld [vmem:[#allocation2 + $0xe2] sm:$0xff]  ;;  %9439 = vmatprep.mubr.msk.f32.mxu1 %vm333_vm1, %v11654_v27 }
  0xac   : > { %13551 = vst [vmem:[#allocation21_spill] sm:$0xff] %v11658_v31  ;;  %9440 = vmatmul.mubr.msk.f32.gmra.mrb[4].mxu1 %vm333_vm1, %v11660_v22 }
  0xae   : > { %9534 = vmatmul.mubr.msk.f32.gmra.mrb[16].mxu0 %vm333_vm1, %v11642_v1  ;;  %v11670_v1 = vld [vmem:[#allocation2 + $0x109] sm:$0xff] }
  0xaf   : > { %9536 = vmatprep.mubr.msk.f32.mxu0 %vm333_vm1, %v11648_v23  ;;  %v11674_v23 = vld [vmem:[#allocation2 + $0xfa] sm:$0xff]  ;;  %9442 = vmatprep.mubr.msk.f32.mxu1 %vm333_vm1, %v11670_v1 }
  0xb0   : > { %13553 = vst [vmem:[#allocation23_spill] sm:$0xff] %v11674_v23  ;;  %9443 = vmatmul.mubr.msk.f32.gmra.mrb[6].mxu1 %vm333_vm1, %v11676_v53 }
  0xb2   : > { %9537 = vmatmul.mubr.msk.f32.gmra.mrb[18].mxu0 %vm333_vm1, %v11658_v31  ;;  %v11686_v31 = vld [vmem:[#allocation2 + $0x121] sm:$0xff] }
  0xb3   : > { %9539 = vmatprep.mubr.msk.f32.mxu0 %vm333_vm1, %v11664_v55  ;;  %v11690_v55 = vld [vmem:[#allocation2 + $0x112] sm:$0xff]  ;;  %9445 = vmatprep.mubr.msk.f32.mxu1 %vm333_vm1, %v11686_v31 }
  0xb4   : > { %13555 = vst [vmem:[#allocation25_spill] sm:$0xff] %v11690_v55  ;;  %9446 = vmatmul.mubr.msk.f32.gmra.mrb[8].mxu1 %vm333_vm1, %v11692_v42 }
  0xb6   : > { %9540 = vmatmul.mubr.msk.f32.gmra.mrb[20].mxu0 %vm333_vm1, %v11674_v23  ;;  %v11702_v23 = vld [vmem:[#allocation2 + $0x139] sm:$0xff] }
  0xb7   : > { %9542 = vmatprep.mubr.msk.f32.mxu0 %vm333_vm1, %v11680_v52  ;;  %v11706_v52 = vld [vmem:[#allocation2 + $0x12a] sm:$0xff]  ;;  %9448 = vmatprep.mubr.msk.f32.mxu1 %vm333_vm1, %v11702_v23 }
  0xb8   : > { %13557 = vst [vmem:[#allocation27_spill] sm:$0xff] %v11706_v52  ;;  %9449 = vmatmul.mubr.msk.f32.gmra.mrb[10].mxu1 %vm333_vm1, %v11708_v40 }
  0xba   : > { %9543 = vmatmul.mubr.msk.f32.gmra.mrb[22].mxu0 %vm333_vm1, %v11690_v55  ;;  %v11718_v55 = vld [vmem:[#allocation2 + $0x151] sm:$0xff] }
  0xbb   : > { %9545 = vmatprep.mubr.msk.f32.mxu0 %vm333_vm1, %v11696_v41  ;;  %13559 = vst [vmem:[#allocation29_spill] sm:$0xff] %v11718_v55  ;;  %v11722_v41 = vld [vmem:[#allocation2 + $0x142] sm:$0xff]  ;;  %9451 = vmatprep.mubr.msk.f32.mxu1 %vm333_vm1, %v11718_v55  ;;  %v11744_v55 = vld [vmem:[#allocation2 + $0x16a] sm:$0xff] }
  0xbc   : > { %13560 = vst [vmem:[#allocation30_spill] sm:$0xff] %v11722_v41  ;;  %9452 = vmatmul.mubr.msk.f32.gmra.mrb[12].mxu1 %vm333_vm1, %v11724_v37  ;;  %13562 = vst [vmem:[#allocation32_spill] sm:$0xff] %v11744_v55 }
  0xbe   : > { %9546 = vmatmul.mubr.msk.f32.gmra.mrb[24].mxu0 %vm333_vm1, %v11706_v52  ;;  %v11734_v52 = vld [vmem:[#allocation2 + $0x169] sm:$0xff] }
  0xbf   : > { %9548 = vmatprep.mubr.msk.f32.mxu0 %vm333_vm1, %v11712_v39  ;;  %v11738_v39 = vld [vmem:[#allocation2 + $0x15a] sm:$0xff]  ;;  %9454 = vmatprep.mubr.msk.f32.mxu1 %vm333_vm1, %v11734_v52 }
  0xc0   : > { %9455 = vmatmul.mubr.msk.f32.gmra.mrb[14].mxu1 %vm333_vm1, %v11740_v34 }
  0xc2   : > { %9549 = vmatmul.mubr.msk.f32.gmra.mrb[26].mxu0 %vm333_vm1, %v11722_v41  ;;  %v11752_v41 = vld [vmem:[#allocation2 + $0x172] sm:$0xff] }
  0xc3   : > { %9551 = vmatprep.mubr.msk.f32.mxu0 %vm333_vm1, %v11728_v36  ;;  %v8255_v36 = vld [vmem:[%s13402_s3 + $0x14] sm:$0x7] }
  0xc6   : > { %9552 = vmatmul.mubr.msk.f32.gmra.mrb[28].mxu0 %vm333_vm1, %v11738_v39 }
  0xc7   : > { %9554 = vmatprep.mubr.msk.f32.mxu0 %vm333_vm1, %v11744_v55 }
  0xca   : > { %9555 = vmatmul.mubr.msk.f32.gmra.mrb[30].mxu0 %vm333_vm1, %v11752_v41 }
  0xcb   : > { %9559 = vmatprep.mubr.msk.f32.mxu0 %vm333_vm1, %v11423_v54  ;;  %v11820_v54 = vld [vmem:[#allocation2 + $0x180] sm:$0xff] }
  0xce   : > { %9560 = vmatmul.mubr.msk.f32.vlgmr.msra.gmra.mrb[0].mxu0 %vm333_vm1, %v11435_v56  ;;  %v11826_v56 = vld [vmem:[#allocation2 + $0x188] sm:$0xff] }
  0xcf   : > { %9608 = vmatpush3.msk.msra.mxu0 %vm695_vm0, %v11567_v35  ;;  %9562 = vmatprep.mubr.msk.f32.mxu0 %vm333_vm1, %v11437_v57  ;;  %v8289_v35 = vld [vmem:[%s13402_s3 + $0x18] sm:$0x7] }
  0xd0   : > { %9657 = vmatprep.subr.msk.mxu0 %vm695_vm0, %v8255_v36 }
  0xd2   : > { %9563 = vmatmul.mubr.msk.f32.gmra.mrb[2].mxu0 %vm333_vm1, %v11445_v58 }
  0xd3   : > { %9565 = vmatprep.mubr.msk.f32.mxu0 %vm333_vm1, %v11447_v59 }
  0xd6   : > { %9566 = vmatmul.mubr.msk.f32.gmra.mrb[4].mxu0 %vm333_vm1, %v11453_v8 }
  0xd7   : > { %9568 = vmatprep.mubr.msk.f32.mxu0 %vm333_vm1, %v11455_v60 }
  0xda   : > { %9569 = vmatmul.mubr.msk.f32.gmra.mrb[6].mxu0 %vm333_vm1, %v11461_v61 }
  0xdb   : > { %9571 = vmatprep.mubr.msk.f32.mxu0 %vm333_vm1, %v11463_v62 }
  0xde   : > { %9572 = vmatmul.mubr.msk.f32.gmra.mrb[8].mxu0 %vm333_vm1, %v11469_v63 }
  0xdf   : > { %9574 = vmatprep.mubr.msk.f32.mxu0 %vm333_vm1, %v11471_v0 }
  0xe2   : > { %9575 = vmatmul.mubr.msk.f32.gmra.mrb[10].mxu0 %vm333_vm1, %v11477_v2 }
  0xe3   : > { %9577 = vmatprep.mubr.msk.f32.mxu0 %vm333_vm1, %v11479_v5 }
  0xe6   : > { %9578 = vmatmul.mubr.msk.f32.gmra.mrb[12].mxu0 %vm333_vm1, %v11485_v6 }
  0xe7   : > { %9580 = vmatprep.mubr.msk.f32.mxu0 %vm333_vm1, %v11487_v7 }
  0xea   : > { %9581 = vmatmul.mubr.msk.f32.gmra.mrb[14].mxu0 %vm333_vm1, %v11493_v9 }
  0xeb   : > { %9583 = vmatprep.mubr.msk.f32.mxu0 %vm333_vm1, %v11495_v10 }
  0xee   : > { %9584 = vmatmul.mubr.msk.f32.gmra.mrb[16].mxu0 %vm333_vm1, %v11501_v11 }
  0xef   : > { %9586 = vmatprep.mubr.msk.f32.mxu0 %vm333_vm1, %v11503_v12 }
  0xf2   : > { %9587 = vmatmul.mubr.msk.f32.gmra.mrb[18].mxu0 %vm333_vm1, %v11509_v13 }
  0xf3   : > { %9589 = vmatprep.mubr.msk.f32.mxu0 %vm333_vm1, %v11511_v14 }
  0xf6   : > { %9590 = vmatmul.mubr.msk.f32.gmra.mrb[20].mxu0 %vm333_vm1, %v11517_v15 }
  0xf7   : > { %9592 = vmatprep.mubr.msk.f32.mxu0 %vm333_vm1, %v11519_v16 }
  0xfa   : > { %9593 = vmatmul.mubr.msk.f32.gmra.mrb[22].mxu0 %vm333_vm1, %v11525_v20 }
  0xfb   : > { %9595 = vmatprep.mubr.msk.f32.mxu0 %vm333_vm1, %v11527_v21 }
  0xfe   : > { %9596 = vmatmul.mubr.msk.f32.gmra.mrb[24].mxu0 %vm333_vm1, %v11537_v26 }
  0xff   : > { %9598 = vmatprep.mubr.msk.f32.mxu0 %vm333_vm1, %v11540_v28 }
 0x102   : > { %9599 = vmatmul.mubr.msk.f32.gmra.mrb[26].mxu0 %vm333_vm1, %v11549_v3 }
 0x103   : > { %9601 = vmatprep.mubr.msk.f32.mxu0 %vm333_vm1, %v11551_v30 }
 0x106   : > { %9602 = vmatmul.mubr.msk.f32.gmra.mrb[28].mxu0 %vm333_vm1, %v11557_v4 }
 0x107   : > { %9604 = vmatprep.mubr.msk.f32.mxu0 %vm333_vm1, %v11820_v54 }
 0x10a   : > { %9605 = vmatmul.mubr.msk.f32.gmra.mrb[30].mxu0 %vm333_vm1, %v11826_v56 }
 0x10b   : > { %9609 = vmatprep.mubr.msk.f32.mxu0 %vm333_vm1, %v11328_v17  ;;  %v13563_v17 = vld [vmem:[#allocation29_spill] sm:$0xff] }
 0x10e   : > { %9610 = vmatmul.mubr.msk.f32.vlgmr.msra.gmra.mrb[0].mxu0 %vm333_vm1, %v11330_v18  ;;  %v11893_v18 = vld [vmem:[#allocation2 + $0x181] sm:$0xff] }
 0x10f   : > { %9658 = vmatpush3.msk.msra.mxu0 %vm695_vm0, %v8255_v36  ;;  %9612 = vmatprep.mubr.msk.f32.mxu0 %vm333_vm1, %v11332_v19  ;;  %v11899_v19 = vld [vmem:[#allocation2 + $0x189] sm:$0xff]  ;;  %v13571_v36 = vld [vmem:[#allocation11_spill] sm:$0xff] }
 0x110   : > { %9707 = vmatprep.subr.msk.mxu0 %vm695_vm0, %v8289_v35 }
 0x112   : > { %9613 = vmatmul.mubr.msk.f32.gmra.mrb[2].mxu0 %vm333_vm1, %v11360_v33  ;;  %v13564_v33 = vld [vmem:[#allocation4_spill] sm:$0xff] }
 0x113   : > { %9615 = vmatprep.mubr.msk.f32.mxu0 %vm333_vm1, %v11367_v38  ;;  %v8323_v38 = vld [vmem:[%s13402_s3 + $0x1c] sm:$0x7] }
 0x116   : > { %9616 = vmatmul.mubr.msk.f32.gmra.mrb[4].mxu0 %vm333_vm1, %v11384_v43  ;;  %v13565_v43 = vld [vmem:[#allocation5_spill] sm:$0xff] }
 0x117   : > { %9618 = vmatprep.mubr.msk.f32.mxu0 %vm333_vm1, %v11387_v44  ;;  %v13566_v44 = vld [vmem:[#allocation6_spill] sm:$0xff] }
 0x11a   : > { %9619 = vmatmul.mubr.msk.f32.gmra.mrb[6].mxu0 %vm333_vm1, %v11394_v45  ;;  %v13567_v45 = vld [vmem:[#allocation7_spill] sm:$0xff] }
 0x11b   : > { %9621 = vmatprep.mubr.msk.f32.mxu0 %vm333_vm1, %v11396_v46  ;;  %v13568_v46 = vld [vmem:[#allocation8_spill] sm:$0xff] }
 0x11e   : > { %9622 = vmatmul.mubr.msk.f32.gmra.mrb[8].mxu0 %vm333_vm1, %v11402_v47  ;;  %v13569_v47 = vld [vmem:[#allocation9_spill] sm:$0xff] }
 0x11f   : > { %9624 = vmatprep.mubr.msk.f32.mxu0 %vm333_vm1, %v11404_v48  ;;  %v13570_v48 = vld [vmem:[#allocation10_spill] sm:$0xff] }
 0x122   : > { %9625 = vmatmul.mubr.msk.f32.gmra.mrb[10].mxu0 %vm333_vm1, %v11410_v49 }
 0x123   : > { %9627 = vmatprep.mubr.msk.f32.mxu0 %vm333_vm1, %v11412_v50 }
 0x126   : > { %9628 = vmatmul.mubr.msk.f32.gmra.mrb[12].mxu0 %vm333_vm1, %v11418_v51 }
 0x127   : > { %9630 = vmatprep.mubr.msk.f32.mxu0 %vm333_vm1, %v11622_v25 }
 0x12a   : > { %9631 = vmatmul.mubr.msk.f32.gmra.mrb[14].mxu0 %vm333_vm1, %v11628_v29 }
 0x12b   : > { %9633 = vmatprep.mubr.msk.f32.mxu0 %vm333_vm1, %v11638_v32 }
 0x12e   : > { %9634 = vmatmul.mubr.msk.f32.gmra.mrb[16].mxu0 %vm333_vm1, %v11644_v24 }
 0x12f   : > { %9636 = vmatprep.mubr.msk.f32.mxu0 %vm333_vm1, %v11654_v27 }
 0x132   : > { %9637 = vmatmul.mubr.msk.f32.gmra.mrb[18].mxu0 %vm333_vm1, %v11660_v22 }
 0x133   : > { %9639 = vmatprep.mubr.msk.f32.mxu0 %vm333_vm1, %v11670_v1 }
 0x136   : > { %9640 = vmatmul.mubr.msk.f32.gmra.mrb[20].mxu0 %vm333_vm1, %v11676_v53 }
 0x137   : > { %9642 = vmatprep.mubr.msk.f32.mxu0 %vm333_vm1, %v11686_v31 }
 0x13a   : > { %9643 = vmatmul.mubr.msk.f32.gmra.mrb[22].mxu0 %vm333_vm1, %v11692_v42 }
 0x13b   : > { %9645 = vmatprep.mubr.msk.f32.mxu0 %vm333_vm1, %v11702_v23 }
 0x13e   : > { %9646 = vmatmul.mubr.msk.f32.gmra.mrb[24].mxu0 %vm333_vm1, %v11708_v40 }
 0x13f   : > { %9648 = vmatprep.mubr.msk.f32.mxu0 %vm333_vm1, %v13563_v17 }
 0x142   : > { %9649 = vmatmul.mubr.msk.f32.gmra.mrb[26].mxu0 %vm333_vm1, %v11724_v37 }
 0x143   : > { %9651 = vmatprep.mubr.msk.f32.mxu0 %vm333_vm1, %v11734_v52 }
 0x146   : > { %9652 = vmatmul.mubr.msk.f32.gmra.mrb[28].mxu0 %vm333_vm1, %v11740_v34 }
 0x147   : > { %9654 = vmatprep.mubr.msk.f32.mxu0 %vm333_vm1, %v11893_v18 }
 0x14a   : > { %9655 = vmatmul.mubr.msk.f32.gmra.mrb[30].mxu0 %vm333_vm1, %v11899_v19 }
 0x14b   : > { %9659 = vmatprep.mubr.msk.f32.mxu0 %vm333_vm1, %v13564_v33  ;;  %v13573_v33 = vld [vmem:[#allocation13_spill] sm:$0xff] }
 0x14e   : > { %9660 = vmatmul.mubr.msk.f32.vlgmr.msra.gmra.mrb[0].mxu0 %vm333_vm1, %v13565_v43  ;;  %v13574_v43 = vld [vmem:[#allocation14_spill] sm:$0xff] }
 0x14f   : > { %9708 = vmatpush3.msk.msra.mxu0 %vm695_vm0, %v8289_v35  ;;  %9662 = vmatprep.mubr.msk.f32.mxu0 %vm333_vm1, %v13566_v44  ;;  %v13572_v35 = vld [vmem:[#allocation12_spill] sm:$0xff] }
 0x150   : > { %9757 = vmatprep.subr.msk.mxu0 %vm695_vm0, %v8323_v38 }
 0x152   : > { %9663 = vmatmul.mubr.msk.f32.gmra.mrb[2].mxu0 %vm333_vm1, %v13567_v45  ;;  %v13575_v45 = vld [vmem:[#allocation15_spill] sm:$0xff] }
 0x153   : > { %9665 = vmatprep.mubr.msk.f32.mxu0 %vm333_vm1, %v13568_v46  ;;  %v13576_v46 = vld [vmem:[#allocation16_spill] sm:$0xff] }
 0x156   : > { %9666 = vmatmul.mubr.msk.f32.gmra.mrb[4].mxu0 %vm333_vm1, %v13569_v47  ;;  %v13577_v47 = vld [vmem:[#allocation17_spill] sm:$0xff] }
 0x157   : > { %9668 = vmatprep.mubr.msk.f32.mxu0 %vm333_vm1, %v13570_v48  ;;  %v13578_v48 = vld [vmem:[#allocation18_spill] sm:$0xff] }
 0x15a   : > { %9669 = vmatmul.mubr.msk.f32.gmra.mrb[6].mxu0 %vm333_vm1, %v13571_v36  ;;  %v13579_v36 = vld [vmem:[#allocation19_spill] sm:$0xff] }
 0x15b   : > { %9671 = vmatprep.mubr.msk.f32.mxu0 %vm333_vm1, %v13572_v35  ;;  %v13580_v35 = vld [vmem:[#allocation20_spill] sm:$0xff] }
 0x15e   : > { %9672 = vmatmul.mubr.msk.f32.gmra.mrb[8].mxu0 %vm333_vm1, %v13573_v33  ;;  %v13581_v33 = vld [vmem:[#allocation21_spill] sm:$0xff] }
 0x15f   : > { %9674 = vmatprep.mubr.msk.f32.mxu0 %vm333_vm1, %v13574_v43  ;;  %v13582_v43 = vld [vmem:[#allocation22_spill] sm:$0xff] }
 0x162   : > { %9675 = vmatmul.mubr.msk.f32.gmra.mrb[10].mxu0 %vm333_vm1, %v13575_v45  ;;  %v13583_v45 = vld [vmem:[#allocation23_spill] sm:$0xff] }
 0x163   : > { %9677 = vmatprep.mubr.msk.f32.mxu0 %vm333_vm1, %v13576_v46  ;;  %v13584_v46 = vld [vmem:[#allocation24_spill] sm:$0xff] }
 0x166   : > { %9678 = vmatmul.mubr.msk.f32.gmra.mrb[12].mxu0 %vm333_vm1, %v13577_v47  ;;  %v13585_v47 = vld [vmem:[#allocation25_spill] sm:$0xff] }
 0x167   : > { %9680 = vmatprep.mubr.msk.f32.mxu0 %vm333_vm1, %v13578_v48  ;;  %v13586_v48 = vld [vmem:[#allocation26_spill] sm:$0xff] }
 0x16a   : > { %9681 = vmatmul.mubr.msk.f32.gmra.mrb[14].mxu0 %vm333_vm1, %v13579_v36  ;;  %v13587_v36 = vld [vmem:[#allocation27_spill] sm:$0xff] }
 0x16b   : > { %9683 = vmatprep.mubr.msk.f32.mxu0 %vm333_vm1, %v13580_v35  ;;  %v13588_v35 = vld [vmem:[#allocation28_spill] sm:$0xff] }
 0x16e   : > { %9684 = vmatmul.mubr.msk.f32.gmra.mrb[16].mxu0 %vm333_vm1, %v13581_v33  ;;  %v13589_v33 = vld [vmem:[#allocation30_spill] sm:$0xff] }
 0x16f   : > { %9686 = vmatprep.mubr.msk.f32.mxu0 %vm333_vm1, %v13582_v43  ;;  %v13590_v43 = vld [vmem:[#allocation31_spill] sm:$0xff] }
 0x172   : > { %9687 = vmatmul.mubr.msk.f32.gmra.mrb[18].mxu0 %vm333_vm1, %v13583_v45 }
 0x173   : > { %9689 = vmatprep.mubr.msk.f32.mxu0 %vm333_vm1, %v13584_v46 }
 0x176   : > { %9690 = vmatmul.mubr.msk.f32.gmra.mrb[20].mxu0 %vm333_vm1, %v13585_v47  ;;  %v11966_v47 = vld [vmem:[#allocation2 + $0x182] sm:$0xff] }
 0x177   : > { %9692 = vmatprep.mubr.msk.f32.mxu0 %vm333_vm1, %v13586_v48 }
 0x17a   : > { %9693 = vmatmul.mubr.msk.f32.gmra.mrb[22].mxu0 %vm333_vm1, %v13587_v36 }
 0x17b   : > { %9695 = vmatprep.mubr.msk.f32.mxu0 %vm333_vm1, %v13588_v35  ;;  %v11972_v35 = vld [vmem:[#allocation2 + $0x18a] sm:$0xff] }
 0x17e   : > { %9696 = vmatmul.mubr.msk.f32.gmra.mrb[24].mxu0 %vm333_vm1, %v13589_v33 }
 0x17f   : > { %9698 = vmatprep.mubr.msk.f32.mxu0 %vm333_vm1, %v13590_v43 }
 0x182   : > { %9699 = vmatmul.mubr.msk.f32.gmra.mrb[26].mxu0 %vm333_vm1, %v11738_v39 }
 0x183   : > { %9701 = vmatprep.mubr.msk.f32.mxu0 %vm333_vm1, %v11744_v55  ;;  %v8357_v55 = vld [vmem:[%s13402_s3 + $0x20] sm:$0x7] }
 0x186   : > { %9702 = vmatmul.mubr.msk.f32.gmra.mrb[28].mxu0 %vm333_vm1, %v11752_v41 }
 0x187   : > { %9704 = vmatprep.mubr.msk.f32.mxu0 %vm333_vm1, %v11966_v47 }
 0x18a   : > { %9705 = vmatmul.mubr.msk.f32.gmra.mrb[30].mxu0 %vm333_vm1, %v11972_v35 }
 0x18b   : > { %9709 = vmatprep.mubr.msk.f32.mxu0 %vm333_vm1, %v11437_v57  ;;  %v2839_v57 = vld [vmem:[#allocation2 + $0x198] sm:$0xff] }
 0x18e   : > { %9710 = vmatmul.mubr.msk.f32.vlgmr.msra.gmra.mrb[0].mxu0 %vm333_vm1, %v11445_v58  ;;  %v2840_v58 = vld [vmem:[#allocation2 + $0x1a0] sm:$0xff] }
 0x18f   : > { %9758 = vmatpush3.msk.msra.mxu0 %vm695_vm0, %v8323_v38  ;;  %9712 = vmatprep.mubr.msk.f32.mxu0 %vm333_vm1, %v11447_v59  ;;  %v3199_v59 = vld [vmem:[#allocation2 + $0x31] sm:$0xff] }
 0x190   : > { %9807 = vmatprep.subr.msk.mxu0 %vm695_vm0, %v8357_v55 }
 0x192   : > { %9713 = vmatmul.mubr.msk.f32.gmra.mrb[2].mxu0 %vm333_vm1, %v11453_v8  ;;  %v8392_v8 = vld [vmem:[%s13404_s5 + $0x20] sm:$0xff] }
 0x193   : > { %9715 = vmatprep.mubr.msk.f32.mxu0 %vm333_vm1, %v11455_v60  ;;  %v8393_v60 = vld [vmem:[%s13404_s5 + $0x28] sm:$0xff] }
 0x196   : > { %9716 = vmatmul.mubr.msk.f32.gmra.mrb[4].mxu0 %vm333_vm1, %v11461_v61  ;;  %v8394_v61 = vld [vmem:[%s13404_s5 + $0x30] sm:$0xff] }
 0x197   : > { %9718 = vmatprep.mubr.msk.f32.mxu0 %vm333_vm1, %v11463_v62  ;;  %v3200_v62 = vld [vmem:[#allocation2 + $0x39] sm:$0xff] }
 0x19a   : > { %9719 = vmatmul.mubr.msk.f32.gmra.mrb[6].mxu0 %vm333_vm1, %v11469_v63  ;;  %v10417_v63 = vpack.c.bf16 %v8393_v60, %v8392_v8  ;;  %v12337_v60 = vld [vmem:[%s13403_s4] ss:$0 sm:$0xff] }
 0x19b   : > { %9721 = vmatprep.mubr.msk.f32.mxu0 %vm333_vm1, %v11471_v0  ;;  %v8395_v0 = vld [vmem:[%s13404_s5 + $0x38] sm:$0xff] }
 0x19c   : > { %10418 = vmatprep.subr.bf16.mxu1 %v10417_v63 }
 0x19d   : > { %10420 = vmatpush3.bf16.msra.mxu1 %v10417_v63 }
 0x19e   : > { %9722 = vmatmul.mubr.msk.f32.gmra.mrb[8].mxu0 %vm333_vm1, %v11477_v2  ;;  %v3201_v2 = vld [vmem:[#allocation2 + $0x49] sm:$0xff] }
 0x19f   : > { %9724 = vmatprep.mubr.msk.f32.mxu0 %vm333_vm1, %v11479_v5  ;;  %v10421_v5 = vpack.c.bf16 %v8395_v0, %v8394_v61 }
 0x1a1   : > { %10422 = vmatprep.subr.bf16.mxu1 %v10421_v5 }
 0x1a2   : > { %9725 = vmatmul.mubr.msk.f32.gmra.mrb[10].mxu0 %vm333_vm1, %v11485_v6  ;;  %v3202_v6 = vld [vmem:[#allocation2 + $0x51] sm:$0xff]  ;;  %10424 = vmatpush3.bf16.msra.mxu1 %v10421_v5 }
 0x1a3   : > { %9727 = vmatprep.mubr.msk.f32.mxu0 %vm333_vm1, %v11487_v7  ;;  %v3203_v7 = vld [vmem:[#allocation2 + $0x61] sm:$0xff] }
 0x1a6   : > { %9728 = vmatmul.mubr.msk.f32.gmra.mrb[12].mxu0 %vm333_vm1, %v11493_v9  ;;  %v3204_v9 = vld [vmem:[#allocation2 + $0x69] sm:$0xff] }
 0x1a7   : > { %9730 = vmatprep.mubr.msk.f32.mxu0 %vm333_vm1, %v11495_v10  ;;  %v3205_v10 = vld [vmem:[#allocation2 + $0x79] sm:$0xff] }
 0x1aa   : > { %9731 = vmatmul.mubr.msk.f32.gmra.mrb[14].mxu0 %vm333_vm1, %v11501_v11  ;;  %v3206_v11 = vld [vmem:[#allocation2 + $0x81] sm:$0xff] }
 0x1ab   : > { %9733 = vmatprep.mubr.msk.f32.mxu0 %vm333_vm1, %v11503_v12  ;;  %v3207_v12 = vld [vmem:[#allocation2 + $0x91] sm:$0xff] }
 0x1ae   : > { %9734 = vmatmul.mubr.msk.f32.gmra.mrb[16].mxu0 %vm333_vm1, %v11509_v13  ;;  %v13593_v13 = vld [vmem:[#allocation9_spill] sm:$0xff] }
 0x1af   : > { %9736 = vmatprep.mubr.msk.f32.mxu0 %vm333_vm1, %v11511_v14  ;;  %v13594_v14 = vld [vmem:[#allocation10_spill] sm:$0xff] }
 0x1b2   : > { %9737 = vmatmul.mubr.msk.f32.gmra.mrb[18].mxu0 %vm333_vm1, %v11517_v15  ;;  %v13595_v15 = vld [vmem:[#allocation11_spill] sm:$0xff] }
 0x1b3   : > { %9739 = vmatprep.mubr.msk.f32.mxu0 %vm333_vm1, %v11519_v16  ;;  %v13596_v16 = vld [vmem:[#allocation12_spill] sm:$0xff] }
 0x1b6   : > { %9740 = vmatmul.mubr.msk.f32.gmra.mrb[20].mxu0 %vm333_vm1, %v11525_v20  ;;  %v13597_v20 = vld [vmem:[#allocation13_spill] sm:$0xff] }
 0x1b7   : > { %9742 = vmatprep.mubr.msk.f32.mxu0 %vm333_vm1, %v11527_v21  ;;  %v13598_v21 = vld [vmem:[#allocation14_spill] sm:$0xff] }
 0x1ba   : > { %9743 = vmatmul.mubr.msk.f32.gmra.mrb[22].mxu0 %vm333_vm1, %v11537_v26  ;;  %v13599_v26 = vld [vmem:[#allocation15_spill] sm:$0xff] }
 0x1bb   : > { %9745 = vmatprep.mubr.msk.f32.mxu0 %vm333_vm1, %v11540_v28  ;;  %v13600_v28 = vld [vmem:[#allocation16_spill] sm:$0xff] }
 0x1be   : > { %9746 = vmatmul.mubr.msk.f32.gmra.mrb[24].mxu0 %vm333_vm1, %v11549_v3  ;;  %v13601_v3 = vld [vmem:[#allocation17_spill] sm:$0xff] }
 0x1bf   : > { %9748 = vmatprep.mubr.msk.f32.mxu0 %vm333_vm1, %v11551_v30  ;;  %v13602_v30 = vld [vmem:[#allocation18_spill] sm:$0xff] }
 0x1c2   : > { %9749 = vmatmul.mubr.msk.f32.gmra.mrb[26].mxu0 %vm333_vm1, %v11557_v4  ;;  %v13603_v4 = vld [vmem:[#allocation19_spill] sm:$0xff] }
 0x1c3   : > { %9751 = vmatprep.mubr.msk.f32.mxu0 %vm333_vm1, %v11820_v54 }
 0x1c6   : > { %9752 = vmatmul.mubr.msk.f32.gmra.mrb[28].mxu0 %vm333_vm1, %v11826_v56 }
 0x1c7   : > { %9754 = vmatprep.mubr.msk.f32.mxu0 %vm333_vm1, %v2839_v57 }
 0x1ca   : > { %9755 = vmatmul.mubr.msk.f32.gmra.mrb[30].mxu0 %vm333_vm1, %v2840_v58  ;;  %v8460_v58 = vld [vmem:[%s13404_s5 + $0x40] sm:$0xff] }
 0x1cb   : > { %9759 = vmatprep.mubr.msk.f32.mxu0 %vm333_vm1, %v3199_v59  ;;  %v8461_v59 = vld [vmem:[%s13404_s5 + $0x48] sm:$0xff] }
 0x1cc   : > { %v12331_v8 = vpack.c.bf16 %v8461_v59, %v8460_v58 }
 0x1ce   : > { %9760 = vmatmul.mubr.msk.f32.vlgmr.msra.gmra.mrb[0].mxu0 %vm333_vm1, %v3200_v62 }
 0x1cf   : > { %9808 = vmatpush3.msk.msra.mxu0 %vm695_vm0, %v8357_v55  ;;  %9762 = vmatprep.mubr.msk.f32.mxu0 %vm333_vm1, %v3201_v2  ;;  %v3619_v55 = vld [vmem:[#allocation2 + $0x19a] sm:$0xff] }
 0x1d2   : > { %9763 = vmatmul.mubr.msk.f32.gmra.mrb[2].mxu0 %vm333_vm1, %v3202_v6 }
 0x1d3   : > { %9765 = vmatprep.mubr.msk.f32.mxu0 %vm333_vm1, %v3203_v7 }
 0x1d6   : > { %9766 = vmatmul.mubr.msk.f32.gmra.mrb[4].mxu0 %vm333_vm1, %v3204_v9 }
 0x1d7   : > { %9768 = vmatprep.mubr.msk.f32.mxu0 %vm333_vm1, %v3205_v10 }
 0x1da   : > { %9769 = vmatmul.mubr.msk.f32.gmra.mrb[6].mxu0 %vm333_vm1, %v3206_v11 }
 0x1db   : > { %9771 = vmatprep.mubr.msk.f32.mxu0 %vm333_vm1, %v3207_v12 }
 0x1de   : > { %9772 = vmatmul.mubr.msk.f32.gmra.mrb[8].mxu0 %vm333_vm1, %v11410_v49  ;;  %v3230_v49 = vld [vmem:[#allocation2 + $0x1a1] sm:$0xff] }
 0x1df   : > { %9774 = vmatprep.mubr.msk.f32.mxu0 %vm333_vm1, %v11412_v50  ;;  %v13591_v50 = vld [vmem:[#allocation7_spill] sm:$0xff] }
 0x1e2   : > { %9775 = vmatmul.mubr.msk.f32.gmra.mrb[10].mxu0 %vm333_vm1, %v11418_v51  ;;  %v13592_v51 = vld [vmem:[#allocation8_spill] sm:$0xff] }
 0x1e3   : > { %9777 = vmatprep.mubr.msk.f32.mxu0 %vm333_vm1, %v11622_v25  ;;  %v4172_v25 = vld [vmem:[%s13404_s5 + $0x8] sm:$0xff] }
 0x1e6   : > { %9778 = vmatmul.mubr.msk.f32.gmra.mrb[12].mxu0 %vm333_vm1, %v11628_v29  ;;  %v12287_v29 = vpop.f32.mrb[0].mxu1 }
 0x1e7   : > { %9780 = vmatprep.mubr.msk.f32.mxu0 %vm333_vm1, %v11638_v32 }
 0x1ea   : > { %9781 = vmatmul.mubr.msk.f32.gmra.mrb[14].mxu0 %vm333_vm1, %v11644_v24  ;;  %v4171_v24 = vld [vmem:[%s13404_s5] sm:$0xff] }
 0x1eb   : > { %9783 = vmatprep.mubr.msk.f32.mxu0 %vm333_vm1, %v11654_v27  ;;  %v10425_v27 = vpack.c.bf16 %v4172_v25, %v4171_v24 }
 0x1ed   : > { %10426 = vmatprep.subr.bf16.mxu1 %v10425_v27 }
 0x1ee   : > { %9784 = vmatmul.mubr.msk.f32.gmra.mrb[16].mxu0 %vm333_vm1, %v11660_v22  ;;  %v3620_v22 = vld [vmem:[#allocation2 + $0x1a2] sm:$0xff] }
 0x1ef   : > { %9786 = vmatprep.mubr.msk.f32.mxu0 %vm333_vm1, %v11670_v1  ;;  %v3229_v1 = vld [vmem:[#allocation2 + $0x199] sm:$0xff] }
 0x1f2   : > { %9787 = vmatmul.mubr.msk.f32.gmra.mrb[18].mxu0 %vm333_vm1, %v11676_v53  ;;  %v13609_v53 = vld [vmem:[#allocation32_spill] sm:$0xff] }
 0x1f3   : > { %9789 = vmatprep.mubr.msk.f32.mxu0 %vm333_vm1, %v11686_v31  ;;  %v12289_v31 = vpop.f32.mrb[1].mxu1 }
 0x1f4   : > { %v12291_v32 = vpop.f32.mrb[2].mxu1 }
 0x1f5   : > { %v12293_v54 = vpop.f32.mrb[3].mxu1 }
 0x1f6   : > { %9790 = vmatmul.mubr.msk.f32.gmra.mrb[20].mxu0 %vm333_vm1, %v11692_v42  ;;  %v13607_v42 = vld [vmem:[#allocation25_spill] sm:$0xff]  ;;  %v12295_v56 = vpop.f32.mrb[4].mxu1 }
 0x1f7   : > { %9792 = vmatprep.mubr.msk.f32.mxu0 %vm333_vm1, %v11702_v23 }
 0x1fa   : > { %9793 = vmatmul.mubr.msk.f32.gmra.mrb[22].mxu0 %vm333_vm1, %v11708_v40  ;;  %v13606_v40 = vld [vmem:[#allocation22_spill] sm:$0xff] }
 0x1fb   : > { %9795 = vmatprep.mubr.msk.f32.mxu0 %vm333_vm1, %v13563_v17  ;;  %v12297_v17 = vpop.f32.mrb[5].mxu1 }
 0x1fe   : > { %9796 = vmatmul.mubr.msk.f32.gmra.mrb[24].mxu0 %vm333_vm1, %v11724_v37  ;;  %v13605_v37 = vld [vmem:[#allocation21_spill] sm:$0xff] }
 0x1ff   : > { %9798 = vmatprep.mubr.msk.f32.mxu0 %vm333_vm1, %v11734_v52  ;;  %v13608_v52 = vld [vmem:[#allocation28_spill] sm:$0xff] }
 0x202   : > { %9799 = vmatmul.mubr.msk.f32.gmra.mrb[26].mxu0 %vm333_vm1, %v11740_v34  ;;  %v13604_v34 = vld [vmem:[#allocation20_spill] sm:$0xff] }
 0x203   : > { %9801 = vmatprep.mubr.msk.f32.mxu0 %vm333_vm1, %v11893_v18  ;;  %v12299_v18 = vpop.f32.mrb[6].mxu1 }
 0x206   : > { %9802 = vmatmul.mubr.msk.f32.gmra.mrb[28].mxu0 %vm333_vm1, %v11899_v19  ;;  %v12301_v19 = vpop.f32.mrb[7].mxu1 }
 0x207   : > { %9804 = vmatprep.mubr.msk.f32.mxu0 %vm333_vm1, %v3229_v1  ;;  %v12303_v38 = vpop.f32.mrb[8].mxu1 }
 0x20a   : > { %9805 = vmatmul.mubr.msk.f32.gmra.mrb[30].mxu0 %vm333_vm1, %v3230_v49 }
 0x20b   : > { %9809 = vmatprep.mubr.msk.f32.mxu0 %vm333_vm1, %v13566_v44  ;;  %v12305_v44 = vpop.f32.mrb[9].mxu1 }
 0x20e   : > { %9810 = vmatmul.mubr.msk.f32.vlgmr.msra.gmra.mrb[0].mxu0 %vm333_vm1, %v13591_v50 }
 0x20f   : > { %9812 = vmatprep.mubr.msk.f32.mxu0 %vm333_vm1, %v13592_v51 }
 0x212   : > { %9813 = vmatmul.mubr.msk.f32.gmra.mrb[2].mxu0 %vm333_vm1, %v13593_v13 }
 0x213   : > { %9815 = vmatprep.mubr.msk.f32.mxu0 %vm333_vm1, %v13594_v14 }
 0x216   : > { %9816 = vmatmul.mubr.msk.f32.gmra.mrb[4].mxu0 %vm333_vm1, %v13595_v15 }
 0x217   : > { %9818 = vmatprep.mubr.msk.f32.mxu0 %vm333_vm1, %v13596_v16 }
 0x21a   : > { %9819 = vmatmul.mubr.msk.f32.gmra.mrb[6].mxu0 %vm333_vm1, %v13597_v20 }
 0x21b   : > { %9821 = vmatprep.mubr.msk.f32.mxu0 %vm333_vm1, %v13598_v21 }
 0x21e   : > { %9822 = vmatmul.mubr.msk.f32.gmra.mrb[8].mxu0 %vm333_vm1, %v13599_v26 }
 0x21f   : > { %9824 = vmatprep.mubr.msk.f32.mxu0 %vm333_vm1, %v13600_v28 }
 0x222   : > { %9825 = vmatmul.mubr.msk.f32.gmra.mrb[10].mxu0 %vm333_vm1, %v13601_v3 }
 0x223   : > { %9827 = vmatprep.mubr.msk.f32.mxu0 %vm333_vm1, %v13602_v30 }
 0x226   : > { %9828 = vmatmul.mubr.msk.f32.gmra.mrb[12].mxu0 %vm333_vm1, %v13603_v4 }
 0x227   : > { %9830 = vmatprep.mubr.msk.f32.mxu0 %vm333_vm1, %v13604_v34 }
 0x22a   : > { %9831 = vmatmul.mubr.msk.f32.gmra.mrb[14].mxu0 %vm333_vm1, %v13605_v37 }
 0x22b   : > { %9833 = vmatprep.mubr.msk.f32.mxu0 %vm333_vm1, %v13606_v40 }
 0x22e   : > { %9834 = vmatmul.mubr.msk.f32.gmra.mrb[16].mxu0 %vm333_vm1, %v13583_v45  ;;  %v4173_v45 = vld [vmem:[%s13404_s5 + $0x10] sm:$0xff] }
 0x22f   : > { %9836 = vmatprep.mubr.msk.f32.mxu0 %vm333_vm1, %v13584_v46  ;;  %v4174_v46 = vld [vmem:[%s13404_s5 + $0x18] sm:$0xff] }
 0x232   : > { %9837 = vmatmul.mubr.msk.f32.gmra.mrb[18].mxu0 %vm333_vm1, %v13607_v42 }
 0x233   : > { %9839 = vmatprep.mubr.msk.f32.mxu0 %vm333_vm1, %v13586_v48  ;;  %v10429_v48 = vpack.c.bf16 %v4174_v46, %v4173_v45 }
 0x236   : > { %9840 = vmatmul.mubr.msk.f32.gmra.mrb[20].mxu0 %vm333_vm1, %v13587_v36 }
 0x237   : > { %9842 = vmatprep.mubr.msk.f32.mxu0 %vm333_vm1, %v13608_v52 }
 0x23a   : > { %9843 = vmatmul.mubr.msk.f32.gmra.mrb[22].mxu0 %vm333_vm1, %v13589_v33 }
 0x23b   : > { %9845 = vmatprep.mubr.msk.f32.mxu0 %vm333_vm1, %v13590_v43 }
 0x23e   : > { %9846 = vmatmul.mubr.msk.f32.gmra.mrb[24].mxu0 %vm333_vm1, %v11738_v39  ;;  %v13610_v39 = vmov 0.0  }
 0x23f   : > { %9848 = vmatprep.mubr.msk.f32.mxu0 %vm333_vm1, %v13609_v53  ;;  %4056 = vst.msk [vmem:[#allocation3 + $0x20] sm:$0xff] %vm4050_vm3, %v13610_v39  ;;  %4051 = vst.msk [vmem:[#allocation3] sm:$0xff] %vm4050_vm3, %v13610_v39 }
 0x240   : > { %4052 = vst.msk [vmem:[#allocation3 + $0x8] sm:$0xff] %vm4050_vm3, %v13610_v39  ;;  %4055 = vst.msk [vmem:[#allocation3 + $0x18] sm:$0xff] %vm4050_vm3, %v13610_v39 }
 0x241   : > { %4058 = vst.msk [vmem:[#allocation3 + $0x30] sm:$0xff] %vm4050_vm3, %v13610_v39  ;;  %4059 = vst.msk [vmem:[#allocation3 + $0x38] sm:$0xff] %vm4050_vm3, %v13610_v39 }
 0x242   : > { %9849 = vmatmul.mubr.msk.f32.gmra.mrb[26].mxu0 %vm333_vm1, %v11752_v41  ;;  %4061 = vst.msk [vmem:[#allocation3 + $0x48] sm:$0xff] %vm4050_vm3, %v13610_v39  ;;  %4062 = vst.msk [vmem:[#allocation3 + $0x50] sm:$0xff] %vm4050_vm3, %v13610_v39 }
 0x243   : > { %9851 = vmatprep.mubr.msk.f32.mxu0 %vm333_vm1, %v11966_v47  ;;  %4064 = vst.msk [vmem:[#allocation3 + $0x60] sm:$0xff] %vm4050_vm3, %v13610_v39  ;;  %4065 = vst.msk [vmem:[#allocation3 + $0x68] sm:$0xff] %vm4050_vm3, %v13610_v39  ;;  %v12313_v47 = vpop.f32.mrb[10].mxu1 }
 0x244   : > { %4067 = vst.msk [vmem:[#allocation3 + $0x78] sm:$0xff] %vm4050_vm3, %v13610_v39  ;;  %4068 = vst.msk [vmem:[#allocation3 + $0x80] sm:$0xff] %vm4050_vm3, %v13610_v39  ;;  %v12315_v36 = vpop.f32.mrb[11].mxu1 }
 0x245   : > { %4070 = vst.msk [vmem:[#allocation3 + $0x90] sm:$0xff] %vm4050_vm3, %v13610_v39  ;;  %4071 = vst.msk [vmem:[#allocation3 + $0x98] sm:$0xff] %vm4050_vm3, %v13610_v39 }
 0x246   : > { %9852 = vmatmul.mubr.msk.f32.gmra.mrb[28].mxu0 %vm333_vm1, %v11972_v35  ;;  %4073 = vst.msk [vmem:[#allocation3 + $0xa8] sm:$0xff] %vm4050_vm3, %v13610_v39  ;;  %4074 = vst.msk [vmem:[#allocation3 + $0xb0] sm:$0xff] %vm4050_vm3, %v13610_v39  ;;  %v12317_v35 = vpop.f32.mrb[12].mxu1 }
 0x247   : > { %9854 = vmatprep.mubr.msk.f32.mxu0 %vm333_vm1, %v3619_v55  ;;  %4076 = vst.msk [vmem:[#allocation3 + $0xc0] sm:$0xff] %vm4050_vm3, %v13610_v39  ;;  %4077 = vst.msk [vmem:[#allocation3 + $0xc8] sm:$0xff] %vm4050_vm3, %v13610_v39  ;;  %v4175_v41 = vld [vmem:[#allocation3 + $0x1] sm:$0xff]  ;;  %v12319_v33 = vpop.f32.mrb[13].mxu1 }
 0x248   : > { %4079 = vst.msk [vmem:[#allocation3 + $0xd8] sm:$0xff] %vm4050_vm3, %v13610_v39  ;;  %4080 = vst.msk [vmem:[#allocation3 + $0xe0] sm:$0xff] %vm4050_vm3, %v13610_v39  ;;  %9865 = vmatprep.mubr.msk.f32.mxu1 %vm4050_vm3, %v4175_v41  ;;  %v12321_v43 = vpop.f32.mrb[14].mxu1 }
 0x249   : > { %4082 = vst.msk [vmem:[#allocation3 + $0xf0] sm:$0xff] %vm4050_vm3, %v13610_v39  ;;  %4083 = vst.msk [vmem:[#allocation3 + $0xf8] sm:$0xff] %vm4050_vm3, %v13610_v39  ;;  %v12323_v57 = vpop.f32.mrb[15].mxu1 }
 0x24a   : > { %9855 = vmatmul.mubr.msk.f32.gmra.mrb[30].mxu0 %vm333_vm1, %v3620_v22  ;;  %4085 = vst.msk [vmem:[#allocation3 + $0x108] sm:$0xff] %vm4050_vm3, %v13610_v39  ;;  %4086 = vst.msk [vmem:[#allocation3 + $0x110] sm:$0xff] %vm4050_vm3, %v13610_v39 }
 0x24b   : > { %4088 = vst.msk [vmem:[#allocation3 + $0x120] sm:$0xff] %vm4050_vm3, %v13610_v39  ;;  %4089 = vst.msk [vmem:[#allocation3 + $0x128] sm:$0xff] %vm4050_vm3, %v13610_v39 }
 0x24c   : > { %4091 = vst.msk [vmem:[#allocation3 + $0x138] sm:$0xff] %vm4050_vm3, %v13610_v39  ;;  %4092 = vst.msk [vmem:[#allocation3 + $0x140] sm:$0xff] %vm4050_vm3, %v13610_v39 }
 0x24d   : > { %4094 = vst.msk [vmem:[#allocation3 + $0x150] sm:$0xff] %vm4050_vm3, %v13610_v39  ;;  %4095 = vst.msk [vmem:[#allocation3 + $0x158] sm:$0xff] %vm4050_vm3, %v13610_v39 }
 0x24e   : > { %4097 = vst.msk [vmem:[#allocation3 + $0x168] sm:$0xff] %vm4050_vm3, %v13610_v39  ;;  %4098 = vst.msk [vmem:[#allocation3 + $0x170] sm:$0xff] %vm4050_vm3, %v13610_v39 }
 0x24f   : > { %4100 = vst.msk [vmem:[#allocation3 + $0x180] sm:$0xff] %vm4050_vm3, %v13610_v39  ;;  %4101 = vst.msk [vmem:[#allocation3 + $0x188] sm:$0xff] %vm4050_vm3, %v13610_v39 }
 0x250   : > { %4103 = vst.msk [vmem:[#allocation3 + $0x198] sm:$0xff] %vm4050_vm3, %v13610_v39  ;;  %4104 = vst.msk [vmem:[#allocation3 + $0x1a0] sm:$0xff] %vm4050_vm3, %v13610_v39 }
 0x251   : > { %4057 = vst.msk [vmem:[#allocation3 + $0x28] sm:$0x3] %vm4053_vm4, %v13610_v39  ;;  %4054 = vst.msk [vmem:[#allocation3 + $0x10] sm:$0x3] %vm4053_vm4, %v13610_v39 }
 0x252   : > { %4060 = vst.msk [vmem:[#allocation3 + $0x40] sm:$0x3] %vm4053_vm4, %v13610_v39  ;;  %4063 = vst.msk [vmem:[#allocation3 + $0x58] sm:$0x3] %vm4053_vm4, %v13610_v39 }
 0x253   : > { %4066 = vst.msk [vmem:[#allocation3 + $0x70] sm:$0x3] %vm4053_vm4, %v13610_v39  ;;  %4069 = vst.msk [vmem:[#allocation3 + $0x88] sm:$0x3] %vm4053_vm4, %v13610_v39 }
 0x254   : > { %4072 = vst.msk [vmem:[#allocation3 + $0xa0] sm:$0x3] %vm4053_vm4, %v13610_v39  ;;  %4075 = vst.msk [vmem:[#allocation3 + $0xb8] sm:$0x3] %vm4053_vm4, %v13610_v39 }
 0x255   : > { %4078 = vst.msk [vmem:[#allocation3 + $0xd0] sm:$0x3] %vm4053_vm4, %v13610_v39  ;;  %4081 = vst.msk [vmem:[#allocation3 + $0xe8] sm:$0x3] %vm4053_vm4, %v13610_v39 }
 0x256   : > { %4084 = vst.msk [vmem:[#allocation3 + $0x100] sm:$0x3] %vm4053_vm4, %v13610_v39  ;;  %4087 = vst.msk [vmem:[#allocation3 + $0x118] sm:$0x3] %vm4053_vm4, %v13610_v39 }
 0x257   : > { %4090 = vst.msk [vmem:[#allocation3 + $0x130] sm:$0x3] %vm4053_vm4, %v13610_v39  ;;  %4093 = vst.msk [vmem:[#allocation3 + $0x148] sm:$0x3] %vm4053_vm4, %v13610_v39 }
 0x258   : > { %4096 = vst.msk [vmem:[#allocation3 + $0x160] sm:$0x3] %vm4053_vm4, %v13610_v39  ;;  %4099 = vst.msk [vmem:[#allocation3 + $0x178] sm:$0x3] %vm4053_vm4, %v13610_v39  ;;  %v4176_v23 = vld [vmem:[#allocation3 + $0x9] sm:$0xff] }
 0x259   : > { %4102 = vst.msk [vmem:[#allocation3 + $0x190] sm:$0x3] %vm4053_vm4, %v13610_v39  ;;  %4105 = vst.msk [vmem:[#allocation3 + $0x1a8] sm:$0x3] %vm4053_vm4, %v13610_v39  ;;  %9866 = vmatmul.mubr.msk.f32.vlgmr.msra.gmra.mrb[16].mxu1 %vm4050_vm3, %v4176_v23 }
 0x25a   : > { %10428 = vmatpush3.bf16.msra.mxu1 %v10425_v27 }
 0x25b   : > { %10430 = vmatprep.subr.bf16.mxu1 %v10429_v48 }
 0x25e   : > { %10432 = vmatpush3.bf16.msra.mxu1 %v10429_v48 }
 0x25f   : > { %10434 = vmatprep.subr.bf16.mxu1 %v12331_v8 }
 0x2e1   : > { %v9811_v61 = vpop.f32.mrb[0].mxu0 }
 0x2e2   : > { %v3987_v62 = vadd.f32 %v9811_v61, %v12337_v60  ;;  %v3788_v63 = vpop.f32.mrb[1].mxu0 }
 0x2e3   : > { %v3986_v0 = vadd.f32 %v12337_v60, %v3788_v63 }
 0x2e4   : > { %v4019_v2 = vmax.f32 %v3987_v62, 0.0 }
 0x2e5   : > { %v4018_v5 = vmax.f32 %v3986_v0, 0.0  ;;  %v9814_v6 = vpop.f32.mrb[2].mxu0 }
 0x2e6   : > { %4108 = vst.msk [vmem:[#allocation3 + $0x21] sm:$0xff] %vm4050_vm3, %v4019_v2  ;;  %v3989_v7 = vadd.f32 %v9814_v6, %v12337_v60  ;;  %v3798_v9 = vpop.f32.mrb[3].mxu0 }
 0x2e7   : > { %4107 = vst.msk [vmem:[#allocation3 + $0x19] sm:$0xff] %vm4050_vm3, %v4018_v5  ;;  %v3988_v10 = vadd.f32 %v12337_v60, %v3798_v9 }
 0x2e8   : > { %v4021_v11 = vmax.f32 %v3989_v7, 0.0 }
 0x2e9   : > { %v4020_v12 = vmax.f32 %v3988_v10, 0.0  ;;  %v9817_v1 = vpop.f32.mrb[4].mxu0 }
 0x2ea   : > { %4110 = vst.msk [vmem:[#allocation3 + $0x39] sm:$0xff] %vm4050_vm3, %v4021_v11  ;;  %v3991_v49 = vadd.f32 %v9817_v1, %v12337_v60  ;;  %v3808_v50 = vpop.f32.mrb[5].mxu0 }
 0x2eb   : > { %4109 = vst.msk [vmem:[#allocation3 + $0x31] sm:$0xff] %vm4050_vm3, %v4020_v12  ;;  %v3990_v51 = vadd.f32 %v12337_v60, %v3808_v50 }
 0x2ec   : > { %v4023_v13 = vmax.f32 %v3991_v49, 0.0 }
 0x2ed   : > { %v4022_v14 = vmax.f32 %v3990_v51, 0.0  ;;  %v9820_v15 = vpop.f32.mrb[6].mxu0  ;;  %v12357_v28 = vld [vmem:[#allocation3 + $0x21] sm:$0xff] }
 0x2ee   : > { %4112 = vst.msk [vmem:[#allocation3 + $0x51] sm:$0xff] %vm4050_vm3, %v4023_v13  ;;  %v3993_v16 = vadd.f32 %v9820_v15, %v12337_v60  ;;  %v3818_v20 = vpop.f32.mrb[7].mxu0  ;;  %v12351_v21 = vld [vmem:[#allocation3 + $0x19] sm:$0xff] }
 0x2ef   : > { %4111 = vst.msk [vmem:[#allocation3 + $0x49] sm:$0xff] %vm4050_vm3, %v4022_v14  ;;  %v3992_v26 = vadd.f32 %v12337_v60, %v3818_v20  ;;  %9868 = vmatprep.mubr.msk.f32.mxu1 %vm4050_vm3, %v12351_v21 }
 0x2f0   : > { %v4025_v3 = vmax.f32 %v3993_v16, 0.0  ;;  %9869 = vmatmul.mubr.msk.f32.gmra.mrb[18].mxu1 %vm4050_vm3, %v12357_v28 }
 0x2f1   : > { %v4024_v30 = vmax.f32 %v3992_v26, 0.0  ;;  %v9823_v4 = vpop.f32.mrb[8].mxu0  ;;  %v12369_v52 = vld [vmem:[#allocation3 + $0x39] sm:$0xff] }
 0x2f2   : > { %4114 = vst.msk [vmem:[#allocation3 + $0x69] sm:$0xff] %vm4050_vm3, %v4025_v3  ;;  %v3995_v34 = vadd.f32 %v9823_v4, %v12337_v60  ;;  %v3828_v37 = vpop.f32.mrb[9].mxu0  ;;  %v12363_v40 = vld [vmem:[#allocation3 + $0x31] sm:$0xff] }
 0x2f3   : > { %4113 = vst.msk [vmem:[#allocation3 + $0x61] sm:$0xff] %vm4050_vm3, %v4024_v30  ;;  %v3994_v42 = vadd.f32 %v12337_v60, %v3828_v37  ;;  %9871 = vmatprep.mubr.msk.f32.mxu1 %vm4050_vm3, %v12363_v40 }
 0x2f4   : > { %v4027_v53 = vmax.f32 %v3995_v34, 0.0  ;;  %9872 = vmatmul.mubr.msk.f32.gmra.mrb[20].mxu1 %vm4050_vm3, %v12369_v52 }
 0x2f5   : > { %v4026_v55 = vmax.f32 %v3994_v42, 0.0  ;;  %v9826_v22 = vpop.f32.mrb[10].mxu0  ;;  %v12381_v25 = vld [vmem:[#allocation3 + $0x51] sm:$0xff] }
 0x2f6   : > { %4116 = vst.msk [vmem:[#allocation3 + $0x81] sm:$0xff] %vm4050_vm3, %v4027_v53  ;;  %v3997_v39 = vadd.f32 %v9826_v22, %v12337_v60  ;;  %v3838_v41 = vpop.f32.mrb[11].mxu0  ;;  %v12375_v23 = vld [vmem:[#allocation3 + $0x49] sm:$0xff] }
 0x2f7   : > { %4115 = vst.msk [vmem:[#allocation3 + $0x79] sm:$0xff] %vm4050_vm3, %v4026_v55  ;;  %v3996_v24 = vadd.f32 %v12337_v60, %v3838_v41  ;;  %9874 = vmatprep.mubr.msk.f32.mxu1 %vm4050_vm3, %v12375_v23 }
 0x2f8   : > { %v4029_v27 = vmax.f32 %v3997_v39, 0.0  ;;  %9875 = vmatmul.mubr.msk.f32.gmra.mrb[22].mxu1 %vm4050_vm3, %v12381_v25 }
 0x2f9   : > { %v4028_v45 = vmax.f32 %v3996_v24, 0.0  ;;  %v9829_v46 = vpop.f32.mrb[12].mxu0  ;;  %v12393_v62 = vld [vmem:[#allocation3 + $0x69] sm:$0xff] }
 0x2fa   : > { %4118 = vst.msk [vmem:[#allocation3 + $0x99] sm:$0xff] %vm4050_vm3, %v4029_v27  ;;  %v3999_v48 = vadd.f32 %v9829_v46, %v12337_v60  ;;  %v3848_v58 = vpop.f32.mrb[13].mxu0  ;;  %v12387_v59 = vld [vmem:[#allocation3 + $0x61] sm:$0xff] }
 0x2fb   : > { %4117 = vst.msk [vmem:[#allocation3 + $0x91] sm:$0xff] %vm4050_vm3, %v4028_v45  ;;  %v3998_v61 = vadd.f32 %v12337_v60, %v3848_v58  ;;  %9877 = vmatprep.mubr.msk.f32.mxu1 %vm4050_vm3, %v12387_v59 }
 0x2fc   : > { %v4031_v63 = vmax.f32 %v3999_v48, 0.0  ;;  %9878 = vmatmul.mubr.msk.f32.gmra.mrb[24].mxu1 %vm4050_vm3, %v12393_v62 }
 0x2fd   : > { %v4030_v0 = vmax.f32 %v3998_v61, 0.0  ;;  %v9832_v2 = vpop.f32.mrb[14].mxu0  ;;  %v12405_v10 = vld [vmem:[#allocation3 + $0x81] sm:$0xff] }
 0x2fe   : > { %4120 = vst.msk [vmem:[#allocation3 + $0xb1] sm:$0xff] %vm4050_vm3, %v4031_v63  ;;  %v4001_v5 = vadd.f32 %v9832_v2, %v12337_v60  ;;  %v3858_v6 = vpop.f32.mrb[15].mxu0  ;;  %v12399_v7 = vld [vmem:[#allocation3 + $0x79] sm:$0xff] }
 0x2ff   : > { %4119 = vst.msk [vmem:[#allocation3 + $0xa9] sm:$0xff] %vm4050_vm3, %v4030_v0  ;;  %v4000_v9 = vadd.f32 %v12337_v60, %v3858_v6  ;;  %9880 = vmatprep.mubr.msk.f32.mxu1 %vm4050_vm3, %v12399_v7 }
 0x300   : > { %v4033_v11 = vmax.f32 %v4001_v5, 0.0  ;;  %9881 = vmatmul.mubr.msk.f32.gmra.mrb[26].mxu1 %vm4050_vm3, %v12405_v10 }
 0x301   : > { %v4032_v12 = vmax.f32 %v4000_v9, 0.0  ;;  %v9835_v1 = vpop.f32.mrb[16].mxu0  ;;  %v12417_v14 = vld [vmem:[#allocation3 + $0x99] sm:$0xff] }
 0x302   : > { %4122 = vst.msk [vmem:[#allocation3 + $0xc9] sm:$0xff] %vm4050_vm3, %v4033_v11  ;;  %v10499_v49 = vadd.f32 %v9835_v1, %v12287_v29  ;;  %v3868_v50 = vpop.f32.mrb[17].mxu0  ;;  %v12411_v51 = vld [vmem:[#allocation3 + $0x91] sm:$0xff] }
 0x303   : > { %4121 = vst.msk [vmem:[#allocation3 + $0xc1] sm:$0xff] %vm4050_vm3, %v4032_v12  ;;  %v10500_v13 = vadd.f32 %v3868_v50, %v12289_v31  ;;  %9883 = vmatprep.mubr.msk.f32.mxu1 %vm4050_vm3, %v12411_v51 }
 0x304   : > { %v4003_v15 = vadd.f32 %v10499_v49, %v12337_v60  ;;  %9884 = vmatmul.mubr.msk.f32.gmra.mrb[28].mxu1 %vm4050_vm3, %v12417_v14 }
 0x305   : > { %v4002_v16 = vadd.f32 %v10500_v13, %v12337_v60  ;;  %v9838_v29 = vpop.f32.mrb[18].mxu0  ;;  %v12429_v34 = vld [vmem:[#allocation3 + $0xb1] sm:$0xff] }
 0x306   : > { %v4035_v20 = vmax.f32 %v4003_v15, 0.0  ;;  %v10501_v26 = vadd.f32 %v9838_v29, %v12291_v32  ;;  %v3878_v3 = vpop.f32.mrb[19].mxu0  ;;  %v12424_v30 = vld [vmem:[#allocation3 + $0xa9] sm:$0xff] }
 0x307   : > { %v4034_v31 = vmax.f32 %v4002_v16, 0.0  ;;  %v10502_v4 = vadd.f32 %v3878_v3, %v12293_v54  ;;  %9886 = vmatprep.mubr.msk.f32.mxu1 %vm4050_vm3, %v12424_v30 }
 0x308   : > { %4124 = vst.msk [vmem:[#allocation3 + $0xe1] sm:$0xff] %vm4050_vm3, %v4035_v20  ;;  %v4005_v37 = vadd.f32 %v10501_v26, %v12337_v60  ;;  %9887 = vmatmul.mubr.msk.f32.gmra.mrb[30].mxu1 %vm4050_vm3, %v12429_v34 }
 0x309   : > { %4123 = vst.msk [vmem:[#allocation3 + $0xd9] sm:$0xff] %vm4050_vm3, %v4034_v31  ;;  %v4004_v32 = vadd.f32 %v10502_v4, %v12337_v60  ;;  %v9841_v42 = vpop.f32.mrb[20].mxu0  ;;  %v12443_v24 = vld [vmem:[#allocation3 + $0xc9] sm:$0xff] }
 0x30a   : > { %v4037_v53 = vmax.f32 %v4005_v37, 0.0  ;;  %v10503_v54 = vadd.f32 %v9841_v42, %v12295_v56  ;;  %v3888_v55 = vpop.f32.mrb[21].mxu0  ;;  %v12438_v22 = vld [vmem:[#allocation3 + $0xc1] sm:$0xff] }
 0x30b   : > { %v4036_v39 = vmax.f32 %v4004_v32, 0.0  ;;  %v10504_v41 = vadd.f32 %v3888_v55, %v12297_v17  ;;  %9889 = vmatprep.mubr.msk.f32.mxu1 %vm4050_vm3, %v12438_v22 }
 0x30c   : > { %4126 = vst.msk [vmem:[#allocation3 + $0xf9] sm:$0xff] %vm4050_vm3, %v4037_v53  ;;  %v4007_v27 = vadd.f32 %v10503_v54, %v12337_v60  ;;  %9890 = vmatmul.mubr.msk.f32.gmra.mrb[32].mxu1 %vm4050_vm3, %v12443_v24 }
 0x30d   : > { %4125 = vst.msk [vmem:[#allocation3 + $0xf1] sm:$0xff] %vm4050_vm3, %v4036_v39  ;;  %v4006_v56 = vadd.f32 %v10504_v41, %v12337_v60  ;;  %v9844_v45 = vpop.f32.mrb[22].mxu0 }
 0x30e   : > { %v4039_v46 = vmax.f32 %v4007_v27, 0.0  ;;  %v10505_v17 = vadd.f32 %v9844_v45, %v12299_v18  ;;  %v3898_v48 = vpop.f32.mrb[23].mxu0 }
 0x30f   : > { %v4038_v58 = vmax.f32 %v4006_v56, 0.0  ;;  %v10506_v61 = vadd.f32 %v3898_v48, %v12301_v19  ;;  %v12461_v6 = vld [vmem:[#allocation3 + $0xe1] sm:$0xff] }
 0x310   : > { %4128 = vst.msk [vmem:[#allocation3 + $0x111] sm:$0xff] %vm4050_vm3, %v4039_v46  ;;  %v4009_v63 = vadd.f32 %v10505_v17, %v12337_v60  ;;  %v12455_v0 = vld [vmem:[#allocation3 + $0xd9] sm:$0xff] }
 0x311   : > { %4127 = vst.msk [vmem:[#allocation3 + $0x109] sm:$0xff] %vm4050_vm3, %v4038_v58  ;;  %v4008_v2 = vadd.f32 %v10506_v61, %v12337_v60  ;;  %v9847_v5 = vpop.f32.mrb[24].mxu0  ;;  %9892 = vmatprep.mubr.msk.f32.mxu1 %vm4050_vm3, %v12455_v0 }
 0x312   : > { %v4041_v18 = vmax.f32 %v4009_v63, 0.0  ;;  %v10507_v9 = vadd.f32 %v9847_v5, %v12303_v38  ;;  %v3908_v19 = vpop.f32.mrb[25].mxu0  ;;  %9893 = vmatmul.mubr.msk.f32.gmra.mrb[34].mxu1 %vm4050_vm3, %v12461_v6  ;;  %v4139_v5 = vld [vmem:[#allocation3] sm:$0xff] }
 0x313   : > { %v4040_v11 = vmax.f32 %v4008_v2, 0.0  ;;  %v10508_v12 = vadd.f32 %v3908_v19, %v12305_v44  ;;  %v12475_v38 = vld [vmem:[#allocation3 + $0xf9] sm:$0xff]  ;;  %v8463_v19 = vld [vmem:[%s13404_s5 + $0x58] sm:$0xff] }
 0x314   : > { %4130 = vst.msk [vmem:[#allocation3 + $0x129] sm:$0xff] %vm4050_vm3, %v4041_v18  ;;  %v4011_v1 = vadd.f32 %v10507_v9, %v12337_v60  ;;  %v12469_v49 = vld [vmem:[#allocation3 + $0xf1] sm:$0xff]  ;;  %v8462_v9 = vld [vmem:[%s13404_s5 + $0x50] sm:$0xff] }
 0x315   : > { %4129 = vst.msk [vmem:[#allocation3 + $0x121] sm:$0xff] %vm4050_vm3, %v4040_v11  ;;  %v4010_v50 = vadd.f32 %v10508_v12, %v12337_v60  ;;  %v9850_v13 = vpop.f32.mrb[26].mxu0  ;;  %9895 = vmatprep.mubr.msk.f32.mxu1 %vm4050_vm3, %v12469_v49  ;;  %v4140_v11 = vld [vmem:[#allocation3 + $0x8] sm:$0xff]  ;;  %v10437_v12 = vpack.c.bf16 %v8463_v19, %v8462_v9 }
 0x316   : > { %v4043_v15 = vmax.f32 %v4011_v1, 0.0  ;;  %v10509_v16 = vadd.f32 %v9850_v13, %v12313_v47  ;;  %v3918_v44 = vpop.f32.mrb[27].mxu0  ;;  %9896 = vmatmul.mubr.msk.f32.gmra.mrb[36].mxu1 %vm4050_vm3, %v12475_v38  ;;  %v8496_v1 = vld [vmem:[%s13404_s5 + $0x60] sm:$0xff]  ;;  %v12553_v13 = vld [vmem:[#allocation3 + $0x18] sm:$0xff] }
 0x317   : > { %v4042_v29 = vmax.f32 %v4010_v50, 0.0  ;;  %v10510_v20 = vadd.f32 %v3918_v44, %v12315_v36  ;;  %v12489_v47 = vld [vmem:[#allocation3 + $0x111] sm:$0xff] }
 0x318   : > { %4132 = vst.msk [vmem:[#allocation3 + $0x141] sm:$0xff] %vm4050_vm3, %v4043_v15  ;;  %v4013_v26 = vadd.f32 %v10509_v16, %v12337_v60  ;;  %v12483_v3 = vld [vmem:[#allocation3 + $0x109] sm:$0xff]  ;;  %v8497_v50 = vld [vmem:[%s13404_s5 + $0x68] sm:$0xff]  ;;  %v12560_v16 = vld [vmem:[#allocation3 + $0x20] sm:$0xff] }
 0x319   : > { %4131 = vst.msk [vmem:[#allocation3 + $0x139] sm:$0xff] %vm4050_vm3, %v4042_v29  ;;  %v4012_v31 = vadd.f32 %v10510_v20, %v12337_v60  ;;  %v9853_v4 = vpop.f32.mrb[28].mxu0  ;;  %9898 = vmatprep.mubr.msk.f32.mxu1 %vm4050_vm3, %v12483_v3  ;;  %v12558_v15 = vpack.c.bf16 %v8497_v50, %v8496_v1  ;;  %v12564_v44 = vld [vmem:[#allocation3 + $0x30] sm:$0xff]  ;;  %v12573_v29 = vld [vmem:[#allocation3 + $0x48] sm:$0xff]  ;;  %v8498_v1 = vld [vmem:[%s13404_s5 + $0x70] sm:$0xff] }
 0x31a   : > { %v4045_v37 = vmax.f32 %v4013_v26, 0.0  ;;  %v10511_v32 = vadd.f32 %v9853_v4, %v12317_v35  ;;  %v3928_v36 = vpop.f32.mrb[29].mxu0  ;;  %9899 = vmatmul.mubr.msk.f32.gmra.mrb[38].mxu1 %vm4050_vm3, %v12489_v47  ;;  %v12577_v20 = vld [vmem:[#allocation3 + $0x50] sm:$0xff]  ;;  %v12581_v26 = vld [vmem:[#allocation3 + $0x60] sm:$0xff]  ;;  %v12589_v4 = vld [vmem:[#allocation3 + $0x78] sm:$0xff] }
 0x31b   : > { %v4044_v42 = vmax.f32 %v4012_v31, 0.0  ;;  %v10512_v53 = vadd.f32 %v3928_v36, %v12319_v33  ;;  %v12503_v35 = vld [vmem:[#allocation3 + $0x129] sm:$0xff]  ;;  %v12601_v36 = vld [vmem:[#allocation3 + $0x98] sm:$0xff] }
 0x31c   : > { %4134 = vst.msk [vmem:[#allocation3 + $0x159] sm:$0xff] %vm4050_vm3, %v4045_v37  ;;  %v4015_v54 = vadd.f32 %v10511_v32, %v12337_v60  ;;  %v12497_v55 = vld [vmem:[#allocation3 + $0x121] sm:$0xff]  ;;  %v12597_v32 = vld [vmem:[#allocation3 + $0x90] sm:$0xff] }
 0x31d   : > { %4133 = vst.msk [vmem:[#allocation3 + $0x151] sm:$0xff] %vm4050_vm3, %v4044_v42  ;;  %v4014_v39 = vadd.f32 %v10512_v53, %v12337_v60  ;;  %v9856_v41 = vpop.f32.mrb[30].mxu0  ;;  %9901 = vmatprep.mubr.msk.f32.mxu1 %vm4050_vm3, %v12497_v55  ;;  %v12585_v31 = vld [vmem:[#allocation3 + $0x68] sm:$0xff]  ;;  %v12593_v37 = vld [vmem:[#allocation3 + $0x80] sm:$0xff]  ;;  %v12609_v53 = vld [vmem:[#allocation3 + $0xb0] sm:$0xff] }
 0x31e   : > { %v4047_v27 = vmax.f32 %v4015_v54, 0.0  ;;  %v10513_v56 = vadd.f32 %v9856_v41, %v12321_v43  ;;  %v3938_v33 = vpop.f32.mrb[31].mxu0  ;;  %9902 = vmatmul.mubr.msk.f32.gmra.mrb[40].mxu1 %vm4050_vm3, %v12503_v35  ;;  %v12605_v42 = vld [vmem:[#allocation3 + $0xa8] sm:$0xff]  ;;  %v12613_v54 = vld [vmem:[#allocation3 + $0xc0] sm:$0xff]  ;;  %v12621_v41 = vld [vmem:[#allocation3 + $0xd8] sm:$0xff] }
 0x31f   : > { %v4046_v45 = vmax.f32 %v4014_v39, 0.0  ;;  %v10514_v46 = vadd.f32 %v3938_v33, %v12323_v57  ;;  %v12517_v43 = vld [vmem:[#allocation3 + $0x141] sm:$0xff]  ;;  %v12633_v33 = vld [vmem:[#allocation3 + $0xf8] sm:$0xff] }
 0x320   : > { %4136 = vst.msk [vmem:[#allocation3 + $0x171] sm:$0xff] %vm4050_vm3, %v4047_v27  ;;  %v4017_v17 = vadd.f32 %v10513_v56, %v12337_v60  ;;  %v12511_v48 = vld [vmem:[#allocation3 + $0x139] sm:$0xff]  ;;  %13611 = vst [vmem:[#allocation29_spill] sm:$0xff] %v12517_v43  ;;  %v12617_v39 = vld [vmem:[#allocation3 + $0xc8] sm:$0xff] }
 0x321   : > { %4135 = vst.msk [vmem:[#allocation3 + $0x169] sm:$0xff] %vm4050_vm3, %v4046_v45  ;;  %v4016_v58 = vadd.f32 %v10514_v46, %v12337_v60  ;;  %9904 = vmatprep.mubr.msk.f32.mxu1 %vm4050_vm3, %v12511_v48  ;;  %v12625_v27 = vld [vmem:[#allocation3 + $0xe0] sm:$0xff]  ;;  %v12629_v56 = vld [vmem:[#allocation3 + $0xf0] sm:$0xff]  ;;  %v12637_v45 = vld [vmem:[#allocation3 + $0x108] sm:$0xff] }
 0x322   : > { %v4049_v61 = vmax.f32 %v4017_v17, 0.0  ;;  %9905 = vmatmul.mubr.msk.f32.gmra.mrb[42].mxu1 %vm4050_vm3, %v12517_v43  ;;  %v12641_v46 = vld [vmem:[#allocation3 + $0x110] sm:$0xff]  ;;  %v12645_v17 = vld [vmem:[#allocation3 + $0x120] sm:$0xff]  ;;  %v8499_v50 = vld [vmem:[%s13404_s5 + $0x78] sm:$0xff] }
 0x323   : > { %v4048_v57 = vmax.f32 %v4016_v58, 0.0  ;;  %v12527_v60 = vld [vmem:[#allocation3 + $0x159] sm:$0xff]  ;;  %v12649_v58 = vld [vmem:[#allocation3 + $0x128] sm:$0xff] }
 0x324   : > { %4138 = vst.msk [vmem:[#allocation3 + $0x189] sm:$0xff] %vm4050_vm3, %v4049_v61  ;;  %v12522_v63 = vld [vmem:[#allocation3 + $0x151] sm:$0xff]  ;;  %13613 = vst [vmem:[#allocation5_spill] sm:$0xff] %v12527_v60  ;;  %v12691_v43 = vld [vmem:[#allocation3 + $0x1a] sm:$0xff] }
 0x325   : > { %13612 = vst [vmem:[#allocation4_spill] sm:$0xff] %v12522_v63  ;;  %4137 = vst.msk [vmem:[#allocation3 + $0x181] sm:$0xff] %vm4050_vm3, %v4048_v57  ;;  %9907 = vmatprep.mubr.msk.f32.mxu1 %vm4050_vm3, %v12522_v63  ;;  %v12653_v61 = vld [vmem:[#allocation3 + $0x138] sm:$0xff]  ;;  %v12657_v57 = vld [vmem:[#allocation3 + $0x140] sm:$0xff] }
 0x326   : > { %9908 = vmatmul.mubr.msk.f32.gmra.mrb[44].mxu1 %vm4050_vm3, %v12527_v60  ;;  %v12665_v9 = vld [vmem:[#allocation3 + $0x158] sm:$0xff]  ;;  %v8532_v60 = vld [vmem:[%s13404_s5 + $0x80] sm:$0xff] }
 0x327   : > { %v12535_v18 = vld [vmem:[#allocation3 + $0x171] sm:$0xff] }
 0x328   : > { %v12531_v2 = vld [vmem:[#allocation3 + $0x169] sm:$0xff]  ;;  %13615 = vst [vmem:[#allocation23_spill] sm:$0xff] %v12535_v18  ;;  %v8533_v63 = vld [vmem:[%s13404_s5 + $0x88] sm:$0xff] }
 0x329   : > { %13614 = vst [vmem:[#allocation6_spill] sm:$0xff] %v12531_v2  ;;  %9910 = vmatprep.mubr.msk.f32.mxu1 %vm4050_vm3, %v12531_v2  ;;  %v12669_v19 = vld [vmem:[#allocation3 + $0x168] sm:$0xff]  ;;  %v10445_v2 = vpack.c.bf16 %v8499_v50, %v8498_v1  ;;  %v12702_v50 = vld [vmem:[#allocation3 + $0x32] sm:$0xff] }
 0x32a   : > { %9911 = vmatmul.mubr.msk.f32.gmra.mrb[46].mxu1 %vm4050_vm3, %v12535_v18  ;;  %v4855_v18 = vld [vmem:[#allocation3 + $0xa] sm:$0xff]  ;;  %v12698_v1 = vld [vmem:[#allocation3 + $0x22] sm:$0xff]  ;;  %13616 = vst [vmem:[#allocation24_spill] sm:$0xff] %v12702_v50 }
 0x32b   : > { %9921 = vmatprep.mubr.msk.f32.mxu1 %vm4050_vm3, %v4139_v5  ;;  %v12661_v5 = vld [vmem:[#allocation3 + $0x150] sm:$0xff] }
 0x32e   : > { %9922 = vmatmul.mubr.msk.f32.vlgmr.msra.gmra.mrb[16].mxu1 %vm4050_vm3, %v4140_v11  ;;  %v4854_v11 = vld [vmem:[#allocation3 + $0x2] sm:$0xff] }
 0x32f   : > { %10436 = vmatpush3.bf16.msra.mxu1 %v12331_v8  ;;  %9924 = vmatprep.mubr.msk.f32.mxu1 %vm4050_vm3, %v12553_v13  ;;  %v12569_v8 = vld [vmem:[#allocation3 + $0x38] sm:$0xff] }
 0x330   : > { %10438 = vmatprep.subr.bf16.mxu1 %v10437_v12 }
 0x332   : > { %9925 = vmatmul.mubr.msk.f32.gmra.mrb[18].mxu1 %vm4050_vm3, %v12560_v16 }
 0x333   : > { %9927 = vmatprep.mubr.msk.f32.mxu1 %vm4050_vm3, %v12564_v44  ;;  %10440 = vmatpush3.bf16.msra.mxu1 %v10437_v12  ;;  %v12673_v12 = vld [vmem:[#allocation3 + $0x170] sm:$0xff] }
 0x334   : > { %10442 = vmatprep.subr.bf16.mxu1 %v12558_v15 }
 0x336   : > { %9928 = vmatmul.mubr.msk.f32.gmra.mrb[20].mxu1 %vm4050_vm3, %v12569_v8 }
 0x337   : > { %9930 = vmatprep.mubr.msk.f32.mxu1 %vm4050_vm3, %v12573_v29 }
 0x33a   : > { %9931 = vmatmul.mubr.msk.f32.gmra.mrb[22].mxu1 %vm4050_vm3, %v12577_v20 }
 0x33b   : > { %9933 = vmatprep.mubr.msk.f32.mxu1 %vm4050_vm3, %v12581_v26 }
 0x33e   : > { %9934 = vmatmul.mubr.msk.f32.gmra.mrb[24].mxu1 %vm4050_vm3, %v12585_v31 }
 0x33f   : > { %9936 = vmatprep.mubr.msk.f32.mxu1 %vm4050_vm3, %v12589_v4 }
 0x342   : > { %9937 = vmatmul.mubr.msk.f32.gmra.mrb[26].mxu1 %vm4050_vm3, %v12593_v37 }
 0x343   : > { %9939 = vmatprep.mubr.msk.f32.mxu1 %vm4050_vm3, %v12597_v32 }
 0x346   : > { %9940 = vmatmul.mubr.msk.f32.gmra.mrb[28].mxu1 %vm4050_vm3, %v12601_v36 }
 0x347   : > { %9942 = vmatprep.mubr.msk.f32.mxu1 %vm4050_vm3, %v12605_v42 }
 0x34a   : > { %9943 = vmatmul.mubr.msk.f32.gmra.mrb[30].mxu1 %vm4050_vm3, %v12609_v53 }
 0x34b   : > { %9945 = vmatprep.mubr.msk.f32.mxu1 %vm4050_vm3, %v12613_v54 }
 0x34e   : > { %9946 = vmatmul.mubr.msk.f32.gmra.mrb[32].mxu1 %vm4050_vm3, %v12617_v39 }
 0x34f   : > { %9948 = vmatprep.mubr.msk.f32.mxu1 %vm4050_vm3, %v12621_v41 }
 0x352   : > { %9949 = vmatmul.mubr.msk.f32.gmra.mrb[34].mxu1 %vm4050_vm3, %v12625_v27 }
 0x353   : > { %9951 = vmatprep.mubr.msk.f32.mxu1 %vm4050_vm3, %v12629_v56 }
 0x356   : > { %9952 = vmatmul.mubr.msk.f32.gmra.mrb[36].mxu1 %vm4050_vm3, %v12633_v33 }
 0x357   : > { %9954 = vmatprep.mubr.msk.f32.mxu1 %vm4050_vm3, %v12637_v45 }
 0x35a   : > { %9955 = vmatmul.mubr.msk.f32.gmra.mrb[38].mxu1 %vm4050_vm3, %v12641_v46 }
 0x35b   : > { %9957 = vmatprep.mubr.msk.f32.mxu1 %vm4050_vm3, %v12645_v17 }
 0x35e   : > { %9958 = vmatmul.mubr.msk.f32.gmra.mrb[40].mxu1 %vm4050_vm3, %v12649_v58 }
 0x35f   : > { %9960 = vmatprep.mubr.msk.f32.mxu1 %vm4050_vm3, %v12653_v61 }
 0x362   : > { %9961 = vmatmul.mubr.msk.f32.gmra.mrb[42].mxu1 %vm4050_vm3, %v12657_v57 }
 0x363   : > { %9963 = vmatprep.mubr.msk.f32.mxu1 %vm4050_vm3, %v12661_v5 }
 0x366   : > { %9964 = vmatmul.mubr.msk.f32.gmra.mrb[44].mxu1 %vm4050_vm3, %v12665_v9 }
 0x367   : > { %9966 = vmatprep.mubr.msk.f32.mxu1 %vm4050_vm3, %v12669_v19 }
 0x36a   : > { %9967 = vmatmul.mubr.msk.f32.gmra.mrb[46].mxu1 %vm4050_vm3, %v12673_v12 }
 0x36b   : > { %9977 = vmatprep.mubr.msk.f32.mxu1 %vm4050_vm3, %v4854_v11  ;;  %v12696_v11 = vpack.c.bf16 %v8533_v63, %v8532_v60  ;;  %v12711_v63 = vld [vmem:[#allocation3 + $0x4a] sm:$0xff]  ;;  %v12715_v60 = vld [vmem:[#allocation3 + $0x52] sm:$0xff] }
 0x36c   : > { %13618 = vst [vmem:[#allocation27_spill] sm:$0xff] %v12711_v63  ;;  %13619 = vst [vmem:[#allocation30_spill] sm:$0xff] %v12715_v60 }
 0x36e   : > { %9978 = vmatmul.mubr.msk.f32.vlgmr.msra.gmra.mrb[16].mxu1 %vm4050_vm3, %v4855_v18  ;;  %v12707_v18 = vld [vmem:[#allocation3 + $0x3a] sm:$0xff] }
 0x36f   : > { %10444 = vmatpush3.bf16.msra.mxu1 %v12558_v15  ;;  %9980 = vmatprep.mubr.msk.f32.mxu1 %vm4050_vm3, %v12691_v43  ;;  %13617 = vst [vmem:[#allocation26_spill] sm:$0xff] %v12707_v18  ;;  %v12719_v15 = vld [vmem:[#allocation3 + $0x62] sm:$0xff] }
 0x370   : > { %10446 = vmatprep.subr.bf16.mxu1 %v10445_v2  ;;  %13620 = vst [vmem:[#allocation31_spill] sm:$0xff] %v12719_v15 }
 0x372   : > { %9981 = vmatmul.mubr.msk.f32.gmra.mrb[18].mxu1 %vm4050_vm3, %v12698_v1 }
 0x373   : > { %9983 = vmatprep.mubr.msk.f32.mxu1 %vm4050_vm3, %v12702_v50  ;;  %10448 = vmatpush3.bf16.msra.mxu1 %v10445_v2  ;;  %v12723_v2 = vld [vmem:[#allocation3 + $0x6a] sm:$0xff]  ;;  %v8569_v50 = vld [vmem:[%s13404_s5 + $0xa8] sm:$0xff] }
 0x374   : > { %10450 = vmatprep.subr.bf16.mxu1 %v12696_v11  ;;  %13621 = vst [vmem:[#allocation7_spill] sm:$0xff] %v12723_v2 }
 0x376   : > { %9984 = vmatmul.mubr.msk.f32.gmra.mrb[20].mxu1 %vm4050_vm3, %v12707_v18  ;;  %v12727_v18 = vld [vmem:[#allocation3 + $0x7a] sm:$0xff] }
 0x377   : > { %9986 = vmatprep.mubr.msk.f32.mxu1 %vm4050_vm3, %v12711_v63  ;;  %13622 = vst [vmem:[#allocation8_spill] sm:$0xff] %v12727_v18  ;;  %v12731_v63 = vld [vmem:[#allocation3 + $0x82] sm:$0xff] }
 0x378   : > { %13623 = vst [vmem:[#allocation9_spill] sm:$0xff] %v12731_v63 }
 0x37a   : > { %9987 = vmatmul.mubr.msk.f32.gmra.mrb[22].mxu1 %vm4050_vm3, %v12715_v60  ;;  %v12735_v60 = vld [vmem:[#allocation3 + $0x92] sm:$0xff] }
 0x37b   : > { %9989 = vmatprep.mubr.msk.f32.mxu1 %vm4050_vm3, %v12719_v15  ;;  %13624 = vst [vmem:[#allocation10_spill] sm:$0xff] %v12735_v60  ;;  %v12739_v15 = vld [vmem:[#allocation3 + $0x9a] sm:$0xff] }
 0x37c   : > { %13625 = vst [vmem:[#allocation11_spill] sm:$0xff] %v12739_v15 }
 0x37e   : > { %9990 = vmatmul.mubr.msk.f32.gmra.mrb[24].mxu1 %vm4050_vm3, %v12723_v2  ;;  %v12743_v2 = vld [vmem:[#allocation3 + $0xaa] sm:$0xff] }
 0x37f   : > { %9992 = vmatprep.mubr.msk.f32.mxu1 %vm4050_vm3, %v12727_v18  ;;  %13626 = vst [vmem:[#allocation12_spill] sm:$0xff] %v12743_v2  ;;  %v12747_v18 = vld [vmem:[#allocation3 + $0xb2] sm:$0xff] }
 0x380   : > { %13627 = vst [vmem:[#allocation13_spill] sm:$0xff] %v12747_v18 }
 0x382   : > { %9993 = vmatmul.mubr.msk.f32.gmra.mrb[26].mxu1 %vm4050_vm3, %v12731_v63  ;;  %v12751_v63 = vld [vmem:[#allocation3 + $0xc2] sm:$0xff] }
 0x383   : > { %9995 = vmatprep.mubr.msk.f32.mxu1 %vm4050_vm3, %v12735_v60  ;;  %13628 = vst [vmem:[#allocation14_spill] sm:$0xff] %v12751_v63  ;;  %v12755_v60 = vld [vmem:[#allocation3 + $0xca] sm:$0xff] }
 0x384   : > { %13629 = vst [vmem:[#allocation15_spill] sm:$0xff] %v12755_v60 }
 0x386   : > { %9996 = vmatmul.mubr.msk.f32.gmra.mrb[28].mxu1 %vm4050_vm3, %v12739_v15  ;;  %v12759_v15 = vld [vmem:[#allocation3 + $0xda] sm:$0xff] }
 0x387   : > { %9998 = vmatprep.mubr.msk.f32.mxu1 %vm4050_vm3, %v12743_v2  ;;  %13630 = vst [vmem:[#allocation16_spill] sm:$0xff] %v12759_v15  ;;  %v12763_v2 = vld [vmem:[#allocation3 + $0xe2] sm:$0xff] }
 0x388   : > { %13631 = vst [vmem:[#allocation17_spill] sm:$0xff] %v12763_v2 }
 0x38a   : > { %9999 = vmatmul.mubr.msk.f32.gmra.mrb[30].mxu1 %vm4050_vm3, %v12747_v18  ;;  %v12767_v18 = vld [vmem:[#allocation3 + $0xf2] sm:$0xff] }
 0x38b   : > { %10001 = vmatprep.mubr.msk.f32.mxu1 %vm4050_vm3, %v12751_v63  ;;  %13632 = vst [vmem:[#allocation18_spill] sm:$0xff] %v12767_v18  ;;  %v12771_v63 = vld [vmem:[#allocation3 + $0xfa] sm:$0xff] }
 0x38c   : > { %13633 = vst [vmem:[#allocation19_spill] sm:$0xff] %v12771_v63 }
 0x38e   : > { %10002 = vmatmul.mubr.msk.f32.gmra.mrb[32].mxu1 %vm4050_vm3, %v12755_v60  ;;  %v12775_v60 = vld [vmem:[#allocation3 + $0x10a] sm:$0xff] }
 0x38f   : > { %10004 = vmatprep.mubr.msk.f32.mxu1 %vm4050_vm3, %v12759_v15  ;;  %13634 = vst [vmem:[#allocation20_spill] sm:$0xff] %v12775_v60  ;;  %v12779_v15 = vld [vmem:[#allocation3 + $0x112] sm:$0xff] }
 0x390   : > { %13635 = vst [vmem:[#allocation21_spill] sm:$0xff] %v12779_v15 }
 0x392   : > { %10005 = vmatmul.mubr.msk.f32.gmra.mrb[34].mxu1 %vm4050_vm3, %v12763_v2  ;;  %v12783_v2 = vld [vmem:[#allocation3 + $0x122] sm:$0xff] }
 0x393   : > { %10007 = vmatprep.mubr.msk.f32.mxu1 %vm4050_vm3, %v12767_v18  ;;  %13636 = vst [vmem:[#allocation22_spill] sm:$0xff] %v12783_v2  ;;  %v12787_v18 = vld [vmem:[#allocation3 + $0x12a] sm:$0xff] }
 0x394   : > { %13637 = vst [vmem:[#allocation25_spill] sm:$0xff] %v12787_v18 }
 0x396   : > { %10008 = vmatmul.mubr.msk.f32.gmra.mrb[36].mxu1 %vm4050_vm3, %v12771_v63  ;;  %v12791_v63 = vld [vmem:[#allocation3 + $0x13a] sm:$0xff] }
 0x397   : > { %10010 = vmatprep.mubr.msk.f32.mxu1 %vm4050_vm3, %v12775_v60  ;;  %13638 = vst [vmem:[#allocation28_spill] sm:$0xff] %v12791_v63  ;;  %v12795_v60 = vld [vmem:[#allocation3 + $0x142] sm:$0xff] }
 0x398   : > { %13639 = vst [vmem:[#allocation32_spill] sm:$0xff] %v12795_v60 }
 0x39a   : > { %10011 = vmatmul.mubr.msk.f32.gmra.mrb[38].mxu1 %vm4050_vm3, %v12779_v15  ;;  %v12799_v15 = vld [vmem:[#allocation3 + $0x152] sm:$0xff] }
 0x39b   : > { %10013 = vmatprep.mubr.msk.f32.mxu1 %vm4050_vm3, %v12783_v2  ;;  %13640 = vst [vmem:[#allocation33_spill] sm:$0xff] %v12799_v15  ;;  %v12803_v2 = vld [vmem:[#allocation3 + $0x15a] sm:$0xff] }
 0x39c   : > { %13641 = vst [vmem:[#allocation34_spill] sm:$0xff] %v12803_v2 }
 0x39e   : > { %10014 = vmatmul.mubr.msk.f32.gmra.mrb[40].mxu1 %vm4050_vm3, %v12787_v18  ;;  %v12807_v18 = vld [vmem:[#allocation3 + $0x16a] sm:$0xff] }
 0x39f   : > { %10016 = vmatprep.mubr.msk.f32.mxu1 %vm4050_vm3, %v12791_v63  ;;  %13642 = vst [vmem:[#allocation35_spill] sm:$0xff] %v12807_v18  ;;  %v12811_v63 = vld [vmem:[#allocation3 + $0x172] sm:$0xff] }
 0x3a0   : > { %13643 = vst [vmem:[#allocation36_spill] sm:$0xff] %v12811_v63 }
 0x3a2   : > { %10017 = vmatmul.mubr.msk.f32.gmra.mrb[42].mxu1 %vm4050_vm3, %v12795_v60  ;;  %v8534_v60 = vld [vmem:[%s13404_s5 + $0x90] sm:$0xff] }
 0x3a3   : > { %10019 = vmatprep.mubr.msk.f32.mxu1 %vm4050_vm3, %v12799_v15  ;;  %v8535_v15 = vld [vmem:[%s13404_s5 + $0x98] sm:$0xff] }
 0x3a6   : > { %10020 = vmatmul.mubr.msk.f32.gmra.mrb[44].mxu1 %vm4050_vm3, %v12803_v2  ;;  %v10453_v2 = vpack.c.bf16 %v8535_v15, %v8534_v60  ;;  %v8604_v60 = vld [vmem:[%s13404_s5 + $0xc0] sm:$0xff]  ;;  %v8605_v15 = vld [vmem:[%s13404_s5 + $0xc8] sm:$0xff] }
 0x3a7   : > { %10022 = vmatprep.mubr.msk.f32.mxu1 %vm4050_vm3, %v12807_v18  ;;  %v8568_v18 = vld [vmem:[%s13404_s5 + $0xa0] sm:$0xff] }
 0x3aa   : > { %10023 = vmatmul.mubr.msk.f32.gmra.mrb[46].mxu1 %vm4050_vm3, %v12811_v63  ;;  %v10457_v63 = vpack.c.bf16 %v8569_v50, %v8568_v18  ;;  %v8571_v50 = vld [vmem:[%s13404_s5 + $0xb8] sm:$0xff] }
 0x3ab   : > { %10033 = vmatprep.mubr.msk.f32.mxu1 %vm4050_vm3, %v12553_v13  ;;  %v12888_v13 = vld [vmem:[#allocation3 + $0x180] sm:$0xff] }
 0x3ae   : > { %10034 = vmatmul.mubr.msk.f32.vlgmr.msra.gmra.mrb[16].mxu1 %vm4050_vm3, %v12560_v16  ;;  %v12892_v16 = vld [vmem:[#allocation3 + $0x188] sm:$0xff] }
 0x3af   : > { %10452 = vmatpush3.bf16.msra.mxu1 %v12696_v11  ;;  %10036 = vmatprep.mubr.msk.f32.mxu1 %vm4050_vm3, %v12564_v44  ;;  %v8570_v11 = vld [vmem:[%s13404_s5 + $0xb0] sm:$0xff] }
 0x3b0   : > { %10454 = vmatprep.subr.bf16.mxu1 %v10453_v2  ;;  %v10461_v18 = vpack.c.bf16 %v8571_v50, %v8570_v11  ;;  %v13662_v11 = vld [vmem:[#allocation15_spill] sm:$0xff]  ;;  %v13663_v50 = vld [vmem:[#allocation16_spill] sm:$0xff] }
 0x3b2   : > { %10037 = vmatmul.mubr.msk.f32.gmra.mrb[18].mxu1 %vm4050_vm3, %v12569_v8 }
 0x3b3   : > { %10039 = vmatprep.mubr.msk.f32.mxu1 %vm4050_vm3, %v12573_v29  ;;  %10456 = vmatpush3.bf16.msra.mxu1 %v10453_v2  ;;  %v10465_v2 = vpack.c.bf16 %v8605_v15, %v8604_v60  ;;  %v13665_v60 = vld [vmem:[#allocation18_spill] sm:$0xff]  ;;  %v13666_v15 = vld [vmem:[#allocation19_spill] sm:$0xff] }
 0x3b4   : > { %10458 = vmatprep.subr.bf16.mxu1 %v10457_v63 }
 0x3b6   : > { %10040 = vmatmul.mubr.msk.f32.gmra.mrb[20].mxu1 %vm4050_vm3, %v12577_v20 }
 0x3b7   : > { %10042 = vmatprep.mubr.msk.f32.mxu1 %vm4050_vm3, %v12581_v26 }
 0x3ba   : > { %10043 = vmatmul.mubr.msk.f32.gmra.mrb[22].mxu1 %vm4050_vm3, %v12585_v31 }
 0x3bb   : > { %10045 = vmatprep.mubr.msk.f32.mxu1 %vm4050_vm3, %v12589_v4 }
 0x3be   : > { %10046 = vmatmul.mubr.msk.f32.gmra.mrb[24].mxu1 %vm4050_vm3, %v12593_v37 }
 0x3bf   : > { %10048 = vmatprep.mubr.msk.f32.mxu1 %vm4050_vm3, %v12597_v32 }
 0x3c2   : > { %10049 = vmatmul.mubr.msk.f32.gmra.mrb[26].mxu1 %vm4050_vm3, %v12601_v36 }
 0x3c3   : > { %10051 = vmatprep.mubr.msk.f32.mxu1 %vm4050_vm3, %v12605_v42 }
 0x3c6   : > { %10052 = vmatmul.mubr.msk.f32.gmra.mrb[28].mxu1 %vm4050_vm3, %v12609_v53 }
 0x3c7   : > { %10054 = vmatprep.mubr.msk.f32.mxu1 %vm4050_vm3, %v12613_v54 }
 0x3ca   : > { %10055 = vmatmul.mubr.msk.f32.gmra.mrb[30].mxu1 %vm4050_vm3, %v12617_v39 }
 0x3cb   : > { %10057 = vmatprep.mubr.msk.f32.mxu1 %vm4050_vm3, %v12621_v41 }
 0x3ce   : > { %10058 = vmatmul.mubr.msk.f32.gmra.mrb[32].mxu1 %vm4050_vm3, %v12625_v27 }
 0x3cf   : > { %10060 = vmatprep.mubr.msk.f32.mxu1 %vm4050_vm3, %v12629_v56 }
 0x3d2   : > { %10061 = vmatmul.mubr.msk.f32.gmra.mrb[34].mxu1 %vm4050_vm3, %v12633_v33 }
 0x3d3   : > { %10063 = vmatprep.mubr.msk.f32.mxu1 %vm4050_vm3, %v12637_v45 }
 0x3d6   : > { %10064 = vmatmul.mubr.msk.f32.gmra.mrb[36].mxu1 %vm4050_vm3, %v12641_v46 }
 0x3d7   : > { %10066 = vmatprep.mubr.msk.f32.mxu1 %vm4050_vm3, %v12645_v17 }
 0x3da   : > { %10067 = vmatmul.mubr.msk.f32.gmra.mrb[38].mxu1 %vm4050_vm3, %v12649_v58 }
 0x3db   : > { %10069 = vmatprep.mubr.msk.f32.mxu1 %vm4050_vm3, %v12653_v61 }
 0x3de   : > { %10070 = vmatmul.mubr.msk.f32.gmra.mrb[40].mxu1 %vm4050_vm3, %v12657_v57 }
 0x3df   : > { %10072 = vmatprep.mubr.msk.f32.mxu1 %vm4050_vm3, %v12661_v5 }
 0x3e2   : > { %10073 = vmatmul.mubr.msk.f32.gmra.mrb[42].mxu1 %vm4050_vm3, %v12665_v9 }
 0x3e3   : > { %10075 = vmatprep.mubr.msk.f32.mxu1 %vm4050_vm3, %v12669_v19 }
 0x3e6   : > { %10076 = vmatmul.mubr.msk.f32.gmra.mrb[44].mxu1 %vm4050_vm3, %v12673_v12 }
 0x3e7   : > { %10078 = vmatprep.mubr.msk.f32.mxu1 %vm4050_vm3, %v12888_v13 }
 0x3ea   : > { %10079 = vmatmul.mubr.msk.f32.gmra.mrb[46].mxu1 %vm4050_vm3, %v12892_v16 }
 0x3eb   : > { %10089 = vmatprep.mubr.msk.f32.mxu1 %vm4050_vm3, %v12351_v21  ;;  %v13644_v21 = vld [vmem:[#allocation29_spill] sm:$0xff] }
 0x3ee   : > { %10090 = vmatmul.mubr.msk.f32.vlgmr.msra.gmra.mrb[16].mxu1 %vm4050_vm3, %v12357_v28  ;;  %v13645_v28 = vld [vmem:[#allocation4_spill] sm:$0xff] }
 0x3ef   : > { %10460 = vmatpush3.bf16.msra.mxu1 %v10457_v63  ;;  %10092 = vmatprep.mubr.msk.f32.mxu1 %vm4050_vm3, %v12363_v40  ;;  %v13646_v40 = vld [vmem:[#allocation5_spill] sm:$0xff]  ;;  %v13661_v63 = vld [vmem:[#allocation14_spill] sm:$0xff] }
 0x3f0   : > { %10462 = vmatprep.subr.bf16.mxu1 %v10461_v18 }
 0x3f2   : > { %10093 = vmatmul.mubr.msk.f32.gmra.mrb[18].mxu1 %vm4050_vm3, %v12369_v52  ;;  %v13647_v52 = vld [vmem:[#allocation6_spill] sm:$0xff] }
 0x3f3   : > { %10095 = vmatprep.mubr.msk.f32.mxu1 %vm4050_vm3, %v12375_v23  ;;  %10464 = vmatpush3.bf16.msra.mxu1 %v10461_v18  ;;  %v13648_v23 = vld [vmem:[#allocation23_spill] sm:$0xff]  ;;  %v13664_v18 = vld [vmem:[#allocation17_spill] sm:$0xff] }
 0x3f4   : > { %10466 = vmatprep.subr.bf16.mxu1 %v10465_v2 }
 0x3f6   : > { %10096 = vmatmul.mubr.msk.f32.gmra.mrb[20].mxu1 %vm4050_vm3, %v12381_v25  ;;  %v12968_v25 = vld [vmem:[#allocation3 + $0x181] sm:$0xff] }
 0x3f7   : > { %10098 = vmatprep.mubr.msk.f32.mxu1 %vm4050_vm3, %v12387_v59  ;;  %v12972_v59 = vld [vmem:[#allocation3 + $0x189] sm:$0xff] }
 0x3fa   : > { %10099 = vmatmul.mubr.msk.f32.gmra.mrb[22].mxu1 %vm4050_vm3, %v12393_v62  ;;  %v8606_v62 = vld [vmem:[%s13404_s5 + $0xd0] sm:$0xff] }
 0x3fb   : > { %10101 = vmatprep.mubr.msk.f32.mxu1 %vm4050_vm3, %v12399_v7  ;;  %v8607_v7 = vld [vmem:[%s13404_s5 + $0xd8] sm:$0xff] }
 0x3fe   : > { %10102 = vmatmul.mubr.msk.f32.gmra.mrb[24].mxu1 %vm4050_vm3, %v12405_v10  ;;  %v10469_v10 = vpack.c.bf16 %v8607_v7, %v8606_v62  ;;  %v13668_v62 = vld [vmem:[#allocation21_spill] sm:$0xff]  ;;  %v13669_v7 = vld [vmem:[#allocation22_spill] sm:$0xff] }
 0x3ff   : > { %10104 = vmatprep.mubr.msk.f32.mxu1 %vm4050_vm3, %v12411_v51  ;;  %v8640_v51 = vld [vmem:[%s13404_s5 + $0xe0] sm:$0xff] }
 0x402   : > { %10105 = vmatmul.mubr.msk.f32.gmra.mrb[26].mxu1 %vm4050_vm3, %v12417_v14  ;;  %v8641_v14 = vld [vmem:[%s13404_s5 + $0xe8] sm:$0xff] }
 0x403   : > { %10107 = vmatprep.mubr.msk.f32.mxu1 %vm4050_vm3, %v12424_v30  ;;  %v13649_v30 = vld [vmem:[#allocation24_spill] sm:$0xff] }
 0x406   : > { %10108 = vmatmul.mubr.msk.f32.gmra.mrb[28].mxu1 %vm4050_vm3, %v12429_v34  ;;  %v10473_v34 = vpack.c.bf16 %v8641_v14, %v8640_v51  ;;  %v13671_v51 = vld [vmem:[#allocation28_spill] sm:$0xff] }
 0x407   : > { %10110 = vmatprep.mubr.msk.f32.mxu1 %vm4050_vm3, %v12438_v22  ;;  %v13650_v22 = vld [vmem:[#allocation26_spill] sm:$0xff]  ;;  %v13672_v14 = vld [vmem:[#allocation32_spill] sm:$0xff] }
 0x40a   : > { %10111 = vmatmul.mubr.msk.f32.gmra.mrb[30].mxu1 %vm4050_vm3, %v12443_v24  ;;  %v13651_v24 = vld [vmem:[#allocation27_spill] sm:$0xff] }
 0x40b   : > { %10113 = vmatprep.mubr.msk.f32.mxu1 %vm4050_vm3, %v12455_v0  ;;  %v13652_v0 = vld [vmem:[#allocation30_spill] sm:$0xff] }
 0x40e   : > { %10114 = vmatmul.mubr.msk.f32.gmra.mrb[32].mxu1 %vm4050_vm3, %v12461_v6  ;;  %v13653_v6 = vld [vmem:[#allocation31_spill] sm:$0xff] }
 0x40f   : > { %10116 = vmatprep.mubr.msk.f32.mxu1 %vm4050_vm3, %v12469_v49  ;;  %v13654_v49 = vld [vmem:[#allocation7_spill] sm:$0xff] }
 0x412   : > { %10117 = vmatmul.mubr.msk.f32.gmra.mrb[34].mxu1 %vm4050_vm3, %v12475_v38  ;;  %v13655_v38 = vld [vmem:[#allocation8_spill] sm:$0xff] }
 0x413   : > { %10119 = vmatprep.mubr.msk.f32.mxu1 %vm4050_vm3, %v12483_v3  ;;  %v13656_v3 = vld [vmem:[#allocation9_spill] sm:$0xff] }
 0x416   : > { %10120 = vmatmul.mubr.msk.f32.gmra.mrb[36].mxu1 %vm4050_vm3, %v12489_v47  ;;  %v13657_v47 = vld [vmem:[#allocation10_spill] sm:$0xff] }
 0x417   : > { %10122 = vmatprep.mubr.msk.f32.mxu1 %vm4050_vm3, %v12497_v55  ;;  %v13658_v55 = vld [vmem:[#allocation11_spill] sm:$0xff] }
 0x41a   : > { %10123 = vmatmul.mubr.msk.f32.gmra.mrb[38].mxu1 %vm4050_vm3, %v12503_v35 }
 0x41b   : > { %10125 = vmatprep.mubr.msk.f32.mxu1 %vm4050_vm3, %v12511_v48 }
 0x41e   : > { %10126 = vmatmul.mubr.msk.f32.gmra.mrb[40].mxu1 %vm4050_vm3, %v13644_v21 }
 0x41f   : > { %10128 = vmatprep.mubr.msk.f32.mxu1 %vm4050_vm3, %v13645_v28 }
 0x422   : > { %10129 = vmatmul.mubr.msk.f32.gmra.mrb[42].mxu1 %vm4050_vm3, %v13646_v40 }
 0x423   : > { %10131 = vmatprep.mubr.msk.f32.mxu1 %vm4050_vm3, %v13647_v52 }
 0x426   : > { %10132 = vmatmul.mubr.msk.f32.gmra.mrb[44].mxu1 %vm4050_vm3, %v13648_v23 }
 0x427   : > { %10134 = vmatprep.mubr.msk.f32.mxu1 %vm4050_vm3, %v12968_v25 }
 0x42a   : > { %10135 = vmatmul.mubr.msk.f32.gmra.mrb[46].mxu1 %vm4050_vm3, %v12972_v59 }
 0x42b   : > { %10145 = vmatprep.mubr.msk.f32.mxu1 %vm4050_vm3, %v12691_v43  ;;  %v13659_v43 = vld [vmem:[#allocation12_spill] sm:$0xff] }
 0x42e   : > { %10146 = vmatmul.mubr.msk.f32.vlgmr.msra.gmra.mrb[16].mxu1 %vm4050_vm3, %v12698_v1  ;;  %v13660_v1 = vld [vmem:[#allocation13_spill] sm:$0xff] }
 0x42f   : > { %10468 = vmatpush3.bf16.msra.mxu1 %v10465_v2  ;;  %10148 = vmatprep.mubr.msk.f32.mxu1 %vm4050_vm3, %v13649_v30  ;;  %v13667_v2 = vld [vmem:[#allocation20_spill] sm:$0xff] }
 0x430   : > { %10470 = vmatprep.subr.bf16.mxu1 %v10469_v10 }
 0x432   : > { %10149 = vmatmul.mubr.msk.f32.gmra.mrb[18].mxu1 %vm4050_vm3, %v13650_v22 }
 0x433   : > { %10151 = vmatprep.mubr.msk.f32.mxu1 %vm4050_vm3, %v13651_v24  ;;  %10472 = vmatpush3.bf16.msra.mxu1 %v10469_v10  ;;  %v13670_v10 = vld [vmem:[#allocation25_spill] sm:$0xff] }
 0x434   : > { %10474 = vmatprep.subr.bf16.mxu1 %v10473_v34 }
 0x436   : > { %10152 = vmatmul.mubr.msk.f32.gmra.mrb[20].mxu1 %vm4050_vm3, %v13652_v0 }
 0x437   : > { %10154 = vmatprep.mubr.msk.f32.mxu1 %vm4050_vm3, %v13653_v6 }
 0x43a   : > { %10155 = vmatmul.mubr.msk.f32.gmra.mrb[22].mxu1 %vm4050_vm3, %v13654_v49 }
 0x43b   : > { %10157 = vmatprep.mubr.msk.f32.mxu1 %vm4050_vm3, %v13655_v38 }
 0x43e   : > { %10158 = vmatmul.mubr.msk.f32.gmra.mrb[24].mxu1 %vm4050_vm3, %v13656_v3 }
 0x43f   : > { %10160 = vmatprep.mubr.msk.f32.mxu1 %vm4050_vm3, %v13657_v47 }
 0x442   : > { %10161 = vmatmul.mubr.msk.f32.gmra.mrb[26].mxu1 %vm4050_vm3, %v13658_v55 }
 0x443   : > { %10163 = vmatprep.mubr.msk.f32.mxu1 %vm4050_vm3, %v13659_v43 }
 0x446   : > { %10164 = vmatmul.mubr.msk.f32.gmra.mrb[28].mxu1 %vm4050_vm3, %v13660_v1 }
 0x447   : > { %10166 = vmatprep.mubr.msk.f32.mxu1 %vm4050_vm3, %v13661_v63 }
 0x44a   : > { %10167 = vmatmul.mubr.msk.f32.gmra.mrb[30].mxu1 %vm4050_vm3, %v13662_v11 }
 0x44b   : > { %10169 = vmatprep.mubr.msk.f32.mxu1 %vm4050_vm3, %v13663_v50 }
 0x44e   : > { %10170 = vmatmul.mubr.msk.f32.gmra.mrb[32].mxu1 %vm4050_vm3, %v13664_v18 }
 0x44f   : > { %10172 = vmatprep.mubr.msk.f32.mxu1 %vm4050_vm3, %v13665_v60  ;;  %v13673_v60 = vld [vmem:[#allocation33_spill] sm:$0xff] }
 0x452   : > { %10173 = vmatmul.mubr.msk.f32.gmra.mrb[34].mxu1 %vm4050_vm3, %v13666_v15  ;;  %v13674_v15 = vld [vmem:[#allocation34_spill] sm:$0xff] }
 0x453   : > { %10175 = vmatprep.mubr.msk.f32.mxu1 %vm4050_vm3, %v13667_v2  ;;  %v13675_v2 = vld [vmem:[#allocation35_spill] sm:$0xff] }
 0x456   : > { %10176 = vmatmul.mubr.msk.f32.gmra.mrb[36].mxu1 %vm4050_vm3, %v13668_v62  ;;  %v13676_v62 = vld [vmem:[#allocation36_spill] sm:$0xff] }
 0x457   : > { %10178 = vmatprep.mubr.msk.f32.mxu1 %vm4050_vm3, %v13669_v7  ;;  %v13048_v7 = vld [vmem:[#allocation3 + $0x182] sm:$0xff] }
 0x458   : > { %13677 = vst [vmem:[#allocation29_spill] sm:$0xff] %v13048_v7 }
 0x45a   : > { %10179 = vmatmul.mubr.msk.f32.gmra.mrb[38].mxu1 %vm4050_vm3, %v13670_v10 }
 0x45b   : > { %10181 = vmatprep.mubr.msk.f32.mxu1 %vm4050_vm3, %v13671_v51  ;;  %v13052_v51 = vld [vmem:[#allocation3 + $0x18a] sm:$0xff] }
 0x45c   : > { %13678 = vst [vmem:[#allocation4_spill] sm:$0xff] %v13052_v51 }
 0x45e   : > { %10182 = vmatmul.mubr.msk.f32.gmra.mrb[40].mxu1 %vm4050_vm3, %v13672_v14 }
 0x45f   : > { %10184 = vmatprep.mubr.msk.f32.mxu1 %vm4050_vm3, %v13673_v60  ;;  %v8642_v60 = vld [vmem:[%s13404_s5 + $0xf0] sm:$0xff] }
 0x462   : > { %10185 = vmatmul.mubr.msk.f32.gmra.mrb[42].mxu1 %vm4050_vm3, %v13674_v15  ;;  %v8643_v15 = vld [vmem:[%s13404_s5 + $0xf8] sm:$0xff] }
 0x463   : > { %10187 = vmatprep.mubr.msk.f32.mxu1 %vm4050_vm3, %v13675_v2  ;;  %v8677_v2 = vld [vmem:[%s13404_s5 + $0x108] sm:$0xff] }
 0x466   : > { %10188 = vmatmul.mubr.msk.f32.gmra.mrb[44].mxu1 %vm4050_vm3, %v13676_v62  ;;  %v10477_v62 = vpack.c.bf16 %v8643_v15, %v8642_v60  ;;  %v6825_v60 = vld [vmem:[#allocation3 + $0x121] sm:$0xff] }
 0x467   : > { %10190 = vmatprep.mubr.msk.f32.mxu1 %vm4050_vm3, %v13048_v7  ;;  %v8676_v7 = vld [vmem:[%s13404_s5 + $0x100] sm:$0xff] }
 0x46a   : > { %10191 = vmatmul.mubr.msk.f32.gmra.mrb[46].mxu1 %vm4050_vm3, %v13052_v51  ;;  %v10481_v51 = vpack.c.bf16 %v8677_v2, %v8676_v7 }
 0x46b   : > { %10201 = vmatprep.mubr.msk.f32.mxu1 %vm4050_vm3, %v12564_v44  ;;  %v6445_v44 = vld [vmem:[#allocation3 + $0x198] sm:$0xff] }
 0x46e   : > { %10202 = vmatmul.mubr.msk.f32.vlgmr.msra.gmra.mrb[16].mxu1 %vm4050_vm3, %v12569_v8  ;;  %v6446_v8 = vld [vmem:[#allocation3 + $0x1a0] sm:$0xff] }
 0x46f   : > { %10476 = vmatpush3.bf16.msra.mxu1 %v10473_v34  ;;  %10204 = vmatprep.mubr.msk.f32.mxu1 %vm4050_vm3, %v12573_v29  ;;  %v6805_v29 = vld [vmem:[#allocation3 + $0x31] sm:$0xff] }
 0x470   : > { %10478 = vmatprep.subr.bf16.mxu1 %v10477_v62  ;;  %v6824_v34 = vld [vmem:[#allocation3 + $0x111] sm:$0xff] }
 0x472   : > { %10205 = vmatmul.mubr.msk.f32.gmra.mrb[18].mxu1 %vm4050_vm3, %v12577_v20  ;;  %v8678_v20 = vld [vmem:[%s13404_s5 + $0x110] sm:$0xff] }
 0x473   : > { %10207 = vmatprep.mubr.msk.f32.mxu1 %vm4050_vm3, %v12581_v26  ;;  %10480 = vmatpush3.bf16.msra.mxu1 %v10477_v62  ;;  %v8679_v26 = vld [vmem:[%s13404_s5 + $0x118] sm:$0xff] }
 0x474   : > { %10482 = vmatprep.subr.bf16.mxu1 %v10481_v51 }
 0x476   : > { %10208 = vmatmul.mubr.msk.f32.gmra.mrb[20].mxu1 %vm4050_vm3, %v12585_v31  ;;  %v7656_v31 = vld [vmem:[%s13406_s7] sm:$0xff] }
 0x477   : > { %10210 = vmatprep.mubr.msk.f32.mxu1 %vm4050_vm3, %v12589_v4  ;;  %v7657_v4 = vld [vmem:[%s13406_s7 + $0x8] sm:$0xff] }
 0x47a   : > { %10211 = vmatmul.mubr.msk.f32.gmra.mrb[22].mxu1 %vm4050_vm3, %v12593_v37  ;;  %v7658_v37 = vld [vmem:[%s13406_s7 + $0x10] sm:$0xff] }
 0x47b   : > { %10213 = vmatprep.mubr.msk.f32.mxu1 %vm4050_vm3, %v12597_v32  ;;  %v10489_v32 = vpack.c.bf16 %v7657_v4, %v7656_v31 }
 0x47d   : > { %10490 = vmatprep.subr.bf16.mxu0 %v10489_v32 }
 0x47e   : > { %10214 = vmatmul.mubr.msk.f32.gmra.mrb[24].mxu1 %vm4050_vm3, %v12601_v36  ;;  %v7659_v36 = vld [vmem:[%s13406_s7 + $0x18] sm:$0xff]  ;;  %10492 = vmatpush3.bf16.msra.mxu0 %v10489_v32 }
 0x47f   : > { %10216 = vmatprep.mubr.msk.f32.mxu1 %vm4050_vm3, %v12605_v42  ;;  %v10485_v42 = vpack.c.bf16 %v8679_v26, %v8678_v20 }
 0x482   : > { %10217 = vmatmul.mubr.msk.f32.gmra.mrb[26].mxu1 %vm4050_vm3, %v12609_v53  ;;  %v10493_v53 = vpack.c.bf16 %v7659_v36, %v7658_v37 }
 0x483   : > { %10219 = vmatprep.mubr.msk.f32.mxu1 %vm4050_vm3, %v12613_v54  ;;  %v6806_v54 = vld [vmem:[#allocation3 + $0x39] sm:$0xff] }
 0x484   : > { %10494 = vmatprep.subr.bf16.mxu0 %v10493_v53 }
 0x485   : > { %10496 = vmatpush3.bf16.msra.mxu0 %v10493_v53 }
 0x486   : > { %10220 = vmatmul.mubr.msk.f32.gmra.mrb[28].mxu1 %vm4050_vm3, %v12617_v39  ;;  %v6807_v39 = vld [vmem:[#allocation3 + $0x49] sm:$0xff] }
 0x487   : > { %10222 = vmatprep.mubr.msk.f32.mxu1 %vm4050_vm3, %v12621_v41  ;;  %v6808_v41 = vld [vmem:[#allocation3 + $0x51] sm:$0xff] }
 0x48a   : > { %10223 = vmatmul.mubr.msk.f32.gmra.mrb[30].mxu1 %vm4050_vm3, %v12625_v27  ;;  %v6809_v27 = vld [vmem:[#allocation3 + $0x61] sm:$0xff] }
 0x48b   : > { %10225 = vmatprep.mubr.msk.f32.mxu1 %vm4050_vm3, %v12629_v56  ;;  %v6810_v56 = vld [vmem:[#allocation3 + $0x69] sm:$0xff] }
 0x48e   : > { %10226 = vmatmul.mubr.msk.f32.gmra.mrb[32].mxu1 %vm4050_vm3, %v12633_v33  ;;  %v6811_v33 = vld [vmem:[#allocation3 + $0x79] sm:$0xff] }
 0x48f   : > { %10228 = vmatprep.mubr.msk.f32.mxu1 %vm4050_vm3, %v12637_v45  ;;  %v6812_v45 = vld [vmem:[#allocation3 + $0x81] sm:$0xff] }
 0x492   : > { %10229 = vmatmul.mubr.msk.f32.gmra.mrb[34].mxu1 %vm4050_vm3, %v12641_v46  ;;  %v6813_v46 = vld [vmem:[#allocation3 + $0x91] sm:$0xff] }
 0x493   : > { %10231 = vmatprep.mubr.msk.f32.mxu1 %vm4050_vm3, %v12645_v17  ;;  %v6814_v17 = vld [vmem:[#allocation3 + $0x99] sm:$0xff] }
 0x496   : > { %10232 = vmatmul.mubr.msk.f32.gmra.mrb[36].mxu1 %vm4050_vm3, %v12649_v58  ;;  %v6815_v58 = vld [vmem:[#allocation3 + $0xa9] sm:$0xff] }
 0x497   : > { %10234 = vmatprep.mubr.msk.f32.mxu1 %vm4050_vm3, %v12653_v61  ;;  %v6816_v61 = vld [vmem:[#allocation3 + $0xb1] sm:$0xff] }
 0x49a   : > { %10235 = vmatmul.mubr.msk.f32.gmra.mrb[38].mxu1 %vm4050_vm3, %v12657_v57  ;;  %v6817_v57 = vld [vmem:[#allocation3 + $0xc1] sm:$0xff] }
 0x49b   : > { %10237 = vmatprep.mubr.msk.f32.mxu1 %vm4050_vm3, %v12661_v5  ;;  %v6818_v5 = vld [vmem:[#allocation3 + $0xc9] sm:$0xff] }
 0x49e   : > { %10238 = vmatmul.mubr.msk.f32.gmra.mrb[40].mxu1 %vm4050_vm3, %v12665_v9  ;;  %v6819_v9 = vld [vmem:[#allocation3 + $0xd9] sm:$0xff] }
 0x49f   : > { %10240 = vmatprep.mubr.msk.f32.mxu1 %vm4050_vm3, %v12669_v19  ;;  %v6820_v19 = vld [vmem:[#allocation3 + $0xe1] sm:$0xff] }
 0x4a2   : > { %10241 = vmatmul.mubr.msk.f32.gmra.mrb[42].mxu1 %vm4050_vm3, %v12673_v12  ;;  %v6821_v12 = vld [vmem:[#allocation3 + $0xf1] sm:$0xff] }
 0x4a3   : > { %10243 = vmatprep.mubr.msk.f32.mxu1 %vm4050_vm3, %v12888_v13  ;;  %v6822_v13 = vld [vmem:[#allocation3 + $0xf9] sm:$0xff] }
 0x4a6   : > { %10244 = vmatmul.mubr.msk.f32.gmra.mrb[44].mxu1 %vm4050_vm3, %v12892_v16  ;;  %v6823_v16 = vld [vmem:[#allocation3 + $0x109] sm:$0xff] }
 0x4a7   : > { %10246 = vmatprep.mubr.msk.f32.mxu1 %vm4050_vm3, %v6445_v44 }
 0x4aa   : > { %10247 = vmatmul.mubr.msk.f32.gmra.mrb[46].mxu1 %vm4050_vm3, %v6446_v8 }
 0x4ab   : > { %10257 = vmatprep.mubr.msk.f32.mxu1 %vm4050_vm3, %v6805_v29 }
 0x4ae   : > { %10258 = vmatmul.mubr.msk.f32.vlgmr.msra.gmra.mrb[16].mxu1 %vm4050_vm3, %v6806_v54 }
 0x4af   : > { %10484 = vmatpush3.bf16.msra.mxu1 %v10481_v51  ;;  %10260 = vmatprep.mubr.msk.f32.mxu1 %vm4050_vm3, %v6807_v39 }
 0x4b0   : > { %10486 = vmatprep.subr.bf16.mxu1 %v10485_v42 }
 0x4b2   : > { %10261 = vmatmul.mubr.msk.f32.gmra.mrb[18].mxu1 %vm4050_vm3, %v6808_v41 }
 0x4b3   : > { %10263 = vmatprep.mubr.msk.f32.mxu1 %vm4050_vm3, %v6809_v27  ;;  %10488 = vmatpush3.bf16.msra.mxu1 %v10485_v42 }
 0x4b6   : > { %10264 = vmatmul.mubr.msk.f32.gmra.mrb[20].mxu1 %vm4050_vm3, %v6810_v56 }
 0x4b7   : > { %10266 = vmatprep.mubr.msk.f32.mxu1 %vm4050_vm3, %v6811_v33 }
 0x4ba   : > { %10267 = vmatmul.mubr.msk.f32.gmra.mrb[22].mxu1 %vm4050_vm3, %v6812_v45 }
 0x4bb   : > { %10269 = vmatprep.mubr.msk.f32.mxu1 %vm4050_vm3, %v6813_v46 }
 0x4be   : > { %10270 = vmatmul.mubr.msk.f32.gmra.mrb[24].mxu1 %vm4050_vm3, %v6814_v17 }
 0x4bf   : > { %10272 = vmatprep.mubr.msk.f32.mxu1 %vm4050_vm3, %v6815_v58 }
 0x4c2   : > { %10273 = vmatmul.mubr.msk.f32.gmra.mrb[26].mxu1 %vm4050_vm3, %v6816_v61 }
 0x4c3   : > { %10275 = vmatprep.mubr.msk.f32.mxu1 %vm4050_vm3, %v6817_v57 }
 0x4c6   : > { %10276 = vmatmul.mubr.msk.f32.gmra.mrb[28].mxu1 %vm4050_vm3, %v6818_v5 }
 0x4c7   : > { %10278 = vmatprep.mubr.msk.f32.mxu1 %vm4050_vm3, %v6819_v9 }
 0x4ca   : > { %10279 = vmatmul.mubr.msk.f32.gmra.mrb[30].mxu1 %vm4050_vm3, %v6820_v19 }
 0x4cb   : > { %10281 = vmatprep.mubr.msk.f32.mxu1 %vm4050_vm3, %v6821_v12 }
 0x4ce   : > { %10282 = vmatmul.mubr.msk.f32.gmra.mrb[32].mxu1 %vm4050_vm3, %v6822_v13 }
 0x4cf   : > { %10284 = vmatprep.mubr.msk.f32.mxu1 %vm4050_vm3, %v6823_v16 }
 0x4d2   : > { %10285 = vmatmul.mubr.msk.f32.gmra.mrb[34].mxu1 %vm4050_vm3, %v6824_v34 }
 0x4d3   : > { %10287 = vmatprep.mubr.msk.f32.mxu1 %vm4050_vm3, %v6825_v60 }
 0x4d6   : > { %10288 = vmatmul.mubr.msk.f32.gmra.mrb[36].mxu1 %vm4050_vm3, %v12503_v35  ;;  %v6835_v35 = vld [vmem:[#allocation3 + $0x199] sm:$0xff] }
 0x4d7   : > { %10290 = vmatprep.mubr.msk.f32.mxu1 %vm4050_vm3, %v12511_v48  ;;  %v6836_v48 = vld [vmem:[#allocation3 + $0x1a1] sm:$0xff] }
 0x4da   : > { %10291 = vmatmul.mubr.msk.f32.gmra.mrb[38].mxu1 %vm4050_vm3, %v13644_v21  ;;  %v13679_v21 = vld [vmem:[#allocation18_spill] sm:$0xff] }
 0x4db   : > { %10293 = vmatprep.mubr.msk.f32.mxu1 %vm4050_vm3, %v13645_v28  ;;  %v13680_v28 = vld [vmem:[#allocation19_spill] sm:$0xff] }
 0x4de   : > { %10294 = vmatmul.mubr.msk.f32.gmra.mrb[40].mxu1 %vm4050_vm3, %v13646_v40  ;;  %v13681_v40 = vld [vmem:[#allocation20_spill] sm:$0xff] }
 0x4df   : > { %10296 = vmatprep.mubr.msk.f32.mxu1 %vm4050_vm3, %v13647_v52  ;;  %v13682_v52 = vld [vmem:[#allocation21_spill] sm:$0xff] }
 0x4e2   : > { %10297 = vmatmul.mubr.msk.f32.gmra.mrb[42].mxu1 %vm4050_vm3, %v13648_v23  ;;  %v13683_v23 = vld [vmem:[#allocation22_spill] sm:$0xff] }
 0x4e3   : > { %10299 = vmatprep.mubr.msk.f32.mxu1 %vm4050_vm3, %v12968_v25  ;;  %v13684_v25 = vld [vmem:[#allocation28_spill] sm:$0xff] }
 0x4e6   : > { %10300 = vmatmul.mubr.msk.f32.gmra.mrb[44].mxu1 %vm4050_vm3, %v12972_v59  ;;  %v13685_v59 = vld [vmem:[#allocation33_spill] sm:$0xff] }
 0x4e7   : > { %10302 = vmatprep.mubr.msk.f32.mxu1 %vm4050_vm3, %v6835_v35 }
 0x4ea   : > { %10303 = vmatmul.mubr.msk.f32.gmra.mrb[46].mxu1 %vm4050_vm3, %v6836_v48 }
 0x4eb   : > { %10313 = vmatprep.mubr.msk.f32.mxu1 %vm4050_vm3, %v13649_v30  ;;  %v13686_v30 = vld [vmem:[#allocation34_spill] sm:$0xff] }
 0x4ee   : > { %10314 = vmatmul.mubr.msk.f32.vlgmr.msra.gmra.mrb[16].mxu1 %vm4050_vm3, %v13650_v22  ;;  %v13687_v22 = vld [vmem:[#allocation35_spill] sm:$0xff] }
 0x4ef   : > { %10316 = vmatprep.mubr.msk.f32.mxu1 %vm4050_vm3, %v13651_v24  ;;  %v13688_v24 = vld [vmem:[#allocation36_spill] sm:$0xff] }
 0x4f2   : > { %10317 = vmatmul.mubr.msk.f32.gmra.mrb[18].mxu1 %vm4050_vm3, %v13652_v0  ;;  %v13689_v0 = vld [vmem:[#allocation29_spill] sm:$0xff] }
 0x4f3   : > { %10319 = vmatprep.mubr.msk.f32.mxu1 %vm4050_vm3, %v13653_v6  ;;  %v7225_v6 = vld [vmem:[#allocation3 + $0x19a] sm:$0xff] }
 0x4f6   : > { %10320 = vmatmul.mubr.msk.f32.gmra.mrb[20].mxu1 %vm4050_vm3, %v13654_v49  ;;  %v13690_v49 = vld [vmem:[#allocation4_spill] sm:$0xff] }
 0x4f7   : > { %10322 = vmatprep.mubr.msk.f32.mxu1 %vm4050_vm3, %v13655_v38  ;;  %v7226_v38 = vld [vmem:[#allocation3 + $0x1a2] sm:$0xff] }
 0x4fa   : > { %10323 = vmatmul.mubr.msk.f32.gmra.mrb[22].mxu1 %vm4050_vm3, %v13656_v3  ;;  %v13254_v3 = vld [vmem:[%s13405_s6] ss:$0 sm:$0xff] }
 0x4fb   : > { %10325 = vmatprep.mubr.msk.f32.mxu1 %vm4050_vm3, %v13657_v47 }
 0x4fe   : > { %10326 = vmatmul.mubr.msk.f32.gmra.mrb[24].mxu1 %vm4050_vm3, %v13658_v55 }
 0x4ff   : > { %10328 = vmatprep.mubr.msk.f32.mxu1 %vm4050_vm3, %v13659_v43 }
 0x502   : > { %10329 = vmatmul.mubr.msk.f32.gmra.mrb[26].mxu1 %vm4050_vm3, %v13660_v1 }
 0x503   : > { %10331 = vmatprep.mubr.msk.f32.mxu1 %vm4050_vm3, %v13661_v63 }
 0x506   : > { %10332 = vmatmul.mubr.msk.f32.gmra.mrb[28].mxu1 %vm4050_vm3, %v13662_v11 }
 0x507   : > { %10334 = vmatprep.mubr.msk.f32.mxu1 %vm4050_vm3, %v13663_v50 }
 0x50a   : > { %10335 = vmatmul.mubr.msk.f32.gmra.mrb[30].mxu1 %vm4050_vm3, %v13664_v18 }
 0x50b   : > { %10337 = vmatprep.mubr.msk.f32.mxu1 %vm4050_vm3, %v13679_v21 }
 0x50e   : > { %10338 = vmatmul.mubr.msk.f32.gmra.mrb[32].mxu1 %vm4050_vm3, %v13680_v28 }
 0x50f   : > { %10340 = vmatprep.mubr.msk.f32.mxu1 %vm4050_vm3, %v13681_v40 }
 0x512   : > { %10341 = vmatmul.mubr.msk.f32.gmra.mrb[34].mxu1 %vm4050_vm3, %v13682_v52 }
 0x513   : > { %10343 = vmatprep.mubr.msk.f32.mxu1 %vm4050_vm3, %v13683_v23 }
 0x516   : > { %10344 = vmatmul.mubr.msk.f32.gmra.mrb[36].mxu1 %vm4050_vm3, %v13670_v10 }
 0x517   : > { %10346 = vmatprep.mubr.msk.f32.mxu1 %vm4050_vm3, %v13684_v25 }
 0x51a   : > { %10347 = vmatmul.mubr.msk.f32.gmra.mrb[38].mxu1 %vm4050_vm3, %v13672_v14 }
 0x51b   : > { %10349 = vmatprep.mubr.msk.f32.mxu1 %vm4050_vm3, %v13685_v59 }
 0x51e   : > { %10350 = vmatmul.mubr.msk.f32.gmra.mrb[40].mxu1 %vm4050_vm3, %v13686_v30 }
 0x51f   : > { %10352 = vmatprep.mubr.msk.f32.mxu1 %vm4050_vm3, %v13687_v22 }
 0x522   : > { %10353 = vmatmul.mubr.msk.f32.gmra.mrb[42].mxu1 %vm4050_vm3, %v13688_v24 }
 0x523   : > { %10355 = vmatprep.mubr.msk.f32.mxu1 %vm4050_vm3, %v13689_v0 }
 0x526   : > { %10356 = vmatmul.mubr.msk.f32.gmra.mrb[44].mxu1 %vm4050_vm3, %v13690_v49 }
 0x527   : > { %10358 = vmatprep.mubr.msk.f32.mxu1 %vm4050_vm3, %v7225_v6 }
 0x52a   : > { %10359 = vmatmul.mubr.msk.f32.gmra.mrb[46].mxu1 %vm4050_vm3, %v7226_v38 }
 0x5c1   : > { %v10315_v47 = vpop.f32.mrb[16].mxu1 }
 0x5c2   : > { %v7593_v55 = vadd.f32 %v10315_v47, %v13254_v3  ;;  %v7394_v43 = vpop.f32.mrb[17].mxu1 }
 0x5c3   : > { %v7592_v1 = vadd.f32 %v13254_v3, %v7394_v43 }
 0x5c4   : > { %v7625_v50 = vmax.f32 %v7593_v55, 0.0 }
 0x5c5   : > { %v7624_v63 = vmax.f32 %v7592_v1, 0.0  ;;  %v10318_v11 = vpop.f32.mrb[18].mxu1 }
 0x5c6   : > { %v7595_v18 = vadd.f32 %v10318_v11, %v13254_v3  ;;  %v7404_v15 = vpop.f32.mrb[19].mxu1 }
 0x5c7   : > { %v7594_v2 = vadd.f32 %v13254_v3, %v7404_v15  ;;  %10369 = vmatprep.mubr.msk.f32.mxu0 %vm4050_vm3, %v7624_v63 }
 0x5c8   : > { %10370 = vmatmul.mubr.msk.f32.vlgmr.msra.gmra.mrb[32].mxu0 %vm4050_vm3, %v7625_v50  ;;  %v7627_v10 = vmax.f32 %v7595_v18, 0.0 }
 0x5c9   : > { %v7626_v62 = vmax.f32 %v7594_v2, 0.0  ;;  %v10321_v7 = vpop.f32.mrb[20].mxu1 }
 0x5ca   : > { %v7597_v51 = vadd.f32 %v10321_v7, %v13254_v3  ;;  %v7414_v14 = vpop.f32.mrb[21].mxu1 }
 0x5cb   : > { %v7596_v44 = vadd.f32 %v13254_v3, %v7414_v14  ;;  %10372 = vmatprep.mubr.msk.f32.mxu0 %vm4050_vm3, %v7626_v62 }
 0x5cc   : > { %10373 = vmatmul.mubr.msk.f32.gmra.mrb[34].mxu0 %vm4050_vm3, %v7627_v10  ;;  %v7629_v20 = vmax.f32 %v7597_v51, 0.0 }
 0x5cd   : > { %v7628_v8 = vmax.f32 %v7596_v44, 0.0  ;;  %v10324_v29 = vpop.f32.mrb[22].mxu1 }
 0x5ce   : > { %v7599_v26 = vadd.f32 %v10324_v29, %v13254_v3  ;;  %v7424_v31 = vpop.f32.mrb[23].mxu1 }
 0x5cf   : > { %v7598_v4 = vadd.f32 %v13254_v3, %v7424_v31  ;;  %10375 = vmatprep.mubr.msk.f32.mxu0 %vm4050_vm3, %v7628_v8 }
 0x5d0   : > { %10376 = vmatmul.mubr.msk.f32.gmra.mrb[36].mxu0 %vm4050_vm3, %v7629_v20  ;;  %v7631_v36 = vmax.f32 %v7599_v26, 0.0 }
 0x5d1   : > { %v7630_v37 = vmax.f32 %v7598_v4, 0.0  ;;  %v10327_v32 = vpop.f32.mrb[24].mxu1 }
 0x5d2   : > { %v7601_v42 = vadd.f32 %v10327_v32, %v13254_v3  ;;  %v7434_v53 = vpop.f32.mrb[25].mxu1 }
 0x5d3   : > { %v7600_v54 = vadd.f32 %v13254_v3, %v7434_v53  ;;  %10378 = vmatprep.mubr.msk.f32.mxu0 %vm4050_vm3, %v7630_v37 }
 0x5d4   : > { %10379 = vmatmul.mubr.msk.f32.gmra.mrb[38].mxu0 %vm4050_vm3, %v7631_v36  ;;  %v7633_v27 = vmax.f32 %v7601_v42, 0.0 }
 0x5d5   : > { %v7632_v39 = vmax.f32 %v7600_v54, 0.0  ;;  %v10330_v41 = vpop.f32.mrb[26].mxu1 }
 0x5d6   : > { %v7603_v56 = vadd.f32 %v10330_v41, %v13254_v3  ;;  %v7444_v33 = vpop.f32.mrb[27].mxu1 }
 0x5d7   : > { %v7602_v45 = vadd.f32 %v13254_v3, %v7444_v33  ;;  %10381 = vmatprep.mubr.msk.f32.mxu0 %vm4050_vm3, %v7632_v39 }
 0x5d8   : > { %10382 = vmatmul.mubr.msk.f32.gmra.mrb[40].mxu0 %vm4050_vm3, %v7633_v27  ;;  %v7635_v58 = vmax.f32 %v7603_v56, 0.0 }
 0x5d9   : > { %v7634_v46 = vmax.f32 %v7602_v45, 0.0  ;;  %v10333_v17 = vpop.f32.mrb[28].mxu1  ;;  %v13323_v45 = vld [vmem:[%s13407_s8] ss:$0 sm:$0xff] }
 0x5da   : > { %v7605_v61 = vadd.f32 %v10333_v17, %v13254_v3  ;;  %v7454_v57 = vpop.f32.mrb[29].mxu1 }
 0x5db   : > { %v7604_v5 = vadd.f32 %v13254_v3, %v7454_v57  ;;  %10384 = vmatprep.mubr.msk.f32.mxu0 %vm4050_vm3, %v7634_v46 }
 0x5dc   : > { %10385 = vmatmul.mubr.msk.f32.gmra.mrb[42].mxu0 %vm4050_vm3, %v7635_v58  ;;  %v7637_v12 = vmax.f32 %v7605_v61, 0.0 }
 0x5dd   : > { %v7636_v9 = vmax.f32 %v7604_v5, 0.0  ;;  %v10336_v19 = vpop.f32.mrb[30].mxu1 }
 0x5de   : > { %v7607_v13 = vadd.f32 %v10336_v19, %v13254_v3  ;;  %v7464_v16 = vpop.f32.mrb[31].mxu1 }
 0x5df   : > { %v7606_v34 = vadd.f32 %v13254_v3, %v7464_v16  ;;  %10387 = vmatprep.mubr.msk.f32.mxu0 %vm4050_vm3, %v7636_v9 }
 0x5e0   : > { %10388 = vmatmul.mubr.msk.f32.gmra.mrb[44].mxu0 %vm4050_vm3, %v7637_v12  ;;  %v7639_v48 = vmax.f32 %v7607_v13, 0.0 }
 0x5e1   : > { %v7638_v60 = vmax.f32 %v7606_v34, 0.0  ;;  %v10339_v35 = vpop.f32.mrb[32].mxu1 }
 0x5e2   : > { %v7609_v21 = vadd.f32 %v10339_v35, %v13254_v3  ;;  %v7474_v28 = vpop.f32.mrb[33].mxu1 }
 0x5e3   : > { %v7608_v40 = vadd.f32 %v13254_v3, %v7474_v28  ;;  %10390 = vmatprep.mubr.msk.f32.mxu0 %vm4050_vm3, %v7638_v60 }
 0x5e4   : > { %10391 = vmatmul.mubr.msk.f32.gmra.mrb[46].mxu0 %vm4050_vm3, %v7639_v48  ;;  %v7641_v25 = vmax.f32 %v7609_v21, 0.0 }
 0x5e5   : > { %v7640_v52 = vmax.f32 %v7608_v40, 0.0  ;;  %v10342_v23 = vpop.f32.mrb[34].mxu1 }
 0x5e6   : > { %v7611_v59 = vadd.f32 %v10342_v23, %v13254_v3  ;;  %v7484_v30 = vpop.f32.mrb[35].mxu1 }
 0x5e7   : > { %v7610_v22 = vadd.f32 %v13254_v3, %v7484_v30  ;;  %10393 = vmatprep.mubr.msk.f32.mxu0 %vm4050_vm3, %v7640_v52 }
 0x5e8   : > { %10394 = vmatmul.mubr.msk.f32.gmra.mrb[48].mxu0 %vm4050_vm3, %v7641_v25  ;;  %v7643_v6 = vmax.f32 %v7611_v59, 0.0 }
 0x5e9   : > { %v7642_v24 = vmax.f32 %v7610_v22, 0.0  ;;  %v10345_v0 = vpop.f32.mrb[36].mxu1 }
 0x5ea   : > { %v7613_v49 = vadd.f32 %v10345_v0, %v13254_v3  ;;  %v7494_v38 = vpop.f32.mrb[37].mxu1 }
 0x5eb   : > { %v7612_v47 = vadd.f32 %v13254_v3, %v7494_v38  ;;  %10396 = vmatprep.mubr.msk.f32.mxu0 %vm4050_vm3, %v7642_v24 }
 0x5ec   : > { %10397 = vmatmul.mubr.msk.f32.gmra.mrb[50].mxu0 %vm4050_vm3, %v7643_v6  ;;  %v7645_v1 = vmax.f32 %v7613_v49, 0.0 }
 0x5ed   : > { %v7644_v55 = vmax.f32 %v7612_v47, 0.0  ;;  %v10348_v43 = vpop.f32.mrb[38].mxu1 }
 0x5ee   : > { %v7615_v63 = vadd.f32 %v10348_v43, %v13254_v3  ;;  %v7504_v11 = vpop.f32.mrb[39].mxu1 }
 0x5ef   : > { %v7614_v50 = vadd.f32 %v13254_v3, %v7504_v11  ;;  %10399 = vmatprep.mubr.msk.f32.mxu0 %vm4050_vm3, %v7644_v55 }
 0x5f0   : > { %10400 = vmatmul.mubr.msk.f32.gmra.mrb[52].mxu0 %vm4050_vm3, %v7645_v1  ;;  %v7647_v2 = vmax.f32 %v7615_v63, 0.0 }
 0x5f1   : > { %v7646_v18 = vmax.f32 %v7614_v50, 0.0  ;;  %v10351_v15 = vpop.f32.mrb[40].mxu1 }
 0x5f2   : > { %v7617_v62 = vadd.f32 %v10351_v15, %v13254_v3  ;;  %v7514_v7 = vpop.f32.mrb[41].mxu1 }
 0x5f3   : > { %v7616_v10 = vadd.f32 %v13254_v3, %v7514_v7  ;;  %10402 = vmatprep.mubr.msk.f32.mxu0 %vm4050_vm3, %v7646_v18 }
 0x5f4   : > { %10403 = vmatmul.mubr.msk.f32.gmra.mrb[54].mxu0 %vm4050_vm3, %v7647_v2  ;;  %v7649_v44 = vmax.f32 %v7617_v62, 0.0 }
 0x5f5   : > { %v7648_v51 = vmax.f32 %v7616_v10, 0.0  ;;  %v10354_v14 = vpop.f32.mrb[42].mxu1 }
 0x5f6   : > { %v7619_v8 = vadd.f32 %v10354_v14, %v13254_v3  ;;  %v7524_v29 = vpop.f32.mrb[43].mxu1 }
 0x5f7   : > { %v7618_v20 = vadd.f32 %v13254_v3, %v7524_v29  ;;  %10405 = vmatprep.mubr.msk.f32.mxu0 %vm4050_vm3, %v7648_v51 }
 0x5f8   : > { %10406 = vmatmul.mubr.msk.f32.gmra.mrb[56].mxu0 %vm4050_vm3, %v7649_v44  ;;  %v7651_v4 = vmax.f32 %v7619_v8, 0.0 }
 0x5f9   : > { %v7650_v26 = vmax.f32 %v7618_v20, 0.0  ;;  %v10357_v31 = vpop.f32.mrb[44].mxu1 }
 0x5fa   : > { %v7621_v37 = vadd.f32 %v10357_v31, %v13254_v3  ;;  %v7534_v32 = vpop.f32.mrb[45].mxu1 }
 0x5fb   : > { %v7620_v36 = vadd.f32 %v13254_v3, %v7534_v32  ;;  %10408 = vmatprep.mubr.msk.f32.mxu0 %vm4050_vm3, %v7650_v26 }
 0x5fc   : > { %10409 = vmatmul.mubr.msk.f32.gmra.mrb[58].mxu0 %vm4050_vm3, %v7651_v4  ;;  %v7653_v54 = vmax.f32 %v7621_v37, 0.0 }
 0x5fd   : > { %v7652_v42 = vmax.f32 %v7620_v36, 0.0  ;;  %v10360_v53 = vpop.f32.mrb[46].mxu1 }
 0x5fe   : > { %v7623_v39 = vadd.f32 %v10360_v53, %v13254_v3  ;;  %v7544_v41 = vpop.f32.mrb[47].mxu1 }
 0x5ff   : > { %v7622_v27 = vadd.f32 %v13254_v3, %v7544_v41  ;;  %10411 = vmatprep.mubr.msk.f32.mxu0 %vm4050_vm3, %v7652_v42 }
 0x600   : > { %10412 = vmatmul.mubr.msk.f32.gmra.mrb[60].mxu0 %vm4050_vm3, %v7653_v54  ;;  %v7655_v33 = vmax.f32 %v7623_v39, 0.0 }
 0x601   : > { %v7654_v56 = vmax.f32 %v7622_v27, 0.0 }
 0x603   : > { %10414 = vmatprep.mubr.msk.f32.mxu0 %vm4050_vm3, %v7654_v56 }
 0x604   : > { %10415 = vmatmul.mubr.msk.f32.gmra.mrb[62].mxu0 %vm4050_vm3, %v7655_v33 }
 0x69b   : > { %v10371_v3 = vpop.f32.mrb[32].mxu0 }
 0x69c   : > { %v7835_v46 = vadd.f32 %v10371_v3, %v13323_v45  ;;  %v7829_v17 = vpop.f32.mrb[33].mxu0 }
 0x69d   : > { %v7830_v58 = vadd.f32 %v13323_v45, %v7829_v17 }
 0x69e   : > { %7989 = vst [vmem:[%s13330_s17 + $0x8] sm:$0xff] %v7835_v46 }
 0x69f   : > { %7988 = vst [vmem:[%s13330_s17] sm:$0xff] %v7830_v58  ;;  %v10374_v61 = vpop.f32.mrb[34].mxu0 }
 0x6a0   : > { %v7845_v57 = vadd.f32 %v10374_v61, %v13323_v45  ;;  %v7839_v5 = vpop.f32.mrb[35].mxu0 }
 0x6a1   : > { %v7840_v9 = vadd.f32 %v13323_v45, %v7839_v5 }
 0x6a2   : > { %7991 = vst [vmem:[%s13330_s17 + $0x18] sm:$0xff] %v7845_v57 }
 0x6a3   : > { %7990 = vst [vmem:[%s13330_s17 + $0x10] sm:$0xff] %v7840_v9  ;;  %v10377_v19 = vpop.f32.mrb[36].mxu0 }
 0x6a4   : > { %v7855_v12 = vadd.f32 %v10377_v19, %v13323_v45  ;;  %v7849_v13 = vpop.f32.mrb[37].mxu0 }
 0x6a5   : > { %v7850_v16 = vadd.f32 %v13323_v45, %v7849_v13 }
 0x6a6   : > { %7993 = vst [vmem:[%s13330_s17 + $0x28] sm:$0xff] %v7855_v12 }
 0x6a7   : > { %7992 = vst [vmem:[%s13330_s17 + $0x20] sm:$0xff] %v7850_v16  ;;  %v10380_v34 = vpop.f32.mrb[38].mxu0 }
 0x6a8   : > { %v7865_v60 = vadd.f32 %v10380_v34, %v13323_v45  ;;  %v7859_v35 = vpop.f32.mrb[39].mxu0 }
 0x6a9   : > { %v7860_v48 = vadd.f32 %v13323_v45, %v7859_v35 }
 0x6aa   : > { %7995 = vst [vmem:[%s13330_s17 + $0x38] sm:$0xff] %v7865_v60 }
 0x6ab   : > { %7994 = vst [vmem:[%s13330_s17 + $0x30] sm:$0xff] %v7860_v48  ;;  %v10383_v21 = vpop.f32.mrb[40].mxu0 }
 0x6ac   : > { %v7875_v28 = vadd.f32 %v10383_v21, %v13323_v45  ;;  %v7869_v40 = vpop.f32.mrb[41].mxu0 }
 0x6ad   : > { %v7870_v52 = vadd.f32 %v13323_v45, %v7869_v40 }
 0x6ae   : > { %7997 = vst [vmem:[%s13330_s17 + $0x48] sm:$0xff] %v7875_v28 }
 0x6af   : > { %7996 = vst [vmem:[%s13330_s17 + $0x40] sm:$0xff] %v7870_v52  ;;  %v10386_v23 = vpop.f32.mrb[42].mxu0 }
 0x6b0   : > { %v7885_v25 = vadd.f32 %v10386_v23, %v13323_v45  ;;  %v7879_v59 = vpop.f32.mrb[43].mxu0 }
 0x6b1   : > { %v7880_v30 = vadd.f32 %v13323_v45, %v7879_v59 }
 0x6b2   : > { %7999 = vst [vmem:[%s13330_s17 + $0x58] sm:$0xff] %v7885_v25 }
 0x6b3   : > { %7998 = vst [vmem:[%s13330_s17 + $0x50] sm:$0xff] %v7880_v30  ;;  %v10389_v22 = vpop.f32.mrb[44].mxu0 }
 0x6b4   : > { %v7895_v24 = vadd.f32 %v10389_v22, %v13323_v45  ;;  %v7889_v0 = vpop.f32.mrb[45].mxu0 }
 0x6b5   : > { %v7890_v6 = vadd.f32 %v13323_v45, %v7889_v0 }
 0x6b6   : > { %8001 = vst [vmem:[%s13330_s17 + $0x68] sm:$0xff] %v7895_v24 }
 0x6b7   : > { %8000 = vst [vmem:[%s13330_s17 + $0x60] sm:$0xff] %v7890_v6  ;;  %v10392_v49 = vpop.f32.mrb[46].mxu0 }
 0x6b8   : > { %v7905_v38 = vadd.f32 %v10392_v49, %v13323_v45  ;;  %v7899_v47 = vpop.f32.mrb[47].mxu0 }
 0x6b9   : > { %v7900_v55 = vadd.f32 %v13323_v45, %v7899_v47 }
 0x6ba   : > { %8003 = vst [vmem:[%s13330_s17 + $0x78] sm:$0xff] %v7905_v38 }
 0x6bb   : > { %8002 = vst [vmem:[%s13330_s17 + $0x70] sm:$0xff] %v7900_v55  ;;  %v10395_v43 = vpop.f32.mrb[48].mxu0 }
 0x6bc   : > { %v7915_v1 = vadd.f32 %v10395_v43, %v13323_v45  ;;  %v7909_v63 = vpop.f32.mrb[49].mxu0 }
 0x6bd   : > { %v7910_v11 = vadd.f32 %v13323_v45, %v7909_v63 }
 0x6be   : > { %8005 = vst [vmem:[%s13330_s17 + $0x88] sm:$0xff] %v7915_v1 }
 0x6bf   : > { %8004 = vst [vmem:[%s13330_s17 + $0x80] sm:$0xff] %v7910_v11  ;;  %v10398_v50 = vpop.f32.mrb[50].mxu0 }
 0x6c0   : > { %v7925_v18 = vadd.f32 %v10398_v50, %v13323_v45  ;;  %v7919_v15 = vpop.f32.mrb[51].mxu0 }
 0x6c1   : > { %v7920_v2 = vadd.f32 %v13323_v45, %v7919_v15 }
 0x6c2   : > { %8007 = vst [vmem:[%s13330_s17 + $0x98] sm:$0xff] %v7925_v18 }
 0x6c3   : > { %8006 = vst [vmem:[%s13330_s17 + $0x90] sm:$0xff] %v7920_v2  ;;  %v10401_v62 = vpop.f32.mrb[52].mxu0 }
 0x6c4   : > { %v7935_v7 = vadd.f32 %v10401_v62, %v13323_v45  ;;  %v7929_v10 = vpop.f32.mrb[53].mxu0 }
 0x6c5   : > { %v7930_v51 = vadd.f32 %v13323_v45, %v7929_v10 }
 0x6c6   : > { %8009 = vst [vmem:[%s13330_s17 + $0xa8] sm:$0xff] %v7935_v7 }
 0x6c7   : > { %8008 = vst [vmem:[%s13330_s17 + $0xa0] sm:$0xff] %v7930_v51  ;;  %v10404_v14 = vpop.f32.mrb[54].mxu0 }
 0x6c8   : > { %v7945_v44 = vadd.f32 %v10404_v14, %v13323_v45  ;;  %v7939_v8 = vpop.f32.mrb[55].mxu0 }
 0x6c9   : > { %v7940_v29 = vadd.f32 %v13323_v45, %v7939_v8 }
 0x6ca   : > { %8011 = vst [vmem:[%s13330_s17 + $0xb8] sm:$0xff] %v7945_v44 }
 0x6cb   : > { %8010 = vst [vmem:[%s13330_s17 + $0xb0] sm:$0xff] %v7940_v29  ;;  %v10407_v20 = vpop.f32.mrb[56].mxu0 }
 0x6cc   : > { %v7955_v26 = vadd.f32 %v10407_v20, %v13323_v45  ;;  %v7949_v31 = vpop.f32.mrb[57].mxu0 }
 0x6cd   : > { %v7950_v4 = vadd.f32 %v13323_v45, %v7949_v31 }
 0x6ce   : > { %8013 = vst [vmem:[%s13330_s17 + $0xc8] sm:$0xff] %v7955_v26 }
 0x6cf   : > { %8012 = vst [vmem:[%s13330_s17 + $0xc0] sm:$0xff] %v7950_v4  ;;  %v10410_v37 = vpop.f32.mrb[58].mxu0 }
 0x6d0   : > { %v7965_v32 = vadd.f32 %v10410_v37, %v13323_v45  ;;  %v7959_v36 = vpop.f32.mrb[59].mxu0 }
 0x6d1   : > { %v7960_v42 = vadd.f32 %v13323_v45, %v7959_v36 }
 0x6d2   : > { %8015 = vst [vmem:[%s13330_s17 + $0xd8] sm:$0xff] %v7965_v32 }
 0x6d3   : > { %8014 = vst [vmem:[%s13330_s17 + $0xd0] sm:$0xff] %v7960_v42  ;;  %v10413_v53 = vpop.f32.mrb[60].mxu0 }
 0x6d4   : > { %v7975_v54 = vadd.f32 %v10413_v53, %v13323_v45  ;;  %v7969_v39 = vpop.f32.mrb[61].mxu0 }
 0x6d5   : > { %v7970_v41 = vadd.f32 %v13323_v45, %v7969_v39 }
 0x6d6   : > { %8017 = vst [vmem:[%s13330_s17 + $0xe8] sm:$0xff] %v7975_v54 }
 0x6d7   : > { %8016 = vst [vmem:[%s13330_s17 + $0xe0] sm:$0xff] %v7970_v41  ;;  %v10416_v27 = vpop.f32.mrb[62].mxu0 }
 0x6d8   : > { %v7985_v56 = vadd.f32 %v10416_v27, %v13323_v45  ;;  %v7979_v33 = vpop.f32.mrb[63].mxu0 }
 0x6d9   : > { %v7980_v3 = vadd.f32 %v13323_v45, %v7979_v33 }
 0x6da   : > { %8019 = vst [vmem:[%s13330_s17 + $0xf8] sm:$0xff] %v7985_v56 }
 0x6db   : > { %8018 = vst [vmem:[%s13330_s17 + $0xf0] sm:$0xff] %v7980_v3 }
 0x6dc PF: > { %s19_s30 = sadd.s32 1, %s11026_s30  }
 0x6dd   : > { %p16_p4 = scmp.ge.s32.totalorder %s19_s30, 4  }
 0x6df   :  { %18 = sbr.rel (!%p16_p4) target bundleno = 1 (0x1), region = 106 }

</bundles_post_ra>
